<compile_context>
chip_gen: v7x
topology: tpu7x:2x2x1
jax: 0.10.0
libtpu: 0.0.40
codegen_flags: <defaults>
</compile_context>

<pallas_src>
import functools
import math

import jax
import jax.numpy as jnp
from jax import lax
from jax.experimental import pallas as pl
from jax.experimental.pallas import tpu as pltpu

NEG_BIG = -1e30  # finite "-inf" sentinel (avoids inf-inf -> NaN in online softmax)


# ------------------------------- small helpers ------------------------------ #

def _round_up(x, m):
    return ((x + m - 1) // m) * m


def _pick_tile(total, cap, quantum):
    """Largest multiple of `quantum` that divides `total` and is <= cap, else `total`."""
    t = (min(cap, total) // quantum) * quantum
    while t >= quantum:
        if total % t == 0:
            return t
        t -= quantum
    return total


def _cparams(dims):
    return pltpu.CompilerParams(dimension_semantics=dims,
                                vmem_limit_bytes=32 * 1024 * 1024)


# ----------------------------- Pallas kernels ------------------------------ #

def _edge_attn_kernel(hh_ref, ht_ref, rel_ref, wq_ref, hm_ref,
                      score_t_ref, value_ref, *, inv_sqrt_dk):
    """Per-edge attention logits (head-batched, lane-dense) + message values."""
    hh = hh_ref[...]                      # (te, C)  entity_emb[head]
    ht = ht_ref[...]                      # (te, C)  entity_emb[tail]
    rel = rel_ref[...]                    # (te, C)  relation_emb[edge_type - 1]
    wq = wq_ref[...]                      # (C, C)

    q = jnp.dot(hh, wq, preferred_element_type=jnp.float32)
    k = jnp.dot(ht, wq, preferred_element_type=jnp.float32) * rel

    value_ref[...] = ht * rel             # neigh_relation_emb

    qk = q * k                            # (te, C)
    # (H, te): contract the channel axis of the (H, C) head indicator against
    # qk's channel axis -> per-head score, edges on the lane axis (dense store).
    score_t_ref[...] = lax.dot_general(
        hm_ref[...], qk, (((1,), (1,)), ((), ())),
        preferred_element_type=jnp.float32) * inv_sqrt_dk


def _seg_softmax_agg_kernel(a_ref, st_ref, v_ref, o_ref,
                            m_ref, l_ref, acc_ref, *, n_heads, d_k):
    """Online (flash-style) segment softmax over edge tiles + scatter_sum.

    a_ref  : (tn, te) 0/1 slab, a[r, e] = 1 iff head[e] == node r (zero column
             for padded edges)
    st_ref : (H, te)  per-head edge scores (lane-dense on edges)
    v_ref  : (te, C)  per-edge message values
    scratch: m (tn, H) running max, l (tn, H) running sum, acc (tn, C)
    """
    j = pl.program_id(1)

    @pl.when(j == 0)
    def _init():
        m_ref[...] = jnp.full_like(m_ref, NEG_BIG)
        l_ref[...] = jnp.zeros_like(l_ref)
        acc_ref[...] = jnp.zeros_like(acc_ref)

    a = a_ref[...]
    mask = a > 0.0                       # hoisted: shared across heads
    st = st_ref[...]
    v = v_ref[...]

    for h in range(n_heads):             # n_heads == 2, static
        s_row = st[h:h + 1, :]                                   # (1, te)
        masked = jnp.where(mask, s_row, NEG_BIG)                 # (tn, te)
        m_prev = m_ref[:, h:h + 1]                               # (tn, 1)
        m_new = jnp.maximum(m_prev, jnp.max(masked, axis=1, keepdims=True))
        alpha = jnp.exp(m_prev - m_new)                          # (tn, 1)
        # exact zeros off-segment (also keeps empty rows at exactly 0)
        w = jnp.exp(jnp.where(mask, s_row - m_new, NEG_BIG))     # (tn, te)

        cols = slice(h * d_k, (h + 1) * d_k)
        l_ref[:, h:h + 1] = alpha * l_ref[:, h:h + 1] + jnp.sum(
            w, axis=1, keepdims=True)
        acc_ref[:, cols] = alpha * acc_ref[:, cols] + jnp.dot(
            w, v[:, cols], preferred_element_type=jnp.float32)
        m_ref[:, h:h + 1] = m_new

    @pl.when(j == pl.num_programs(1) - 1)
    def _finalize():
        l = l_ref[...]                                           # (tn, H)
        inv = jnp.where(l > 0.0, 1.0 / l, 0.0)                   # empty segments -> 0
        o_ref[...] = jnp.concatenate(
            [acc_ref[:, h * d_k:(h + 1) * d_k] * inv[:, h:h + 1]
             for h in range(n_heads)], axis=1)


def _user_agg_kernel(im_ref, e_ref, o_ref, acc_ref):
    """Tiled interact_mat @ entity_emb with accumulator over the K axis."""
    k = pl.program_id(1)

    @pl.when(k == 0)
    def _init():
        acc_ref[...] = jnp.zeros_like(acc_ref)

    acc_ref[...] += jnp.dot(im_ref[...], e_ref[...],
                            preferred_element_type=jnp.float32)

    @pl.when(k == pl.num_programs(1) - 1)
    def _finalize():
        o_ref[...] = acc_ref[...]


def _l2norm_kernel(x_ref, o_ref):
    x = x_ref[...]
    ss = jnp.sum(x * x, axis=1, keepdims=True)
    # F.normalize(p=2, dim=1, eps=1e-12): x / max(||x||, 1e-12)
    o_ref[...] = x * lax.rsqrt(jnp.maximum(ss, 1e-24))


# ------------------------------ pallas wrappers ----------------------------- #

def edge_attention(hh, ht, rel, wq, head_mask, *, n_heads, d_k, tile_cap=1024):
    E, C = hh.shape
    te = _pick_tile(E, tile_cap, 128)
    kernel = functools.partial(_edge_attn_kernel, inv_sqrt_dk=1.0 / math.sqrt(d_k))
    return pl.pallas_call(
        kernel,
        out_shape=(jax.ShapeDtypeStruct((n_heads, E), jnp.float32),
                   jax.ShapeDtypeStruct((E, C), jnp.float32)),
        grid=(E // te,),
        in_specs=[pl.BlockSpec((te, C), lambda i: (i, 0)),
                  pl.BlockSpec((te, C), lambda i: (i, 0)),
                  pl.BlockSpec((te, C), lambda i: (i, 0)),
                  pl.BlockSpec((C, C), lambda i: (0, 0)),
                  pl.BlockSpec((n_heads, C), lambda i: (0, 0))],
        out_specs=(pl.BlockSpec((n_heads, te), lambda i: (0, i)),
                   pl.BlockSpec((te, C), lambda i: (i, 0))),
        compiler_params=_cparams(("parallel",)),
    )(hh, ht, rel, wq, head_mask)


def segment_softmax_aggregate(A, score_t, value, *, n_heads, d_k,
                              node_tile_cap=128, edge_tile_cap=512):
    N, E = A.shape
    C = value.shape[1]
    tn = _pick_tile(N, node_tile_cap, 8)
    te = _pick_tile(E, edge_tile_cap, 128)
    kernel = functools.partial(_seg_softmax_agg_kernel, n_heads=n_heads, d_k=d_k)
    return pl.pallas_call(
        kernel,
        out_shape=jax.ShapeDtypeStruct((N, C), jnp.float32),
        grid=(N // tn, E // te),
        in_specs=[pl.BlockSpec((tn, te), lambda i, j: (i, j)),
                  pl.BlockSpec((n_heads, te), lambda i, j: (0, j)),
                  pl.BlockSpec((te, C), lambda i, j: (j, 0))],
        out_specs=pl.BlockSpec((tn, C), lambda i, j: (i, 0)),
        scratch_shapes=[pltpu.VMEM((tn, n_heads), jnp.float32),
                        pltpu.VMEM((tn, n_heads), jnp.float32),
                        pltpu.VMEM((tn, C), jnp.float32)],
        compiler_params=_cparams(("parallel", "arbitrary")),
    )(A, score_t, value)


def user_aggregate(interact_mat, entity_emb, *, user_tile_cap=256, k_tile_cap=512):
    U, N = interact_mat.shape
    C = entity_emb.shape[1]
    tu = _pick_tile(U, user_tile_cap, 8)
    tk = _pick_tile(N, k_tile_cap, 128)
    return pl.pallas_call(
        _user_agg_kernel,
        out_shape=jax.ShapeDtypeStruct((U, C), jnp.float32),
        grid=(U // tu, N // tk),
        in_specs=[pl.BlockSpec((tu, tk), lambda i, k: (i, k)),
                  pl.BlockSpec((tk, C), lambda i, k: (k, 0))],
        out_specs=pl.BlockSpec((tu, C), lambda i, k: (i, 0)),
        scratch_shapes=[pltpu.VMEM((tu, C), jnp.float32)],
        compiler_params=_cparams(("parallel", "arbitrary")),
    )(interact_mat, entity_emb)


def l2_normalize(x, *, row_tile_cap=1024):
    R, C = x.shape
    tr = _pick_tile(R, row_tile_cap, 8)
    return pl.pallas_call(
        _l2norm_kernel,
        out_shape=jax.ShapeDtypeStruct((R, C), jnp.float32),
        grid=(R // tr,),
        in_specs=[pl.BlockSpec((tr, C), lambda i: (i, 0))],
        out_specs=pl.BlockSpec((tr, C), lambda i: (i, 0)),
        compiler_params=_cparams(("parallel",)),
    )(x)


# --------------------------------- HGT module ------------------------------- #

def _xavier_uniform(key, shape):
    fan_in, fan_out = shape[0], shape[1]
    limit = math.sqrt(6.0 / (fan_in + fan_out))
    return jax.random.uniform(key, shape, jnp.float32, -limit, limit)


class HGTPallas:
    def __init__(self, channel, n_hops, n_users, n_relations, key):
        self.channel = channel
        self.n_hops = n_hops
        self.n_users = n_users
        self.n_relations = n_relations
        self.n_heads = 2
        self.d_k = channel // self.n_heads
        k1, k2 = jax.random.split(key)
        self.relation_emb = _xavier_uniform(k1, (n_relations - 1, channel))
        self.W_Q = _xavier_uniform(k2, (channel, channel))
        # (H, C) block indicator: row h is 1 on that head's d_k channel slice.
        self.head_mask = (jnp.arange(channel)[None, :] // self.d_k
                          == jnp.arange(self.n_heads)[:, None]).astype(jnp.float32)

    def forward(self, user_emb, entity_emb, edge_index, edge_type, interact_mat,
                mess_dropout=False):
        n_entities = entity_emb.shape[0]
        head, tail = edge_index[0], edge_index[1]
        E = head.shape[0]
        E_pad = _round_up(E, 128)
        pad = E_pad - E
        # Gather-safe padded indices; segment ids for padded edges are set
        # out-of-range so their one-hot column is all-zero -> they drop out of
        # the segment softmax exactly.
        head_g = jnp.pad(head, (0, pad))
        tail_g = jnp.pad(tail, (0, pad))
        etype_g = jnp.pad(edge_type, (0, pad), constant_values=1)
        head_seg = jnp.pad(head, (0, pad), constant_values=n_entities)
        A = (head_seg[None, :] == jnp.arange(n_entities)[:, None]).astype(jnp.float32)

        entity_res_emb = entity_emb
        user_res_emb = user_emb
        for _ in range(self.n_hops):
            hh = jnp.take(entity_emb, head_g, axis=0)
            ht = jnp.take(entity_emb, tail_g, axis=0)
            rel = jnp.take(self.relation_emb, etype_g - 1, axis=0)

            score_t, value = edge_attention(hh, ht, rel, self.W_Q, self.head_mask,
                                            n_heads=self.n_heads, d_k=self.d_k)
            entity_agg = segment_softmax_aggregate(A, score_t, value,
                                                   n_heads=self.n_heads,
                                                   d_k=self.d_k)
            user_agg = user_aggregate(interact_mat, entity_emb)
            # TODO(synk): mess_dropout (stochastic nn.Dropout) intentionally skipped.
            entity_emb = l2_normalize(entity_agg)
            user_emb = l2_normalize(user_agg)
            entity_res_emb = entity_res_emb + entity_emb
            user_res_emb = user_res_emb + user_emb
        return entity_res_emb, user_res_emb


# ----------------------------- pure-JAX reference --------------------------- #

def reference_forward(model, user_emb, entity_emb, edge_index, edge_type, interact_mat):
    n_entities = entity_emb.shape[0]
    head, tail = edge_index[0], edge_index[1]
    H, dk, C = model.n_heads, model.d_k, model.channel
    E = head.shape[0]

    ent_res, usr_res = entity_emb, user_emb
    for _ in range(model.n_hops):
        hh = entity_emb[head]
        ht = entity_emb[tail]
        rel = model.relation_emb[edge_type - 1]
        q = jnp.dot(hh, model.W_Q).reshape(E, H, dk)
        k = (jnp.dot(ht, model.W_Q) * rel).reshape(E, H, dk)
        score = (q * k).sum(-1) / math.sqrt(dk)                    # (E, H)
        seg_max = jax.ops.segment_max(score, head, num_segments=n_entities)
        exp_s = jnp.exp(score - seg_max[head])
        seg_sum = jax.ops.segment_sum(exp_s, head, num_segments=n_entities)
        attn = exp_s / seg_sum[head]
        value = (ht * rel).reshape(E, H, dk) * attn[..., None]
        entity_agg = jax.ops.segment_sum(value.reshape(E, C), head,
                                         num_segments=n_entities)
        user_agg = jnp.dot(interact_mat, entity_emb)

        def norm(x):
            n = jnp.sqrt(jnp.sum(x * x, axis=1, keepdims=True))
            return x / jnp.maximum(n, 1e-12)

        entity_emb = norm(entity_agg)
        user_emb = norm(user_agg)
        ent_res = ent_res + entity_emb
        usr_res = usr_res + user_emb
    return ent_res, usr_res


# ------------------------------------ main ---------------------------------- #

if __name__ == "__main__":
    channel = 32
    n_hops = 2
    n_users = 16
    n_entities = 256
    n_relations = 4
    n_edges = 2000            # not a multiple of 128 -> exercises the padding path

    root = jax.random.PRNGKey(0)
    k_mod, k_ue, k_ee, k_h, k_t, k_et, k_im, k_msk = jax.random.split(root, 8)

    model = HGTPallas(channel, n_hops, n_users, n_relations, k_mod)

    user_emb = 0.1 * jax.random.normal(k_ue, (n_users, channel), jnp.float32)
    entity_emb = 0.1 * jax.random.normal(k_ee, (n_entities, channel), jnp.float32)
    head = jax.random.randint(k_h, (n_edges,), 0, n_entities)
    tail = jax.random.randint(k_t, (n_edges,), 0, n_entities)
    edge_index = jnp.stack([head, tail], axis=0)
    edge_type = jax.random.randint(k_et, (n_edges,), 1, n_relations)
    interact_vals = jax.random.uniform(k_im, (n_users, n_entities), jnp.float32)
    interact_mask = (jax.random.uniform(k_msk, (n_users, n_entities)) < 0.2)
    interact_mat = interact_vals * interact_mask.astype(jnp.float32)

    ent_out, usr_out = model.forward(user_emb, entity_emb, edge_index, edge_type,
                                     interact_mat, mess_dropout=False)
    jax.block_until_ready((ent_out, usr_out))

    ent_ref, usr_ref = reference_forward(model, user_emb, entity_emb, edge_index,
                                         edge_type, interact_mat)
    # DEFAULT (bf16-pass) MXU precision is used deliberately per perf guidance;
    # tolerance reflects that.
    assert jnp.allclose(ent_out, ent_ref, rtol=1e-2, atol=1e-2), "entity mismatch"
    assert jnp.allclose(usr_out, usr_ref, rtol=1e-2, atol=1e-2), "user mismatch"

    print("KERNEL_OK")
</pallas_src>

<mosaic_0001>
module attributes {stable_mosaic.version = 11 : i64} {
  func.func @_edge_attn_kernel(%arg0: i32, %arg1: memref<1024x32xf32, #tpu.memory_space<vmem>>, %arg2: memref<1024x32xf32, #tpu.memory_space<vmem>>, %arg3: memref<1024x32xf32, #tpu.memory_space<vmem>>, %arg4: memref<32x32xf32, #tpu.memory_space<vmem>>, %arg5: memref<2x32xf32, #tpu.memory_space<vmem>>, %arg6: memref<2x1024xf32, #tpu.memory_space<vmem>>, %arg7: memref<1024x32xf32, #tpu.memory_space<vmem>>) attributes {dimension_semantics = [#tpu.dimension_semantics<parallel>], iteration_bounds = array<i64: 2>, scalar_prefetch = 0 : i64, scratch_operands = 0 : i64, tpu.core_type = #tpu.core_type<tc>, window_params = [{transform_indices = @transform_0, window_bounds = array<i64: 1024, 32>}, {transform_indices = @transform_1, window_bounds = array<i64: 1024, 32>}, {transform_indices = @transform_2, window_bounds = array<i64: 1024, 32>}, {pipeline_mode = #tpu.pipeline_mode<synchronous>, transform_indices = @transform_3, window_bounds = array<i64: 32, 32>}, {pipeline_mode = #tpu.pipeline_mode<synchronous>, transform_indices = @transform_4, window_bounds = array<i64: 2, 32>}, {transform_indices = @transform_5, window_bounds = array<i64: 2, 1024>}, {transform_indices = @transform_6, window_bounds = array<i64: 1024, 32>}]} {
    %c0 = arith.constant 0 : index
    %c0_0 = arith.constant 0 : index
    %0 = vector.load %arg1[%c0, %c0_0] : memref<1024x32xf32, #tpu.memory_space<vmem>>, vector<1024x32xf32>
    %c0_1 = arith.constant 0 : index
    %c0_2 = arith.constant 0 : index
    %1 = vector.load %arg2[%c0_1, %c0_2] : memref<1024x32xf32, #tpu.memory_space<vmem>>, vector<1024x32xf32>
    %c0_3 = arith.constant 0 : index
    %c0_4 = arith.constant 0 : index
    %2 = vector.load %arg3[%c0_3, %c0_4] : memref<1024x32xf32, #tpu.memory_space<vmem>>, vector<1024x32xf32>
    %c0_5 = arith.constant 0 : index
    %c0_6 = arith.constant 0 : index
    %3 = vector.load %arg4[%c0_5, %c0_6] : memref<32x32xf32, #tpu.memory_space<vmem>>, vector<32x32xf32>
    %cst = arith.constant dense<0.000000e+00> : vector<1024x32xf32>
    %4 = tpu.matmul %0, %3, %cst {dimension_numbers = #tpu.dot_dimension_numbers<[1], [0], [0], [1], [0, 0, 1, 1], [], []>} : vector<1024x32xf32>, vector<32x32xf32>, vector<1024x32xf32> -> vector<1024x32xf32>
    %cst_7 = arith.constant dense<0.000000e+00> : vector<1024x32xf32>
    %5 = tpu.matmul %1, %3, %cst_7 {dimension_numbers = #tpu.dot_dimension_numbers<[1], [0], [0], [1], [0, 0, 1, 1], [], []>} : vector<1024x32xf32>, vector<32x32xf32>, vector<1024x32xf32> -> vector<1024x32xf32>
    %6 = arith.mulf %5, %2 : vector<1024x32xf32>
    %7 = arith.mulf %1, %2 : vector<1024x32xf32>
    %c0_8 = arith.constant 0 : index
    %c0_9 = arith.constant 0 : index
    %8 = vector.load %arg7[%c0_8, %c0_9] : memref<1024x32xf32, #tpu.memory_space<vmem>>, vector<1024x32xf32>
    tpu.vector_store %arg7[%c0_8, %c0_9], %7 {strides = array<i32>} : memref<1024x32xf32, #tpu.memory_space<vmem>>, vector<1024x32xf32>,
    %9 = arith.mulf %4, %6 : vector<1024x32xf32>
    %c0_10 = arith.constant 0 : index
    %c0_11 = arith.constant 0 : index
    %10 = vector.load %arg5[%c0_10, %c0_11] : memref<2x32xf32, #tpu.memory_space<vmem>>, vector<2x32xf32>
    %cst_12 = arith.constant dense<0.000000e+00> : vector<2x1024xf32>
    %11 = tpu.matmul %10, %9, %cst_12 {dimension_numbers = #tpu.dot_dimension_numbers<[1], [1], [0], [0], [0, 0, 1, 0], [], []>} : vector<2x32xf32>, vector<1024x32xf32>, vector<2x1024xf32> -> vector<2x1024xf32>
    %cst_13 = arith.constant 2.500000e-01 : f32
    %12 = vector.broadcast %cst_13 : f32 to vector<2x1024xf32>
    %13 = arith.mulf %11, %12 : vector<2x1024xf32>
    %c0_14 = arith.constant 0 : index
    %c0_15 = arith.constant 0 : index
    %14 = vector.load %arg6[%c0_14, %c0_15] : memref<2x1024xf32, #tpu.memory_space<vmem>>, vector<2x1024xf32>
    tpu.vector_store %arg6[%c0_14, %c0_15], %13 {strides = array<i32>} : memref<2x1024xf32, #tpu.memory_space<vmem>>, vector<2x1024xf32>,
    return
  }
  func.func @transform_0(%arg0: i32) -> (i32, i32) {
    %c0_i32 = arith.constant 0 : i32
    %c0_i32_0 = arith.constant 0 : i32
    return %arg0, %c0_i32 : i32, i32
  }
  func.func @transform_1(%arg0: i32) -> (i32, i32) {
    %c0_i32 = arith.constant 0 : i32
    %c0_i32_0 = arith.constant 0 : i32
    return %arg0, %c0_i32 : i32, i32
  }
  func.func @transform_2(%arg0: i32) -> (i32, i32) {
    %c0_i32 = arith.constant 0 : i32
    %c0_i32_0 = arith.constant 0 : i32
    return %arg0, %c0_i32 : i32, i32
  }
  func.func @transform_3(%arg0: i32) -> (i32, i32) {
    %c0_i32 = arith.constant 0 : i32
    %c0_i32_0 = arith.constant 0 : i32
    %c0_i32_1 = arith.constant 0 : i32
    return %c0_i32, %c0_i32_0 : i32, i32
  }
  func.func @transform_4(%arg0: i32) -> (i32, i32) {
    %c0_i32 = arith.constant 0 : i32
    %c0_i32_0 = arith.constant 0 : i32
    %c0_i32_1 = arith.constant 0 : i32
    return %c0_i32, %c0_i32_0 : i32, i32
  }
  func.func @transform_5(%arg0: i32) -> (i32, i32) {
    %c0_i32 = arith.constant 0 : i32
    %c0_i32_0 = arith.constant 0 : i32
    return %c0_i32, %arg0 : i32, i32
  }
  func.func @transform_6(%arg0: i32) -> (i32, i32) {
    %c0_i32 = arith.constant 0 : i32
    %c0_i32_0 = arith.constant 0 : i32
    return %arg0, %c0_i32 : i32, i32
  }
}

</mosaic_0001>

<bundles_post_ra>
// kernel: tpu_custom_call.1
= control target key start
LH: loop header
LB: loop body
LE: loop exit
PB: predicated region body
PF: predicated region fallthrough
CT: control target
= control target key end

     0   :  { %12 = vsyncpa [#allocation3], 0  ;;  %s8268_s0 = inlined_call_operand.vmem [shape: f32[2048,32], index: 0, kind: input, shape index: {}]   ;;  %s8269_s1 = inlined_call_operand.vmem [shape: f32[2048,32], index: 1, kind: input, shape index: {}]   ;;  %s8270_s2 = inlined_call_operand.vmem [shape: f32[2048,32], index: 2, kind: input, shape index: {}]   ;;  %s8271_s3 = inlined_call_operand.vmem [shape: f32[32,32], index: 3, kind: input, shape index: {}]   ;;  %s8272_s4 = inlined_call_operand.vmem [shape: f32[2,32], index: 4, kind: input, shape index: {}]   ;;  %s8273_s5 = inlined_call_operand.hbm [shape: f32[2,2048], index: 5, kind: output, shape index: {0}]   ;;  %s8274_s6 = inlined_call_operand.vmem [shape: f32[2048,32], index: 6, kind: output, shape index: {1}]  }
   0x1   :  { %14 = vsyncpa [#allocation3 + $0x1], 0  ;;  %s5848_s21 = smov 0   ;;  %s5850_s22 = smov 0  }
   0x2   :  { %s5852_s23 = smov 0   ;;  %s5854_s24 = smov 0  }
   0x3 LB: > { %s5869_s25 = sadd.s32 4294967295, %s5809_s24   ;;  %s4248_s26 = sadd.s32 4294967294, %s5809_s24   ;;  %s5809_s24 = sphi %s5854_s24, %s8530_s24   ;;  %s5805_s23 = sphi %s5852_s23, %s8529_s23   ;;  %s5801_s22 = sphi %s5850_s22, %s8528_s22   ;;  %s5797_s21 = sphi %s5848_s21, %s8527_s21  }
   0x4   : > { %s5873_s27 = sadd.s32 1, %s5809_s24   ;;  %s147_s28 = sadd.s32 1, %s5805_s23 }
   0x5   : > { %s144_s29 = ssub.s32 %s5809_s24, %s5873_s27  ;;  %p157_p0 = scmp.ne.s32.totalorder %s5805_s23, %s5801_s22 }
   0x6   : > { %p145_p1 = scmp.eq.s32.totalorder %s144_s29, 0  ;;  %p158_p2 = scmp.eq.s32.totalorder %s5869_s25, 1 }
   0x7   : > { %p163_p3 = scmp.ne.s32.totalorder %s5801_s22, %s5797_s21  ;;  %p164_p4 = scmp.eq.s32.totalorder %s4248_s26, 1 }
   0x8   : > { %s5884_s30 = scalar_select %p145_p1, %s5805_s23, %s147_s28  }
   0x9   : > { %p5886_p5 = por %p158_p2, %p157_p0  ;;  %p5890_p6 = por %p164_p4, %p163_p3 }
   0xa   : > { %p4251_p7 = scmp.ge.s32.totalorder %s5809_s24, 1  ;;  %p241_p8 = scmp.lt.s32.totalorder %s5809_s24, 3 }
   0xc   : > { %p242_p9 = pnand %p4251_p7, %p241_p8 }
   0xe   : > { %245 = sbr.rel (%p242_p9) target bundleno = 774 (0x306), region = 40 }
  0x15   : > { %v695_v0 = vld [vmem:[%s8271_s3] sm:$0xff]  ;;  %v696_v1 = vld [vmem:[%s8271_s3 + $0x8] sm:$0xff]  ;;  %v697_v2 = vld [vmem:[%s8271_s3 + $0x10] sm:$0xff]  ;;  %s4253_s15 = sshll.u32 %s5869_s25, 7  ;;  %vm699_vm0 = vcmask 261120   ;;  %s276_s20 = sand.u32 1, %s5801_s22  }
  0x16   : > { %v5455_v3 = vpack.c.bf16 %v696_v1, %v695_v0  ;;  %v698_v4 = vld [vmem:[%s8271_s3 + $0x18] sm:$0xff]  ;;  %p287_p10 = scmp.lt.s32.totalorder %s4253_s15, 255  ;;  %vm7238_vm1 = vmpackc.low %vm699_vm0, %vm699_vm0  ;;  %s4654_s29 = sshll.u32 %s5869_s25, 8 }
  0x17   : > { %v5459_v5 = vpack.c.bf16 %v698_v4, %v697_v2  ;;  %s4117_s13 = scalar_lea.sflag [#allocation3], %s276_s20  ;;  %s5812_s25 = smov [#allocation2]  }
  0x18   : > { %5464 = vmatprep.subr.bf16.mxu1 %v5455_v3  ;;  %5456 = vmatprep.subr.bf16.mxu0 %v5455_v3  ;;  %s8532_s15 = smov (!%p287_p10, %s4253_s15), 255 }
  0x19   : > { %5466 = vmatpush3.bf16.msra.mxu1 %v5455_v3  ;;  %5458 = vmatpush3.bf16.msra.mxu0 %v5455_v3  ;;  %s4254_s18 = sshll.u32 %s8532_s15, 3 }
  0x1a   : > { %5468 = vmatprep.subr.bf16.mxu1 %v5459_v5  ;;  %5460 = vmatprep.subr.bf16.mxu0 %v5459_v5  ;;  %s5912_s26 = scalar_lea.vmem %s8269_s1, %s4254_s18  ;;  %s5917_s9 = scalar_lea.vmem %s8270_s2, %s4254_s18 }
  0x1b   : > { %s5922_s12 = scalar_lea.vmem %s8274_s6, %s4254_s18  ;;  %v439_v6 = vld [vmem:[%s5912_s26] sm:$0xff]  ;;  %s5929_s15 = scalar_lea.vmem %s8268_s0, %s4254_s18  ;;  %v5933_v10 = vld [vmem:[%s5912_s26 + $0x8] sm:$0xff]  ;;  %v5939_v12 = vld [vmem:[%s5912_s26 + $0x10] sm:$0xff] }
  0x1c   : > { %v567_v7 = vld [vmem:[%s5917_s9] sm:$0xff]  ;;  %v312_v11 = vld [vmem:[%s5929_s15 + $0x8] sm:$0xff]  ;;  %5263 = vmatprep.mubr.msk.f32.mxu1 %vm699_vm0, %v439_v6  ;;  %v313_v13 = vld [vmem:[%s5929_s15 + $0x10] sm:$0xff] }
  0x1d   : > { %5470 = vmatpush3.bf16.msra.mxu1 %v5459_v5  ;;  %5462 = vmatpush3.bf16.msra.mxu0 %v5459_v5  ;;  %v3006_v8 = vmul.f32 %v567_v7, %v439_v6  ;;  %v311_v9 = vld [vmem:[%s5929_s15] sm:$0xff]  ;;  %v5951_v14 = vld [vmem:[%s5912_s26 + $0x18] sm:$0xff]  ;;  %v5965_v18 = vld [vmem:[%s5912_s26 + $0x28] sm:$0xff] }
  0x1e   : > { %5063 = vmatprep.mubr.msk.f32.mxu0 %vm699_vm0, %v311_v9  ;;  %v314_v15 = vld [vmem:[%s5929_s15 + $0x18] sm:$0xff]  ;;  %v5955_v16 = vld [vmem:[%s5912_s26 + $0x20] sm:$0xff]  ;;  %v316_v19 = vld [vmem:[%s5929_s15 + $0x28] sm:$0xff] }
  0x1f   : > { %3134 = vst.msk [vmem:[%s5922_s12] sm:$0xff] %vm699_vm0, %v3006_v8  ;;  %v315_v17 = vld [vmem:[%s5929_s15 + $0x20] sm:$0xff]  ;;  %v5969_v20 = vld [vmem:[%s5912_s26 + $0x30] sm:$0xff]  ;;  %v5979_v22 = vld [vmem:[%s5912_s26 + $0x38] sm:$0xff] }
  0x20   : > { %5264 = vmatmul.mubr.msk.f32.vlgmr.msra.gmra.mrb[0].mxu1 %vm699_vm0, %v5933_v10  ;;  %5064 = vmatmul.mubr.msk.f32.vlgmr.msra.gmra.mrb[0].mxu0 %vm699_vm0, %v312_v11  ;;  %v317_v21 = vld [vmem:[%s5929_s15 + $0x30] sm:$0xff]  ;;  %v318_v23 = vld [vmem:[%s5929_s15 + $0x38] sm:$0xff]  ;;  %v5983_v24 = vld [vmem:[%s5912_s26 + $0x40] sm:$0xff] }
  0x21   : > { %5266 = vmatprep.mubr.msk.f32.mxu1 %vm699_vm0, %v5939_v12  ;;  %5066 = vmatprep.mubr.msk.f32.mxu0 %vm699_vm0, %v313_v13  ;;  %v319_v25 = vld [vmem:[%s5929_s15 + $0x40] sm:$0xff]  ;;  %v5993_v26 = vld [vmem:[%s5912_s26 + $0x48] sm:$0xff]  ;;  %v5997_v28 = vld [vmem:[%s5912_s26 + $0x50] sm:$0xff] }
  0x22   : > { %v320_v27 = vld [vmem:[%s5929_s15 + $0x48] sm:$0xff]  ;;  %v321_v29 = vld [vmem:[%s5929_s15 + $0x50] sm:$0xff]  ;;  %v6007_v30 = vld [vmem:[%s5912_s26 + $0x58] sm:$0xff] }
  0x23   : > { %v322_v31 = vld [vmem:[%s5929_s15 + $0x58] sm:$0xff]  ;;  %v6011_v32 = vld [vmem:[%s5912_s26 + $0x60] sm:$0xff]  ;;  %v6021_v34 = vld [vmem:[%s5912_s26 + $0x68] sm:$0xff] }
  0x24   : > { %5267 = vmatmul.mubr.msk.f32.gmra.mrb[2].mxu1 %vm699_vm0, %v5951_v14  ;;  %5067 = vmatmul.mubr.msk.f32.gmra.mrb[2].mxu0 %vm699_vm0, %v314_v15  ;;  %v323_v33 = vld [vmem:[%s5929_s15 + $0x60] sm:$0xff]  ;;  %v324_v35 = vld [vmem:[%s5929_s15 + $0x68] sm:$0xff]  ;;  %v6025_v36 = vld [vmem:[%s5912_s26 + $0x70] sm:$0xff] }
  0x25   : > { %5269 = vmatprep.mubr.msk.f32.mxu1 %vm699_vm0, %v5955_v16  ;;  %5069 = vmatprep.mubr.msk.f32.mxu0 %vm699_vm0, %v315_v17  ;;  %v325_v37 = vld [vmem:[%s5929_s15 + $0x70] sm:$0xff]  ;;  %v6035_v38 = vld [vmem:[%s5912_s26 + $0x78] sm:$0xff]  ;;  %v6039_v40 = vld [vmem:[%s5912_s26 + $0x80] sm:$0xff] }
  0x26   : > { %v326_v39 = vld [vmem:[%s5929_s15 + $0x78] sm:$0xff]  ;;  %v327_v41 = vld [vmem:[%s5929_s15 + $0x80] sm:$0xff]  ;;  %v6049_v42 = vld [vmem:[%s5912_s26 + $0x88] sm:$0xff] }
  0x27   : > { %v328_v43 = vld [vmem:[%s5929_s15 + $0x88] sm:$0xff]  ;;  %v6053_v44 = vld [vmem:[%s5912_s26 + $0x90] sm:$0xff]  ;;  %v6063_v46 = vld [vmem:[%s5912_s26 + $0x98] sm:$0xff] }
  0x28   : > { %5270 = vmatmul.mubr.msk.f32.gmra.mrb[4].mxu1 %vm699_vm0, %v5965_v18  ;;  %5070 = vmatmul.mubr.msk.f32.gmra.mrb[4].mxu0 %vm699_vm0, %v316_v19  ;;  %v329_v45 = vld [vmem:[%s5929_s15 + $0x90] sm:$0xff]  ;;  %v330_v47 = vld [vmem:[%s5929_s15 + $0x98] sm:$0xff]  ;;  %v6067_v48 = vld [vmem:[%s5912_s26 + $0xa0] sm:$0xff] }
  0x29   : > { %5272 = vmatprep.mubr.msk.f32.mxu1 %vm699_vm0, %v5969_v20  ;;  %5072 = vmatprep.mubr.msk.f32.mxu0 %vm699_vm0, %v317_v21  ;;  %v331_v49 = vld [vmem:[%s5929_s15 + $0xa0] sm:$0xff]  ;;  %v6077_v50 = vld [vmem:[%s5912_s26 + $0xa8] sm:$0xff]  ;;  %v6081_v52 = vld [vmem:[%s5912_s26 + $0xb0] sm:$0xff] }
  0x2a   : > { %v332_v51 = vld [vmem:[%s5929_s15 + $0xa8] sm:$0xff]  ;;  %v333_v53 = vld [vmem:[%s5929_s15 + $0xb0] sm:$0xff]  ;;  %v6091_v54 = vld [vmem:[%s5912_s26 + $0xb8] sm:$0xff] }
  0x2b   : > { %v334_v55 = vld [vmem:[%s5929_s15 + $0xb8] sm:$0xff]  ;;  %v6095_v56 = vld [vmem:[%s5912_s26 + $0xc0] sm:$0xff]  ;;  %v6105_v58 = vld [vmem:[%s5912_s26 + $0xc8] sm:$0xff] }
  0x2c   : > { %5273 = vmatmul.mubr.msk.f32.gmra.mrb[6].mxu1 %vm699_vm0, %v5979_v22  ;;  %5073 = vmatmul.mubr.msk.f32.gmra.mrb[6].mxu0 %vm699_vm0, %v318_v23  ;;  %v335_v57 = vld [vmem:[%s5929_s15 + $0xc0] sm:$0xff]  ;;  %v336_v59 = vld [vmem:[%s5929_s15 + $0xc8] sm:$0xff]  ;;  %v6109_v60 = vld [vmem:[%s5912_s26 + $0xd0] sm:$0xff] }
  0x2d   : > { %5275 = vmatprep.mubr.msk.f32.mxu1 %vm699_vm0, %v5983_v24  ;;  %5075 = vmatprep.mubr.msk.f32.mxu0 %vm699_vm0, %v319_v25  ;;  %v337_v61 = vld [vmem:[%s5929_s15 + $0xd0] sm:$0xff]  ;;  %v6119_v62 = vld [vmem:[%s5912_s26 + $0xd8] sm:$0xff]  ;;  %v6123_v0 = vld [vmem:[%s5912_s26 + $0xe0] sm:$0xff] }
  0x2e   : > { %v338_v63 = vld [vmem:[%s5929_s15 + $0xd8] sm:$0xff]  ;;  %v339_v1 = vld [vmem:[%s5929_s15 + $0xe0] sm:$0xff]  ;;  %v6133_v2 = vld [vmem:[%s5912_s26 + $0xe8] sm:$0xff] }
  0x2f   : > { %v340_v3 = vld [vmem:[%s5929_s15 + $0xe8] sm:$0xff]  ;;  %v6137_v4 = vld [vmem:[%s5912_s26 + $0xf0] sm:$0xff]  ;;  %v6147_v6 = vld [vmem:[%s5912_s26 + $0xf8] sm:$0xff] }
  0x30   : > { %5276 = vmatmul.mubr.msk.f32.gmra.mrb[8].mxu1 %vm699_vm0, %v5993_v26  ;;  %5076 = vmatmul.mubr.msk.f32.gmra.mrb[8].mxu0 %vm699_vm0, %v320_v27  ;;  %v341_v5 = vld [vmem:[%s5929_s15 + $0xf0] sm:$0xff]  ;;  %v342_v7 = vld [vmem:[%s5929_s15 + $0xf8] sm:$0xff]  ;;  %v6151_v8 = vld [vmem:[%s5912_s26 + $0x100] sm:$0xff] }
  0x31   : > { %5278 = vmatprep.mubr.msk.f32.mxu1 %vm699_vm0, %v5997_v28  ;;  %5078 = vmatprep.mubr.msk.f32.mxu0 %vm699_vm0, %v321_v29  ;;  %v343_v9 = vld [vmem:[%s5929_s15 + $0x100] sm:$0xff]  ;;  %v6161_v11 = vld [vmem:[%s5912_s26 + $0x108] sm:$0xff]  ;;  %v6165_v15 = vld [vmem:[%s5912_s26 + $0x110] sm:$0xff] }
  0x32   : > { %v344_v13 = vld [vmem:[%s5929_s15 + $0x108] sm:$0xff]  ;;  %v345_v17 = vld [vmem:[%s5929_s15 + $0x110] sm:$0xff]  ;;  %v6175_v19 = vld [vmem:[%s5912_s26 + $0x118] sm:$0xff] }
  0x33   : > { %v346_v21 = vld [vmem:[%s5929_s15 + $0x118] sm:$0xff]  ;;  %v6179_v23 = vld [vmem:[%s5912_s26 + $0x120] sm:$0xff]  ;;  %v6189_v27 = vld [vmem:[%s5912_s26 + $0x128] sm:$0xff] }
  0x34   : > { %5279 = vmatmul.mubr.msk.f32.gmra.mrb[10].mxu1 %vm699_vm0, %v6007_v30  ;;  %5079 = vmatmul.mubr.msk.f32.gmra.mrb[10].mxu0 %vm699_vm0, %v322_v31  ;;  %v347_v25 = vld [vmem:[%s5929_s15 + $0x120] sm:$0xff]  ;;  %v348_v29 = vld [vmem:[%s5929_s15 + $0x128] sm:$0xff]  ;;  %v6193_v31 = vld [vmem:[%s5912_s26 + $0x130] sm:$0xff] }
  0x35   : > { %5281 = vmatprep.mubr.msk.f32.mxu1 %vm699_vm0, %v6011_v32  ;;  %5081 = vmatprep.mubr.msk.f32.mxu0 %vm699_vm0, %v323_v33  ;;  %v349_v33 = vld [vmem:[%s5929_s15 + $0x130] sm:$0xff] }
  0x38   : > { %5282 = vmatmul.mubr.msk.f32.gmra.mrb[12].mxu1 %vm699_vm0, %v6021_v34  ;;  %5082 = vmatmul.mubr.msk.f32.gmra.mrb[12].mxu0 %vm699_vm0, %v324_v35  ;;  %v6203_v35 = vld [vmem:[%s5912_s26 + $0x138] sm:$0xff] }
  0x39   : > { %5284 = vmatprep.mubr.msk.f32.mxu1 %vm699_vm0, %v6025_v36  ;;  %5084 = vmatprep.mubr.msk.f32.mxu0 %vm699_vm0, %v325_v37  ;;  %v350_v37 = vld [vmem:[%s5929_s15 + $0x138] sm:$0xff] }
  0x3c   : > { %5285 = vmatmul.mubr.msk.f32.gmra.mrb[14].mxu1 %vm699_vm0, %v6035_v38  ;;  %5085 = vmatmul.mubr.msk.f32.gmra.mrb[14].mxu0 %vm699_vm0, %v326_v39  ;;  %v6207_v39 = vld [vmem:[%s5912_s26 + $0x140] sm:$0xff] }
  0x3d   : > { %5287 = vmatprep.mubr.msk.f32.mxu1 %vm699_vm0, %v6039_v40  ;;  %5087 = vmatprep.mubr.msk.f32.mxu0 %vm699_vm0, %v327_v41  ;;  %v351_v41 = vld [vmem:[%s5929_s15 + $0x140] sm:$0xff] }
  0x40   : > { %5288 = vmatmul.mubr.msk.f32.gmra.mrb[16].mxu1 %vm699_vm0, %v6049_v42  ;;  %5088 = vmatmul.mubr.msk.f32.gmra.mrb[16].mxu0 %vm699_vm0, %v328_v43  ;;  %v6217_v43 = vld [vmem:[%s5912_s26 + $0x148] sm:$0xff] }
  0x41   : > { %5290 = vmatprep.mubr.msk.f32.mxu1 %vm699_vm0, %v6053_v44  ;;  %5090 = vmatprep.mubr.msk.f32.mxu0 %vm699_vm0, %v329_v45  ;;  %v352_v45 = vld [vmem:[%s5929_s15 + $0x148] sm:$0xff] }
  0x44   : > { %5291 = vmatmul.mubr.msk.f32.gmra.mrb[18].mxu1 %vm699_vm0, %v6063_v46  ;;  %5091 = vmatmul.mubr.msk.f32.gmra.mrb[18].mxu0 %vm699_vm0, %v330_v47  ;;  %v6221_v47 = vld [vmem:[%s5912_s26 + $0x150] sm:$0xff] }
  0x45   : > { %5293 = vmatprep.mubr.msk.f32.mxu1 %vm699_vm0, %v6067_v48  ;;  %5093 = vmatprep.mubr.msk.f32.mxu0 %vm699_vm0, %v331_v49  ;;  %v353_v49 = vld [vmem:[%s5929_s15 + $0x150] sm:$0xff] }
  0x48   : > { %5294 = vmatmul.mubr.msk.f32.gmra.mrb[20].mxu1 %vm699_vm0, %v6077_v50  ;;  %5094 = vmatmul.mubr.msk.f32.gmra.mrb[20].mxu0 %vm699_vm0, %v332_v51  ;;  %v6231_v51 = vld [vmem:[%s5912_s26 + $0x158] sm:$0xff] }
  0x49   : > { %5296 = vmatprep.mubr.msk.f32.mxu1 %vm699_vm0, %v6081_v52  ;;  %5096 = vmatprep.mubr.msk.f32.mxu0 %vm699_vm0, %v333_v53  ;;  %v354_v53 = vld [vmem:[%s5929_s15 + $0x158] sm:$0xff] }
  0x4c   : > { %5297 = vmatmul.mubr.msk.f32.gmra.mrb[22].mxu1 %vm699_vm0, %v6091_v54  ;;  %5097 = vmatmul.mubr.msk.f32.gmra.mrb[22].mxu0 %vm699_vm0, %v334_v55  ;;  %v6235_v55 = vld [vmem:[%s5912_s26 + $0x160] sm:$0xff] }
  0x4d   : > { %5299 = vmatprep.mubr.msk.f32.mxu1 %vm699_vm0, %v6095_v56  ;;  %5099 = vmatprep.mubr.msk.f32.mxu0 %vm699_vm0, %v335_v57  ;;  %v355_v57 = vld [vmem:[%s5929_s15 + $0x160] sm:$0xff] }
  0x50   : > { %5300 = vmatmul.mubr.msk.f32.gmra.mrb[24].mxu1 %vm699_vm0, %v6105_v58  ;;  %5100 = vmatmul.mubr.msk.f32.gmra.mrb[24].mxu0 %vm699_vm0, %v336_v59  ;;  %v6239_v59 = vld [vmem:[%s5917_s9 + $0x8] sm:$0xff] }
  0x51   : > { %5302 = vmatprep.mubr.msk.f32.mxu1 %vm699_vm0, %v6109_v60  ;;  %5102 = vmatprep.mubr.msk.f32.mxu0 %vm699_vm0, %v337_v61  ;;  %v3007_v61 = vmul.f32 %v6239_v59, %v5933_v10  ;;  %v6263_v10 = vld [vmem:[%s5917_s9 + $0x18] sm:$0xff] }
  0x53   : > { %3135 = vst.msk [vmem:[%s5922_s12 + $0x8] sm:$0xff] %vm699_vm0, %v3007_v61 }
  0x54   : > { %5303 = vmatmul.mubr.msk.f32.gmra.mrb[26].mxu1 %vm699_vm0, %v6119_v62  ;;  %5103 = vmatmul.mubr.msk.f32.gmra.mrb[26].mxu0 %vm699_vm0, %v338_v63  ;;  %v6250_v63 = vld [vmem:[%s5912_s26 + $0x168] sm:$0xff] }
  0x55   : > { %5305 = vmatprep.mubr.msk.f32.mxu1 %vm699_vm0, %v6123_v0  ;;  %5105 = vmatprep.mubr.msk.f32.mxu0 %vm699_vm0, %v339_v1  ;;  %v356_v1 = vld [vmem:[%s5929_s15 + $0x168] sm:$0xff] }
  0x58   : > { %5306 = vmatmul.mubr.msk.f32.gmra.mrb[28].mxu1 %vm699_vm0, %v6133_v2  ;;  %5106 = vmatmul.mubr.msk.f32.gmra.mrb[28].mxu0 %vm699_vm0, %v340_v3  ;;  %v6254_v3 = vld [vmem:[%s5912_s26 + $0x170] sm:$0xff] }
  0x59   : > { %5308 = vmatprep.mubr.msk.f32.mxu1 %vm699_vm0, %v6137_v4  ;;  %5108 = vmatprep.mubr.msk.f32.mxu0 %vm699_vm0, %v341_v5  ;;  %v357_v5 = vld [vmem:[%s5929_s15 + $0x170] sm:$0xff] }
  0x5c   : > { %5309 = vmatmul.mubr.msk.f32.gmra.mrb[30].mxu1 %vm699_vm0, %v6147_v6  ;;  %5109 = vmatmul.mubr.msk.f32.gmra.mrb[30].mxu0 %vm699_vm0, %v342_v7  ;;  %v6269_v7 = vld [vmem:[%s5912_s26 + $0x178] sm:$0xff] }
  0x5d   : > { %5311 = vmatprep.mubr.msk.f32.mxu1 %vm699_vm0, %v6151_v8  ;;  %5111 = vmatprep.mubr.msk.f32.mxu0 %vm699_vm0, %v343_v9  ;;  %v358_v9 = vld [vmem:[%s5929_s15 + $0x178] sm:$0xff] }
  0x60   : > { %5312 = vmatmul.mubr.msk.f32.gmra.mrb[32].mxu1 %vm699_vm0, %v6161_v11  ;;  %5112 = vmatmul.mubr.msk.f32.gmra.mrb[32].mxu0 %vm699_vm0, %v344_v13  ;;  %v3009_v13 = vmul.f32 %v6263_v10, %v5951_v14  ;;  %v6291_v14 = vld [vmem:[%s5917_s9 + $0x28] sm:$0xff] }
  0x61   : > { %5314 = vmatprep.mubr.msk.f32.mxu1 %vm699_vm0, %v6165_v15  ;;  %5114 = vmatprep.mubr.msk.f32.mxu0 %vm699_vm0, %v345_v17  ;;  %v6275_v17 = vld [vmem:[%s5917_s9 + $0x10] sm:$0xff] }
  0x62   : > { %3137 = vst.msk [vmem:[%s5922_s12 + $0x18] sm:$0xff] %vm699_vm0, %v3009_v13 }
  0x64   : > { %5315 = vmatmul.mubr.msk.f32.gmra.mrb[34].mxu1 %vm699_vm0, %v6175_v19  ;;  %5115 = vmatmul.mubr.msk.f32.gmra.mrb[34].mxu0 %vm699_vm0, %v346_v21  ;;  %v6278_v21 = vld [vmem:[%s5912_s26 + $0x180] sm:$0xff] }
  0x65   : > { %5317 = vmatprep.mubr.msk.f32.mxu1 %vm699_vm0, %v6179_v23  ;;  %5117 = vmatprep.mubr.msk.f32.mxu0 %vm699_vm0, %v347_v25  ;;  %v359_v25 = vld [vmem:[%s5929_s15 + $0x180] sm:$0xff] }
  0x68   : > { %5318 = vmatmul.mubr.msk.f32.gmra.mrb[36].mxu1 %vm699_vm0, %v6189_v27  ;;  %5118 = vmatmul.mubr.msk.f32.gmra.mrb[36].mxu0 %vm699_vm0, %v348_v29  ;;  %v3008_v29 = vmul.f32 %v6275_v17, %v5939_v12  ;;  %v6297_v12 = vld [vmem:[%s5912_s26 + $0x188] sm:$0xff] }
  0x69   : > { %5320 = vmatprep.mubr.msk.f32.mxu1 %vm699_vm0, %v6193_v31  ;;  %5120 = vmatprep.mubr.msk.f32.mxu0 %vm699_vm0, %v349_v33  ;;  %v360_v33 = vld [vmem:[%s5929_s15 + $0x188] sm:$0xff] }
  0x6a   : > { %3136 = vst.msk [vmem:[%s5922_s12 + $0x10] sm:$0xff] %vm699_vm0, %v3008_v29 }
  0x6c   : > { %5321 = vmatmul.mubr.msk.f32.gmra.mrb[38].mxu1 %vm699_vm0, %v6203_v35  ;;  %5121 = vmatmul.mubr.msk.f32.gmra.mrb[38].mxu0 %vm699_vm0, %v350_v37  ;;  %v3011_v37 = vmul.f32 %v6291_v14, %v5965_v18  ;;  %v6319_v18 = vld [vmem:[%s5917_s9 + $0x38] sm:$0xff] }
  0x6d   : > { %5323 = vmatprep.mubr.msk.f32.mxu1 %vm699_vm0, %v6207_v39  ;;  %5123 = vmatprep.mubr.msk.f32.mxu0 %vm699_vm0, %v351_v41  ;;  %v6303_v41 = vld [vmem:[%s5917_s9 + $0x20] sm:$0xff]  ;;  %v3013_v61 = vmul.f32 %v6319_v18, %v5979_v22  ;;  %v6347_v22 = vld [vmem:[%s5917_s9 + $0x48] sm:$0xff] }
  0x6e   : > { %3139 = vst.msk [vmem:[%s5922_s12 + $0x28] sm:$0xff] %vm699_vm0, %v3011_v37  ;;  %v3015_v29 = vmul.f32 %v6347_v22, %v5993_v26  ;;  %v6362_v37 = vld [vmem:[%s5912_s26 + $0x1b0] sm:$0xff]  ;;  %v6375_v26 = vld [vmem:[%s5917_s9 + $0x58] sm:$0xff] }
  0x6f   : > { %3141 = vst.msk [vmem:[%s5922_s12 + $0x38] sm:$0xff] %vm699_vm0, %v3013_v61  ;;  %v3017_v61 = vmul.f32 %v6375_v26, %v6007_v30  ;;  %v6403_v30 = vld [vmem:[%s5917_s9 + $0x68] sm:$0xff] }
  0x70   : > { %5324 = vmatmul.mubr.msk.f32.gmra.mrb[40].mxu1 %vm699_vm0, %v6217_v43  ;;  %5124 = vmatmul.mubr.msk.f32.gmra.mrb[40].mxu0 %vm699_vm0, %v352_v45  ;;  %v6306_v45 = vld [vmem:[%s5912_s26 + $0x190] sm:$0xff]  ;;  %3143 = vst.msk [vmem:[%s5922_s12 + $0x48] sm:$0xff] %vm699_vm0, %v3015_v29  ;;  %8353 = vst [vmem:[#allocation6_spill] sm:$0xff] %v6403_v30 }
  0x71   : > { %5326 = vmatprep.mubr.msk.f32.mxu1 %vm699_vm0, %v6221_v47  ;;  %5126 = vmatprep.mubr.msk.f32.mxu0 %vm699_vm0, %v353_v49  ;;  %v361_v49 = vld [vmem:[%s5929_s15 + $0x190] sm:$0xff]  ;;  %3145 = vst.msk [vmem:[%s5922_s12 + $0x58] sm:$0xff] %vm699_vm0, %v3017_v61 }
  0x72   : > { %v6418_v61 = vld [vmem:[%s5912_s26 + $0x1d0] sm:$0xff] }
  0x74   : > { %5327 = vmatmul.mubr.msk.f32.gmra.mrb[42].mxu1 %vm699_vm0, %v6231_v51  ;;  %5127 = vmatmul.mubr.msk.f32.gmra.mrb[42].mxu0 %vm699_vm0, %v354_v53  ;;  %v3010_v53 = vmul.f32 %v6303_v41, %v5955_v16  ;;  %v362_v16 = vld [vmem:[%s5929_s15 + $0x198] sm:$0xff] }
  0x75   : > { %5329 = vmatprep.mubr.msk.f32.mxu1 %vm699_vm0, %v6235_v55  ;;  %5129 = vmatprep.mubr.msk.f32.mxu0 %vm699_vm0, %v355_v57  ;;  %v6324_v57 = vld [vmem:[%s5912_s26 + $0x198] sm:$0xff] }
  0x76   : > { %3138 = vst.msk [vmem:[%s5922_s12 + $0x20] sm:$0xff] %vm699_vm0, %v3010_v53 }
  0x78   : > { %5330 = vmatmul.mubr.msk.f32.gmra.mrb[44].mxu1 %vm699_vm0, %v6250_v63  ;;  %5130 = vmatmul.mubr.msk.f32.gmra.mrb[44].mxu0 %vm699_vm0, %v356_v1  ;;  %v6331_v1 = vld [vmem:[%s5917_s9 + $0x30] sm:$0xff] }
  0x79   : > { %5332 = vmatprep.mubr.msk.f32.mxu1 %vm699_vm0, %v6254_v3  ;;  %5132 = vmatprep.mubr.msk.f32.mxu0 %vm699_vm0, %v357_v5  ;;  %v6334_v5 = vld [vmem:[%s5912_s26 + $0x1a0] sm:$0xff]  ;;  %v3012_v13 = vmul.f32 %v6331_v1, %v5969_v20  ;;  %v364_v20 = vld [vmem:[%s5929_s15 + $0x1a8] sm:$0xff] }
  0x7b   : > { %3140 = vst.msk [vmem:[%s5922_s12 + $0x30] sm:$0xff] %vm699_vm0, %v3012_v13  ;;  %v6390_v13 = vld [vmem:[%s5912_s26 + $0x1c0] sm:$0xff] }
  0x7c   : > { %5333 = vmatmul.mubr.msk.f32.gmra.mrb[46].mxu1 %vm699_vm0, %v6269_v7  ;;  %5133 = vmatmul.mubr.msk.f32.gmra.mrb[46].mxu0 %vm699_vm0, %v358_v9  ;;  %v363_v9 = vld [vmem:[%s5929_s15 + $0x1a0] sm:$0xff] }
  0x7d   : > { %5335 = vmatprep.mubr.msk.f32.mxu1 %vm699_vm0, %v6278_v21  ;;  %5135 = vmatprep.mubr.msk.f32.mxu0 %vm699_vm0, %v359_v25  ;;  %v6352_v25 = vld [vmem:[%s5912_s26 + $0x1a8] sm:$0xff] }
  0x80   : > { %5336 = vmatmul.mubr.msk.f32.gmra.mrb[48].mxu1 %vm699_vm0, %v6297_v12  ;;  %5136 = vmatmul.mubr.msk.f32.gmra.mrb[48].mxu0 %vm699_vm0, %v360_v33  ;;  %v6359_v33 = vld [vmem:[%s5917_s9 + $0x40] sm:$0xff] }
  0x81   : > { %5338 = vmatprep.mubr.msk.f32.mxu1 %vm699_vm0, %v6306_v45  ;;  %5138 = vmatprep.mubr.msk.f32.mxu0 %vm699_vm0, %v361_v49  ;;  %v365_v49 = vld [vmem:[%s5929_s15 + $0x1b0] sm:$0xff]  ;;  %v3014_v53 = vmul.f32 %v6359_v33, %v5983_v24  ;;  %v366_v24 = vld [vmem:[%s5929_s15 + $0x1b8] sm:$0xff] }
  0x83   : > { %3142 = vst.msk [vmem:[%s5922_s12 + $0x40] sm:$0xff] %vm699_vm0, %v3014_v53  ;;  %v3019_v53 = vmul.f32 %v6403_v30, %v6021_v34  ;;  %v6431_v34 = vld [vmem:[%s5917_s9 + $0x78] sm:$0xff] }
  0x84   : > { %5339 = vmatmul.mubr.msk.f32.gmra.mrb[50].mxu1 %vm699_vm0, %v6324_v57  ;;  %5139 = vmatmul.mubr.msk.f32.gmra.mrb[50].mxu0 %vm699_vm0, %v362_v16  ;;  %v6380_v16 = vld [vmem:[%s5912_s26 + $0x1b8] sm:$0xff]  ;;  %8355 = vst [vmem:[#allocation8_spill] sm:$0xff] %v6431_v34 }
  0x85   : > { %5341 = vmatprep.mubr.msk.f32.mxu1 %vm699_vm0, %v6334_v5  ;;  %5141 = vmatprep.mubr.msk.f32.mxu0 %vm699_vm0, %v363_v9  ;;  %v6387_v9 = vld [vmem:[%s5917_s9 + $0x50] sm:$0xff]  ;;  %3147 = vst.msk [vmem:[%s5922_s12 + $0x68] sm:$0xff] %vm699_vm0, %v3019_v53  ;;  %v3021_v53 = vmul.f32 %v6431_v34, %v6035_v38  ;;  %v6459_v38 = vld [vmem:[%s5917_s9 + $0x88] sm:$0xff] }
  0x86   : > { %8352 = vst [vmem:[#allocation5_spill] sm:$0xff] %v6387_v9  ;;  %v3016_v29 = vmul.f32 %v6387_v9, %v5997_v28  ;;  %v368_v28 = vld [vmem:[%s5929_s15 + $0x1c8] sm:$0xff]  ;;  %8357 = vst [vmem:[#allocation10_spill] sm:$0xff] %v6459_v38 }
  0x87   : > { %3149 = vst.msk [vmem:[%s5922_s12 + $0x78] sm:$0xff] %vm699_vm0, %v3021_v53  ;;  %v3023_v53 = vmul.f32 %v6459_v38, %v6049_v42  ;;  %v6487_v42 = vld [vmem:[%s5917_s9 + $0x98] sm:$0xff] }
  0x88   : > { %5342 = vmatmul.mubr.msk.f32.gmra.mrb[52].mxu1 %vm699_vm0, %v6352_v25  ;;  %5142 = vmatmul.mubr.msk.f32.gmra.mrb[52].mxu0 %vm699_vm0, %v364_v20  ;;  %v367_v20 = vld [vmem:[%s5929_s15 + $0x1c0] sm:$0xff]  ;;  %3144 = vst.msk [vmem:[%s5922_s12 + $0x50] sm:$0xff] %vm699_vm0, %v3016_v29  ;;  %v369_v29 = vld [vmem:[%s5929_s15 + $0x1d0] sm:$0xff]  ;;  %8359 = vst [vmem:[#allocation12_spill] sm:$0xff] %v6487_v42 }
  0x89   : > { %5344 = vmatprep.mubr.msk.f32.mxu1 %vm699_vm0, %v6362_v37  ;;  %5144 = vmatprep.mubr.msk.f32.mxu0 %vm699_vm0, %v365_v49  ;;  %v6408_v49 = vld [vmem:[%s5912_s26 + $0x1c8] sm:$0xff]  ;;  %3151 = vst.msk [vmem:[%s5922_s12 + $0x88] sm:$0xff] %vm699_vm0, %v3023_v53  ;;  %v3025_v53 = vmul.f32 %v6487_v42, %v6063_v46 }
  0x8a   : > { %v588_v46 = vld [vmem:[%s5917_s9 + $0xa8] sm:$0xff] }
  0x8b   : > { %3153 = vst.msk [vmem:[%s5922_s12 + $0x98] sm:$0xff] %vm699_vm0, %v3025_v53  ;;  %v3027_v53 = vmul.f32 %v588_v46, %v6077_v50  ;;  %v590_v50 = vld [vmem:[%s5917_s9 + $0xb8] sm:$0xff]  ;;  %v589_v46 = vld [vmem:[%s5917_s9 + $0xb0] sm:$0xff] }
  0x8c   : > { %5345 = vmatmul.mubr.msk.f32.gmra.mrb[54].mxu1 %vm699_vm0, %v6380_v16  ;;  %5145 = vmatmul.mubr.msk.f32.gmra.mrb[54].mxu0 %vm699_vm0, %v366_v24  ;;  %v6415_v24 = vld [vmem:[%s5917_s9 + $0x60] sm:$0xff] }
  0x8d   : > { %5347 = vmatprep.mubr.msk.f32.mxu1 %vm699_vm0, %v6390_v13  ;;  %5147 = vmatprep.mubr.msk.f32.mxu0 %vm699_vm0, %v367_v20  ;;  %8354 = vst [vmem:[#allocation7_spill] sm:$0xff] %v6415_v24  ;;  %v3018_v9 = vmul.f32 %v6415_v24, %v6011_v32  ;;  %v6436_v20 = vld [vmem:[%s5912_s26 + $0x1d8] sm:$0xff]  ;;  %v371_v24 = vld [vmem:[%s5929_s15 + $0x1e0] sm:$0xff]  ;;  %3155 = vst.msk [vmem:[%s5922_s12 + $0xa8] sm:$0xff] %vm699_vm0, %v3027_v53  ;;  %v3028_v53 = vmul.f32 %v589_v46, %v6081_v52 }
  0x8e   : > { %v370_v32 = vld [vmem:[%s5929_s15 + $0x1d8] sm:$0xff]  ;;  %v380_v52 = vld [vmem:[%s5929_s15 + $0x228] sm:$0xff]  ;;  %v381_v46 = vld [vmem:[%s5929_s15 + $0x230] sm:$0xff] }
  0x8f   : > { %3146 = vst.msk [vmem:[%s5922_s12 + $0x60] sm:$0xff] %vm699_vm0, %v3018_v9  ;;  %v6446_v9 = vld [vmem:[%s5912_s26 + $0x1e0] sm:$0xff]  ;;  %3156 = vst.msk [vmem:[%s5922_s12 + $0xb0] sm:$0xff] %vm699_vm0, %v3028_v53 }
  0x90   : > { %5348 = vmatmul.mubr.msk.f32.gmra.mrb[56].mxu1 %vm699_vm0, %v6408_v49  ;;  %5148 = vmatmul.mubr.msk.f32.gmra.mrb[56].mxu0 %vm699_vm0, %v368_v28  ;;  %v6443_v28 = vld [vmem:[%s5917_s9 + $0x70] sm:$0xff] }
  0x91   : > { %5350 = vmatprep.mubr.msk.f32.mxu1 %vm699_vm0, %v6418_v61  ;;  %5150 = vmatprep.mubr.msk.f32.mxu0 %vm699_vm0, %v369_v29  ;;  %8356 = vst [vmem:[#allocation9_spill] sm:$0xff] %v6443_v28  ;;  %v3020_v30 = vmul.f32 %v6443_v28, %v6025_v36  ;;  %v6464_v29 = vld [vmem:[%s5912_s26 + $0x1e8] sm:$0xff]  ;;  %v373_v28 = vld [vmem:[%s5929_s15 + $0x1f0] sm:$0xff] }
  0x92   : > { %v372_v36 = vld [vmem:[%s5929_s15 + $0x1e8] sm:$0xff] }
  0x93   : > { %3148 = vst.msk [vmem:[%s5922_s12 + $0x70] sm:$0xff] %vm699_vm0, %v3020_v30  ;;  %v6474_v30 = vld [vmem:[%s5912_s26 + $0x1f0] sm:$0xff] }
  0x94   : > { %5351 = vmatmul.mubr.msk.f32.gmra.mrb[58].mxu1 %vm699_vm0, %v6436_v20  ;;  %5151 = vmatmul.mubr.msk.f32.gmra.mrb[58].mxu0 %vm699_vm0, %v370_v32  ;;  %v6471_v32 = vld [vmem:[%s5917_s9 + $0x80] sm:$0xff] }
  0x95   : > { %5353 = vmatprep.mubr.msk.f32.mxu1 %vm699_vm0, %v6446_v9  ;;  %5153 = vmatprep.mubr.msk.f32.mxu0 %vm699_vm0, %v371_v24  ;;  %8358 = vst [vmem:[#allocation11_spill] sm:$0xff] %v6471_v32  ;;  %v3022_v34 = vmul.f32 %v6471_v32, %v6039_v40  ;;  %v6492_v24 = vld [vmem:[%s5912_s26 + $0x1f8] sm:$0xff]  ;;  %v375_v32 = vld [vmem:[%s5929_s15 + $0x200] sm:$0xff] }
  0x96   : > { %v374_v40 = vld [vmem:[%s5929_s15 + $0x1f8] sm:$0xff] }
  0x97   : > { %3150 = vst.msk [vmem:[%s5922_s12 + $0x80] sm:$0xff] %vm699_vm0, %v3022_v34  ;;  %v6502_v34 = vld [vmem:[%s5912_s26 + $0x200] sm:$0xff] }
  0x98   : > { %5354 = vmatmul.mubr.msk.f32.gmra.mrb[60].mxu1 %vm699_vm0, %v6464_v29  ;;  %5154 = vmatmul.mubr.msk.f32.gmra.mrb[60].mxu0 %vm699_vm0, %v372_v36  ;;  %v6499_v36 = vld [vmem:[%s5917_s9 + $0x90] sm:$0xff] }
  0x99   : > { %5356 = vmatprep.mubr.msk.f32.mxu1 %vm699_vm0, %v6474_v30  ;;  %5156 = vmatprep.mubr.msk.f32.mxu0 %vm699_vm0, %v373_v28  ;;  %8360 = vst [vmem:[#allocation13_spill] sm:$0xff] %v6499_v36  ;;  %v3024_v38 = vmul.f32 %v6499_v36, %v6053_v44  ;;  %v6518_v28 = vld [vmem:[%s5912_s26 + $0x208] sm:$0xff]  ;;  %v587_v36 = vld [vmem:[%s5917_s9 + $0xa0] sm:$0xff] }
  0x9a   : > { %v376_v44 = vld [vmem:[%s5929_s15 + $0x208] sm:$0xff]  ;;  %v3026_v42 = vmul.f32 %v587_v36, %v6067_v48  ;;  %v378_v48 = vld [vmem:[%s5929_s15 + $0x218] sm:$0xff]  ;;  %v3029_v36 = vmul.f32 %v590_v50, %v6091_v54 }
  0x9b   : > { %3152 = vst.msk [vmem:[%s5922_s12 + $0x90] sm:$0xff] %vm699_vm0, %v3024_v38  ;;  %v377_v38 = vld [vmem:[%s5929_s15 + $0x210] sm:$0xff]  ;;  %v592_v54 = vld [vmem:[%s5917_s9 + $0xc8] sm:$0xff] }
  0x9c   : > { %5357 = vmatmul.mubr.msk.f32.gmra.mrb[62].mxu1 %vm699_vm0, %v6492_v24  ;;  %5157 = vmatmul.mubr.msk.f32.gmra.mrb[62].mxu0 %vm699_vm0, %v374_v40  ;;  %v6525_v40 = vld [vmem:[%s5912_s26 + $0x210] sm:$0xff]  ;;  %3154 = vst.msk [vmem:[%s5922_s12 + $0xa0] sm:$0xff] %vm699_vm0, %v3026_v42  ;;  %v379_v42 = vld [vmem:[%s5929_s15 + $0x220] sm:$0xff]  ;;  %3157 = vst.msk [vmem:[%s5922_s12 + $0xb8] sm:$0xff] %vm699_vm0, %v3029_v36  ;;  %v3031_v50 = vmul.f32 %v592_v54, %v6105_v58 }
  0x9d   : > { %5359 = vmatprep.mubr.msk.f32.mxu1 %vm699_vm0, %v6502_v34  ;;  %5159 = vmatprep.mubr.msk.f32.mxu0 %vm699_vm0, %v375_v32  ;;  %v6540_v32 = vld [vmem:[%s5912_s26 + $0x218] sm:$0xff]  ;;  %v591_v36 = vld [vmem:[%s5917_s9 + $0xc0] sm:$0xff] }
  0x9e   : > { %v3030_v53 = vmul.f32 %v591_v36, %v6095_v56  ;;  %3159 = vst.msk [vmem:[%s5922_s12 + $0xc8] sm:$0xff] %vm699_vm0, %v3031_v50  ;;  %v594_v58 = vld [vmem:[%s5917_s9 + $0xd8] sm:$0xff]  ;;  %v593_v50 = vld [vmem:[%s5917_s9 + $0xd0] sm:$0xff]  ;;  %v383_v36 = vld [vmem:[%s5929_s15 + $0x240] sm:$0xff] }
  0x9f   : > { %v382_v56 = vld [vmem:[%s5929_s15 + $0x238] sm:$0xff]  ;;  %v3033_v54 = vmul.f32 %v594_v58, %v6119_v62  ;;  %v596_v62 = vld [vmem:[%s5917_s9 + $0xe8] sm:$0xff] }
  0xa0   : > { %5360 = vmatmul.mubr.msk.f32.gmra.mrb[64].mxu1 %vm699_vm0, %v6518_v28  ;;  %5160 = vmatmul.mubr.msk.f32.gmra.mrb[64].mxu0 %vm699_vm0, %v376_v44  ;;  %v6547_v44 = vld [vmem:[%s5912_s26 + $0x220] sm:$0xff]  ;;  %3158 = vst.msk [vmem:[%s5922_s12 + $0xc0] sm:$0xff] %vm699_vm0, %v3030_v53  ;;  %v3032_v53 = vmul.f32 %v593_v50, %v6109_v60  ;;  %v384_v60 = vld [vmem:[%s5929_s15 + $0x248] sm:$0xff]  ;;  %v3035_v58 = vmul.f32 %v596_v62, %v6133_v2  ;;  %v385_v50 = vld [vmem:[%s5929_s15 + $0x250] sm:$0xff] }
  0xa1   : > { %5362 = vmatprep.mubr.msk.f32.mxu1 %vm699_vm0, %v6525_v40  ;;  %5162 = vmatprep.mubr.msk.f32.mxu0 %vm699_vm0, %v377_v38  ;;  %v6562_v38 = vld [vmem:[%s5912_s26 + $0x228] sm:$0xff]  ;;  %3161 = vst.msk [vmem:[%s5922_s12 + $0xd8] sm:$0xff] %vm699_vm0, %v3033_v54  ;;  %v595_v54 = vld [vmem:[%s5917_s9 + $0xe0] sm:$0xff]  ;;  %v598_v2 = vld [vmem:[%s5917_s9 + $0xf8] sm:$0xff] }
  0xa2   : > { %3160 = vst.msk [vmem:[%s5922_s12 + $0xd0] sm:$0xff] %vm699_vm0, %v3032_v53  ;;  %v3034_v53 = vmul.f32 %v595_v54, %v6123_v0  ;;  %3163 = vst.msk [vmem:[%s5922_s12 + $0xe8] sm:$0xff] %vm699_vm0, %v3035_v58  ;;  %v386_v0 = vld [vmem:[%s5929_s15 + $0x258] sm:$0xff]  ;;  %v3037_v62 = vmul.f32 %v598_v2, %v6147_v6  ;;  %v597_v58 = vld [vmem:[%s5917_s9 + $0xf0] sm:$0xff] }
  0xa3   : > { %v387_v54 = vld [vmem:[%s5929_s15 + $0x260] sm:$0xff]  ;;  %v600_v6 = vld [vmem:[%s5917_s9 + $0x108] sm:$0xff] }
  0xa4   : > { %5363 = vmatmul.mubr.msk.f32.gmra.mrb[66].mxu1 %vm699_vm0, %v6540_v32  ;;  %5163 = vmatmul.mubr.msk.f32.gmra.mrb[66].mxu0 %vm699_vm0, %v378_v48  ;;  %v6569_v48 = vld [vmem:[%s5912_s26 + $0x230] sm:$0xff]  ;;  %3162 = vst.msk [vmem:[%s5922_s12 + $0xe0] sm:$0xff] %vm699_vm0, %v3034_v53  ;;  %v3036_v53 = vmul.f32 %v597_v58, %v6137_v4  ;;  %3165 = vst.msk [vmem:[%s5922_s12 + $0xf8] sm:$0xff] %vm699_vm0, %v3037_v62  ;;  %v388_v4 = vld [vmem:[%s5929_s15 + $0x268] sm:$0xff]  ;;  %v3039_v2 = vmul.f32 %v600_v6, %v6161_v11 }
  0xa5   : > { %5365 = vmatprep.mubr.msk.f32.mxu1 %vm699_vm0, %v6547_v44  ;;  %5165 = vmatprep.mubr.msk.f32.mxu0 %vm699_vm0, %v379_v42  ;;  %v6584_v42 = vld [vmem:[%s5912_s26 + $0x238] sm:$0xff]  ;;  %v599_v62 = vld [vmem:[%s5917_s9 + $0x100] sm:$0xff]  ;;  %v389_v58 = vld [vmem:[%s5929_s15 + $0x270] sm:$0xff] }
  0xa6   : > { %3164 = vst.msk [vmem:[%s5922_s12 + $0xf0] sm:$0xff] %vm699_vm0, %v3036_v53  ;;  %v3038_v53 = vmul.f32 %v599_v62, %v6151_v8  ;;  %3167 = vst.msk [vmem:[%s5922_s12 + $0x108] sm:$0xff] %vm699_vm0, %v3039_v2  ;;  %v602_v11 = vld [vmem:[%s5917_s9 + $0x118] sm:$0xff]  ;;  %v601_v2 = vld [vmem:[%s5917_s9 + $0x110] sm:$0xff] }
  0xa7   : > { %v390_v8 = vld [vmem:[%s5929_s15 + $0x278] sm:$0xff]  ;;  %v3041_v6 = vmul.f32 %v602_v11, %v6175_v19  ;;  %v391_v62 = vld [vmem:[%s5929_s15 + $0x280] sm:$0xff]  ;;  %v604_v19 = vld [vmem:[%s5917_s9 + $0x128] sm:$0xff] }
  0xa8   : > { %5366 = vmatmul.mubr.msk.f32.gmra.mrb[68].mxu1 %vm699_vm0, %v6562_v38  ;;  %5166 = vmatmul.mubr.msk.f32.gmra.mrb[68].mxu0 %vm699_vm0, %v380_v52  ;;  %v6591_v52 = vld [vmem:[%s5912_s26 + $0x240] sm:$0xff]  ;;  %3166 = vst.msk [vmem:[%s5922_s12 + $0x100] sm:$0xff] %vm699_vm0, %v3038_v53  ;;  %v3040_v53 = vmul.f32 %v601_v2, %v6165_v15  ;;  %v392_v15 = vld [vmem:[%s5929_s15 + $0x288] sm:$0xff]  ;;  %v3043_v11 = vmul.f32 %v604_v19, %v6189_v27  ;;  %v393_v2 = vld [vmem:[%s5929_s15 + $0x290] sm:$0xff] }
  0xa9   : > { %5368 = vmatprep.mubr.msk.f32.mxu1 %vm699_vm0, %v6569_v48  ;;  %5168 = vmatprep.mubr.msk.f32.mxu0 %vm699_vm0, %v381_v46  ;;  %v6606_v46 = vld [vmem:[%s5912_s26 + $0x248] sm:$0xff]  ;;  %3169 = vst.msk [vmem:[%s5922_s12 + $0x118] sm:$0xff] %vm699_vm0, %v3041_v6  ;;  %v603_v6 = vld [vmem:[%s5917_s9 + $0x120] sm:$0xff]  ;;  %v606_v27 = vld [vmem:[%s5917_s9 + $0x138] sm:$0xff] }
  0xaa   : > { %3168 = vst.msk [vmem:[%s5922_s12 + $0x110] sm:$0xff] %vm699_vm0, %v3040_v53  ;;  %v3042_v53 = vmul.f32 %v603_v6, %v6179_v23  ;;  %3171 = vst.msk [vmem:[%s5922_s12 + $0x128] sm:$0xff] %vm699_vm0, %v3043_v11  ;;  %v394_v23 = vld [vmem:[%s5929_s15 + $0x298] sm:$0xff]  ;;  %v3045_v19 = vmul.f32 %v606_v27, %v6203_v35  ;;  %v605_v11 = vld [vmem:[%s5917_s9 + $0x130] sm:$0xff] }
  0xab   : > { %v395_v6 = vld [vmem:[%s5929_s15 + $0x2a0] sm:$0xff]  ;;  %v608_v35 = vld [vmem:[%s5917_s9 + $0x148] sm:$0xff] }
  0xac   : > { %5369 = vmatmul.mubr.msk.f32.gmra.mrb[70].mxu1 %vm699_vm0, %v6584_v42  ;;  %5169 = vmatmul.mubr.msk.f32.gmra.mrb[70].mxu0 %vm699_vm0, %v382_v56  ;;  %v6613_v56 = vld [vmem:[%s5912_s26 + $0x250] sm:$0xff]  ;;  %3170 = vst.msk [vmem:[%s5922_s12 + $0x120] sm:$0xff] %vm699_vm0, %v3042_v53  ;;  %v3044_v53 = vmul.f32 %v605_v11, %v6193_v31  ;;  %3173 = vst.msk [vmem:[%s5922_s12 + $0x138] sm:$0xff] %vm699_vm0, %v3045_v19  ;;  %v396_v31 = vld [vmem:[%s5929_s15 + $0x2a8] sm:$0xff]  ;;  %v3047_v27 = vmul.f32 %v608_v35, %v6217_v43 }
  0xad   : > { %5371 = vmatprep.mubr.msk.f32.mxu1 %vm699_vm0, %v6591_v52  ;;  %5171 = vmatprep.mubr.msk.f32.mxu0 %vm699_vm0, %v383_v36  ;;  %v6628_v36 = vld [vmem:[%s5912_s26 + $0x258] sm:$0xff]  ;;  %v607_v19 = vld [vmem:[%s5917_s9 + $0x140] sm:$0xff]  ;;  %v397_v11 = vld [vmem:[%s5929_s15 + $0x2b0] sm:$0xff] }
  0xae   : > { %3172 = vst.msk [vmem:[%s5922_s12 + $0x130] sm:$0xff] %vm699_vm0, %v3044_v53  ;;  %v3046_v53 = vmul.f32 %v607_v19, %v6207_v39  ;;  %3175 = vst.msk [vmem:[%s5922_s12 + $0x148] sm:$0xff] %vm699_vm0, %v3047_v27  ;;  %v610_v43 = vld [vmem:[%s5917_s9 + $0x158] sm:$0xff]  ;;  %v609_v27 = vld [vmem:[%s5917_s9 + $0x150] sm:$0xff] }
  0xaf   : > { %v398_v39 = vld [vmem:[%s5929_s15 + $0x2b8] sm:$0xff]  ;;  %v3049_v35 = vmul.f32 %v610_v43, %v6231_v51  ;;  %v399_v19 = vld [vmem:[%s5929_s15 + $0x2c0] sm:$0xff]  ;;  %v612_v51 = vld [vmem:[%s5917_s9 + $0x168] sm:$0xff] }
  0xb0   : > { %5372 = vmatmul.mubr.msk.f32.gmra.mrb[72].mxu1 %vm699_vm0, %v6606_v46  ;;  %5172 = vmatmul.mubr.msk.f32.gmra.mrb[72].mxu0 %vm699_vm0, %v384_v60  ;;  %v6635_v60 = vld [vmem:[%s5912_s26 + $0x260] sm:$0xff]  ;;  %3174 = vst.msk [vmem:[%s5922_s12 + $0x140] sm:$0xff] %vm699_vm0, %v3046_v53  ;;  %v3048_v53 = vmul.f32 %v609_v27, %v6221_v47  ;;  %v400_v47 = vld [vmem:[%s5929_s15 + $0x2c8] sm:$0xff]  ;;  %v3051_v43 = vmul.f32 %v612_v51, %v6250_v63  ;;  %v401_v27 = vld [vmem:[%s5929_s15 + $0x2d0] sm:$0xff] }
  0xb1   : > { %5374 = vmatprep.mubr.msk.f32.mxu1 %vm699_vm0, %v6613_v56  ;;  %5174 = vmatprep.mubr.msk.f32.mxu0 %vm699_vm0, %v385_v50  ;;  %v6650_v50 = vld [vmem:[%s5912_s26 + $0x268] sm:$0xff]  ;;  %3177 = vst.msk [vmem:[%s5922_s12 + $0x158] sm:$0xff] %vm699_vm0, %v3049_v35  ;;  %v611_v35 = vld [vmem:[%s5917_s9 + $0x160] sm:$0xff]  ;;  %v614_v63 = vld [vmem:[%s5917_s9 + $0x178] sm:$0xff] }
  0xb2   : > { %3176 = vst.msk [vmem:[%s5922_s12 + $0x150] sm:$0xff] %vm699_vm0, %v3048_v53  ;;  %v3050_v53 = vmul.f32 %v611_v35, %v6235_v55  ;;  %3179 = vst.msk [vmem:[%s5922_s12 + $0x168] sm:$0xff] %vm699_vm0, %v3051_v43  ;;  %v402_v55 = vld [vmem:[%s5929_s15 + $0x2d8] sm:$0xff]  ;;  %v3053_v51 = vmul.f32 %v614_v63, %v6269_v7  ;;  %v613_v43 = vld [vmem:[%s5917_s9 + $0x170] sm:$0xff] }
  0xb3   : > { %v403_v35 = vld [vmem:[%s5929_s15 + $0x2e0] sm:$0xff]  ;;  %v616_v7 = vld [vmem:[%s5917_s9 + $0x188] sm:$0xff] }
  0xb4   : > { %5375 = vmatmul.mubr.msk.f32.gmra.mrb[74].mxu1 %vm699_vm0, %v6628_v36  ;;  %5175 = vmatmul.mubr.msk.f32.gmra.mrb[74].mxu0 %vm699_vm0, %v386_v0  ;;  %v6657_v0 = vld [vmem:[%s5912_s26 + $0x270] sm:$0xff]  ;;  %3178 = vst.msk [vmem:[%s5922_s12 + $0x160] sm:$0xff] %vm699_vm0, %v3050_v53  ;;  %v3052_v53 = vmul.f32 %v613_v43, %v6254_v3  ;;  %3181 = vst.msk [vmem:[%s5922_s12 + $0x178] sm:$0xff] %vm699_vm0, %v3053_v51  ;;  %v404_v3 = vld [vmem:[%s5929_s15 + $0x2e8] sm:$0xff]  ;;  %v3055_v63 = vmul.f32 %v616_v7, %v6297_v12 }
  0xb5   : > { %5377 = vmatprep.mubr.msk.f32.mxu1 %vm699_vm0, %v6635_v60  ;;  %5177 = vmatprep.mubr.msk.f32.mxu0 %vm699_vm0, %v387_v54  ;;  %v6672_v54 = vld [vmem:[%s5912_s26 + $0x278] sm:$0xff]  ;;  %v615_v51 = vld [vmem:[%s5917_s9 + $0x180] sm:$0xff]  ;;  %v405_v43 = vld [vmem:[%s5929_s15 + $0x2f0] sm:$0xff] }
  0xb6   : > { %3180 = vst.msk [vmem:[%s5922_s12 + $0x170] sm:$0xff] %vm699_vm0, %v3052_v53  ;;  %v3054_v53 = vmul.f32 %v615_v51, %v6278_v21  ;;  %3183 = vst.msk [vmem:[%s5922_s12 + $0x188] sm:$0xff] %vm699_vm0, %v3055_v63  ;;  %v618_v12 = vld [vmem:[%s5917_s9 + $0x198] sm:$0xff]  ;;  %v6854_v63 = vld [vmem:[%s5912_s26 + $0x300] sm:$0xff] }
  0xb7   : > { %v406_v21 = vld [vmem:[%s5929_s15 + $0x2f8] sm:$0xff]  ;;  %v3057_v7 = vmul.f32 %v618_v12, %v6324_v57  ;;  %8361 = vst [vmem:[#allocation14_spill] sm:$0xff] %v6854_v63  ;;  %v617_v51 = vld [vmem:[%s5917_s9 + $0x190] sm:$0xff]  ;;  %v6868_v57 = vld [vmem:[%s5912_s26 + $0x308] sm:$0xff] }
  0xb8   : > { %5378 = vmatmul.mubr.msk.f32.gmra.mrb[76].mxu1 %vm699_vm0, %v6650_v50  ;;  %5178 = vmatmul.mubr.msk.f32.gmra.mrb[76].mxu0 %vm699_vm0, %v388_v4  ;;  %v6679_v4 = vld [vmem:[%s5912_s26 + $0x280] sm:$0xff]  ;;  %3182 = vst.msk [vmem:[%s5922_s12 + $0x180] sm:$0xff] %vm699_vm0, %v3054_v53  ;;  %v3056_v53 = vmul.f32 %v617_v51, %v6306_v45  ;;  %8362 = vst [vmem:[#allocation15_spill] sm:$0xff] %v6868_v57  ;;  %v408_v12 = vld [vmem:[%s5929_s15 + $0x308] sm:$0xff] }
  0xb9   : > { %5380 = vmatprep.mubr.msk.f32.mxu1 %vm699_vm0, %v6657_v0  ;;  %5180 = vmatprep.mubr.msk.f32.mxu0 %vm699_vm0, %v389_v58  ;;  %v6694_v58 = vld [vmem:[%s5912_s26 + $0x288] sm:$0xff]  ;;  %3185 = vst.msk [vmem:[%s5922_s12 + $0x198] sm:$0xff] %vm699_vm0, %v3057_v7  ;;  %v409_v7 = vld [vmem:[%s5929_s15 + $0x310] sm:$0xff]  ;;  %v619_v51 = vld [vmem:[%s5917_s9 + $0x1a0] sm:$0xff] }
  0xba   : > { %3184 = vst.msk [vmem:[%s5922_s12 + $0x190] sm:$0xff] %vm699_vm0, %v3056_v53  ;;  %v411_v53 = vld [vmem:[%s5929_s15 + $0x320] sm:$0xff] }
  0xbc   : > { %5381 = vmatmul.mubr.msk.f32.gmra.mrb[78].mxu1 %vm699_vm0, %v6672_v54  ;;  %5181 = vmatmul.mubr.msk.f32.gmra.mrb[78].mxu0 %vm699_vm0, %v390_v8  ;;  %v6701_v8 = vld [vmem:[%s5912_s26 + $0x290] sm:$0xff] }
  0xbd   : > { %5383 = vmatprep.mubr.msk.f32.mxu1 %vm699_vm0, %v6679_v4  ;;  %5183 = vmatprep.mubr.msk.f32.mxu0 %vm699_vm0, %v391_v62  ;;  %v6716_v62 = vld [vmem:[%s5912_s26 + $0x298] sm:$0xff] }
  0xc0   : > { %5384 = vmatmul.mubr.msk.f32.gmra.mrb[80].mxu1 %vm699_vm0, %v6694_v58  ;;  %5184 = vmatmul.mubr.msk.f32.gmra.mrb[80].mxu0 %vm699_vm0, %v392_v15  ;;  %v6723_v15 = vld [vmem:[%s5912_s26 + $0x2a0] sm:$0xff] }
  0xc1   : > { %5386 = vmatprep.mubr.msk.f32.mxu1 %vm699_vm0, %v6701_v8  ;;  %5186 = vmatprep.mubr.msk.f32.mxu0 %vm699_vm0, %v393_v2  ;;  %v6738_v2 = vld [vmem:[%s5912_s26 + $0x2a8] sm:$0xff] }
  0xc4   : > { %5387 = vmatmul.mubr.msk.f32.gmra.mrb[82].mxu1 %vm699_vm0, %v6716_v62  ;;  %5187 = vmatmul.mubr.msk.f32.gmra.mrb[82].mxu0 %vm699_vm0, %v394_v23  ;;  %v6745_v23 = vld [vmem:[%s5912_s26 + $0x2b0] sm:$0xff] }
  0xc5   : > { %5389 = vmatprep.mubr.msk.f32.mxu1 %vm699_vm0, %v6723_v15  ;;  %5189 = vmatprep.mubr.msk.f32.mxu0 %vm699_vm0, %v395_v6  ;;  %v6760_v6 = vld [vmem:[%s5912_s26 + $0x2b8] sm:$0xff] }
  0xc8   : > { %5390 = vmatmul.mubr.msk.f32.gmra.mrb[84].mxu1 %vm699_vm0, %v6738_v2  ;;  %5190 = vmatmul.mubr.msk.f32.gmra.mrb[84].mxu0 %vm699_vm0, %v396_v31  ;;  %v6767_v31 = vld [vmem:[%s5912_s26 + $0x2c0] sm:$0xff] }
  0xc9   : > { %5392 = vmatprep.mubr.msk.f32.mxu1 %vm699_vm0, %v6745_v23  ;;  %5192 = vmatprep.mubr.msk.f32.mxu0 %vm699_vm0, %v397_v11  ;;  %v6782_v11 = vld [vmem:[%s5912_s26 + $0x2c8] sm:$0xff] }
  0xcc   : > { %5393 = vmatmul.mubr.msk.f32.gmra.mrb[86].mxu1 %vm699_vm0, %v6760_v6  ;;  %5193 = vmatmul.mubr.msk.f32.gmra.mrb[86].mxu0 %vm699_vm0, %v398_v39  ;;  %v6789_v39 = vld [vmem:[%s5912_s26 + $0x2d0] sm:$0xff] }
  0xcd   : > { %5395 = vmatprep.mubr.msk.f32.mxu1 %vm699_vm0, %v6767_v31  ;;  %5195 = vmatprep.mubr.msk.f32.mxu0 %vm699_vm0, %v399_v19  ;;  %v6804_v19 = vld [vmem:[%s5912_s26 + $0x2d8] sm:$0xff] }
  0xd0   : > { %5396 = vmatmul.mubr.msk.f32.gmra.mrb[88].mxu1 %vm699_vm0, %v6782_v11  ;;  %5196 = vmatmul.mubr.msk.f32.gmra.mrb[88].mxu0 %vm699_vm0, %v400_v47  ;;  %v6811_v47 = vld [vmem:[%s5912_s26 + $0x2e0] sm:$0xff] }
  0xd1   : > { %5398 = vmatprep.mubr.msk.f32.mxu1 %vm699_vm0, %v6789_v39  ;;  %5198 = vmatprep.mubr.msk.f32.mxu0 %vm699_vm0, %v401_v27  ;;  %v6826_v27 = vld [vmem:[%s5912_s26 + $0x2e8] sm:$0xff] }
  0xd4   : > { %5399 = vmatmul.mubr.msk.f32.gmra.mrb[90].mxu1 %vm699_vm0, %v6804_v19  ;;  %5199 = vmatmul.mubr.msk.f32.gmra.mrb[90].mxu0 %vm699_vm0, %v402_v55  ;;  %v6833_v55 = vld [vmem:[%s5912_s26 + $0x2f0] sm:$0xff] }
  0xd5   : > { %5401 = vmatprep.mubr.msk.f32.mxu1 %vm699_vm0, %v6811_v47  ;;  %5201 = vmatprep.mubr.msk.f32.mxu0 %vm699_vm0, %v403_v35  ;;  %v6848_v35 = vld [vmem:[%s5912_s26 + $0x2f8] sm:$0xff] }
  0xd8   : > { %5402 = vmatmul.mubr.msk.f32.gmra.mrb[92].mxu1 %vm699_vm0, %v6826_v27  ;;  %5202 = vmatmul.mubr.msk.f32.gmra.mrb[92].mxu0 %vm699_vm0, %v404_v3  ;;  %v407_v3 = vld [vmem:[%s5929_s15 + $0x300] sm:$0xff] }
  0xd9   : > { %5404 = vmatprep.mubr.msk.f32.mxu1 %vm699_vm0, %v6833_v55  ;;  %5204 = vmatprep.mubr.msk.f32.mxu0 %vm699_vm0, %v405_v43  ;;  %v620_v43 = vld [vmem:[%s5917_s9 + $0x1a8] sm:$0xff] }
  0xda   : > { %v3059_v45 = vmul.f32 %v620_v43, %v6352_v25  ;;  %v6889_v25 = vld [vmem:[%s5912_s26 + $0x318] sm:$0xff] }
  0xdb   : > { %8364 = vst [vmem:[#allocation17_spill] sm:$0xff] %v6889_v25  ;;  %v622_v43 = vld [vmem:[%s5917_s9 + $0x1b8] sm:$0xff] }
  0xdc   : > { %5405 = vmatmul.mubr.msk.f32.gmra.mrb[94].mxu1 %vm699_vm0, %v6848_v35  ;;  %5205 = vmatmul.mubr.msk.f32.gmra.mrb[94].mxu0 %vm699_vm0, %v406_v21  ;;  %v6876_v21 = vld [vmem:[%s5912_s26 + $0x310] sm:$0xff]  ;;  %3187 = vst.msk [vmem:[%s5922_s12 + $0x1a8] sm:$0xff] %vm699_vm0, %v3059_v45 }
  0xdd   : > { %5407 = vmatprep.mubr.msk.f32.mxu1 %vm699_vm0, %v6854_v63  ;;  %5207 = vmatprep.mubr.msk.f32.mxu0 %vm699_vm0, %v407_v3  ;;  %8363 = vst [vmem:[#allocation16_spill] sm:$0xff] %v6876_v21  ;;  %v3058_v63 = vmul.f32 %v619_v51, %v6334_v5  ;;  %v410_v3 = vld [vmem:[%s5929_s15 + $0x318] sm:$0xff]  ;;  %v6896_v5 = vld [vmem:[%s5912_s26 + $0x320] sm:$0xff]  ;;  %v621_v45 = vld [vmem:[%s5917_s9 + $0x1b0] sm:$0xff] }
  0xde   : > { %8365 = vst [vmem:[#allocation18_spill] sm:$0xff] %v6896_v5  ;;  %v3060_v51 = vmul.f32 %v621_v45, %v6362_v37  ;;  %v6927_v37 = vld [vmem:[%s5912_s26 + $0x338] sm:$0xff] }
  0xdf   : > { %3186 = vst.msk [vmem:[%s5922_s12 + $0x1a0] sm:$0xff] %vm699_vm0, %v3058_v63  ;;  %v6908_v63 = vld [vmem:[%s5912_s26 + $0x328] sm:$0xff]  ;;  %8368 = vst [vmem:[#allocation21_spill] sm:$0xff] %v6927_v37 }
  0xe0   : > { %5408 = vmatmul.mubr.msk.f32.gmra.mrb[96].mxu1 %vm699_vm0, %v6868_v57  ;;  %5208 = vmatmul.mubr.msk.f32.gmra.mrb[96].mxu0 %vm699_vm0, %v408_v12  ;;  %v3061_v12 = vmul.f32 %v622_v43, %v6380_v16  ;;  %8366 = vst [vmem:[#allocation19_spill] sm:$0xff] %v6908_v63  ;;  %3188 = vst.msk [vmem:[%s5922_s12 + $0x1b0] sm:$0xff] %vm699_vm0, %v3060_v51  ;;  %v414_v16 = vld [vmem:[%s5929_s15 + $0x338] sm:$0xff]  ;;  %v415_v43 = vld [vmem:[%s5929_s15 + $0x340] sm:$0xff] }
  0xe1   : > { %5410 = vmatprep.mubr.msk.f32.mxu1 %vm699_vm0, %v6876_v21  ;;  %5210 = vmatprep.mubr.msk.f32.mxu0 %vm699_vm0, %v409_v7  ;;  %v412_v7 = vld [vmem:[%s5929_s15 + $0x328] sm:$0xff]  ;;  %v6914_v21 = vld [vmem:[%s5912_s26 + $0x330] sm:$0xff] }
  0xe2   : > { %8367 = vst [vmem:[#allocation20_spill] sm:$0xff] %v6914_v21  ;;  %3189 = vst.msk [vmem:[%s5922_s12 + $0x1b8] sm:$0xff] %vm699_vm0, %v3061_v12  ;;  %v624_v12 = vld [vmem:[%s5917_s9 + $0x1c8] sm:$0xff] }
  0xe3   : > { %v3063_v45 = vmul.f32 %v624_v12, %v6408_v49  ;;  %v6944_v51 = vld [vmem:[%s5912_s26 + $0x348] sm:$0xff]  ;;  %v6963_v49 = vld [vmem:[%s5912_s26 + $0x358] sm:$0xff]  ;;  %v419_v12 = vld [vmem:[%s5929_s15 + $0x360] sm:$0xff] }
  0xe4   : > { %5411 = vmatmul.mubr.msk.f32.gmra.mrb[98].mxu1 %vm699_vm0, %v6889_v25  ;;  %5211 = vmatmul.mubr.msk.f32.gmra.mrb[98].mxu0 %vm699_vm0, %v410_v3  ;;  %v413_v3 = vld [vmem:[%s5929_s15 + $0x330] sm:$0xff]  ;;  %8370 = vst [vmem:[#allocation23_spill] sm:$0xff] %v6944_v51  ;;  %8372 = vst [vmem:[#allocation25_spill] sm:$0xff] %v6963_v49  ;;  %v6982_v25 = vld [vmem:[%s5912_s26 + $0x368] sm:$0xff] }
  0xe5   : > { %5413 = vmatprep.mubr.msk.f32.mxu1 %vm699_vm0, %v6896_v5  ;;  %5213 = vmatprep.mubr.msk.f32.mxu0 %vm699_vm0, %v411_v53  ;;  %v6932_v53 = vld [vmem:[%s5912_s26 + $0x340] sm:$0xff]  ;;  %3191 = vst.msk [vmem:[%s5922_s12 + $0x1c8] sm:$0xff] %vm699_vm0, %v3063_v45  ;;  %8374 = vst [vmem:[#allocation27_spill] sm:$0xff] %v6982_v25 }
  0xe6   : > { %8369 = vst [vmem:[#allocation22_spill] sm:$0xff] %v6932_v53  ;;  %v5703_v5 = vld [vmem:[%s5917_s9] sm:$0xff] }
  0xe8   : > { %5414 = vmatmul.mubr.msk.f32.gmra.mrb[100].mxu1 %vm699_vm0, %v6908_v63  ;;  %5214 = vmatmul.mubr.msk.f32.gmra.mrb[100].mxu0 %vm699_vm0, %v412_v7  ;;  %v623_v7 = vld [vmem:[%s5917_s9 + $0x1c0] sm:$0xff] }
  0xe9   : > { %5416 = vmatprep.mubr.msk.f32.mxu1 %vm699_vm0, %v6914_v21  ;;  %5216 = vmatprep.mubr.msk.f32.mxu0 %vm699_vm0, %v413_v3  ;;  %v416_v3 = vld [vmem:[%s5929_s15 + $0x348] sm:$0xff]  ;;  %v3062_v21 = vmul.f32 %v623_v7, %v6390_v13  ;;  %v418_v13 = vld [vmem:[%s5929_s15 + $0x358] sm:$0xff] }
  0xea   : > { %v626_v7 = vld [vmem:[%s5917_s9 + $0x1d8] sm:$0xff] }
  0xeb   : > { %3190 = vst.msk [vmem:[%s5922_s12 + $0x1c0] sm:$0xff] %vm699_vm0, %v3062_v21 }
  0xec   : > { %5417 = vmatmul.mubr.msk.f32.gmra.mrb[102].mxu1 %vm699_vm0, %v6927_v37  ;;  %5217 = vmatmul.mubr.msk.f32.gmra.mrb[102].mxu0 %vm699_vm0, %v414_v16  ;;  %v6950_v37 = vld [vmem:[%s5912_s26 + $0x350] sm:$0xff] }
  0xed   : > { %5419 = vmatprep.mubr.msk.f32.mxu1 %vm699_vm0, %v6932_v53  ;;  %5219 = vmatprep.mubr.msk.f32.mxu0 %vm699_vm0, %v415_v43  ;;  %8371 = vst [vmem:[#allocation24_spill] sm:$0xff] %v6950_v37  ;;  %v417_v16 = vld [vmem:[%s5929_s15 + $0x350] sm:$0xff]  ;;  %v6968_v43 = vld [vmem:[%s5912_s26 + $0x360] sm:$0xff] }
  0xee   : > { %8373 = vst [vmem:[#allocation26_spill] sm:$0xff] %v6968_v43 }
  0xf0   : > { %5420 = vmatmul.mubr.msk.f32.gmra.mrb[104].mxu1 %vm699_vm0, %v6944_v51  ;;  %5220 = vmatmul.mubr.msk.f32.gmra.mrb[104].mxu0 %vm699_vm0, %v416_v3  ;;  %v625_v51 = vld [vmem:[%s5917_s9 + $0x1d0] sm:$0xff] }
  0xf1   : > { %5422 = vmatprep.mubr.msk.f32.mxu1 %vm699_vm0, %v6950_v37  ;;  %5222 = vmatprep.mubr.msk.f32.mxu0 %vm699_vm0, %v417_v16  ;;  %v3065_v16 = vmul.f32 %v626_v7, %v6436_v20  ;;  %v421_v20 = vld [vmem:[%s5929_s15 + $0x370] sm:$0xff] }
  0xf3   : > { %v5265_v21 = vpop.f32.mrb[0].mxu1  ;;  %v5065_v45 = vpop.f32.mrb[0].mxu0  ;;  %3193 = vst.msk [vmem:[%s5922_s12 + $0x1d8] sm:$0xff] %vm699_vm0, %v3065_v16  ;;  %v7016_v16 = vld [vmem:[%s5912_s26 + $0x380] sm:$0xff] }
  0xf4   : > { %v2879_v3 = vmul.f32 %v5265_v21, %v6239_v59  ;;  %v2239_v53 = vpop.f32.mrb[1].mxu1  ;;  %v1150_v37 = vpop.f32.mrb[1].mxu0  ;;  %5423 = vmatmul.mubr.msk.f32.gmra.mrb[106].mxu1 %vm699_vm0, %v6963_v49  ;;  %5223 = vmatmul.mubr.msk.f32.gmra.mrb[106].mxu0 %vm699_vm0, %v418_v13  ;;  %v420_v59 = vld [vmem:[%s5929_s15 + $0x368] sm:$0xff]  ;;  %v3064_v21 = vmul.f32 %v625_v51, %v6418_v61  ;;  %v6990_v13 = vld [vmem:[%s5912_s26 + $0x370] sm:$0xff]  ;;  %8377 = vst [vmem:[#allocation30_spill] sm:$0xff] %v7016_v16 }
  0xf5   : > { %v2878_v63 = vmul.f32 %v5703_v5, %v2239_v53  ;;  %5425 = vmatprep.mubr.msk.f32.mxu1 %vm699_vm0, %v6968_v43  ;;  %5225 = vmatprep.mubr.msk.f32.mxu0 %vm699_vm0, %v419_v12  ;;  %8375 = vst [vmem:[#allocation28_spill] sm:$0xff] %v6990_v13  ;;  %v7180_v43 = vld [vmem:[%s5917_s9 + $0x208] sm:$0xff] }
  0xf6   : > { %v6987_v57 = vmul.f32 %v5065_v45, %v2879_v3  ;;  %3192 = vst.msk [vmem:[%s5922_s12 + $0x1d0] sm:$0xff] %vm699_vm0, %v3064_v21  ;;  %v7009_v45 = vld [vmem:[%s5912_s26 + $0x378] sm:$0xff]  ;;  %8400 = vst [vmem:[#allocation43_spill] sm:$0xff] %v7180_v43 }
  0xf7   : > { %v6995_v5 = vmul.f32 %v2878_v63, %v1150_v37  ;;  %v5268_v53 = vpop.f32.mrb[2].mxu1  ;;  %v5068_v7 = vpop.f32.mrb[2].mxu0  ;;  %8376 = vst [vmem:[#allocation29_spill] sm:$0xff] %v7009_v45 }
  0xf8   : > { %v2881_v12 = vmul.f32 %v5268_v53, %v6263_v10  ;;  %v2249_v61 = vpop.f32.mrb[3].mxu1  ;;  %v1160_v51 = vpop.f32.mrb[3].mxu0  ;;  %5426 = vmatmul.mubr.msk.f32.gmra.mrb[108].mxu1 %vm699_vm0, %v6982_v25  ;;  %5226 = vmatmul.mubr.msk.f32.gmra.mrb[108].mxu0 %vm699_vm0, %v420_v59  ;;  %v422_v10 = vld [vmem:[%s5929_s15 + $0x378] sm:$0xff]  ;;  %v423_v59 = vld [vmem:[%s5929_s15 + $0x380] sm:$0xff] }
  0xf9   : > { %v2880_v37 = vmul.f32 %v2249_v61, %v6275_v17  ;;  %5428 = vmatprep.mubr.msk.f32.mxu1 %vm699_vm0, %v6990_v13  ;;  %5228 = vmatprep.mubr.msk.f32.mxu0 %vm699_vm0, %v421_v20  ;;  %v628_v61 = vld [vmem:[%s5917_s9 + $0x1e8] sm:$0xff]  ;;  %v7183_v25 = vld [vmem:[%s5917_s9 + $0x200] sm:$0xff] }
  0xfa   : > { %v7013_v3 = vmul.f32 %v5068_v7, %v2881_v12  ;;  %v3067_v7 = vmul.f32 %v628_v61, %v6464_v29  ;;  %v627_v12 = vld [vmem:[%s5917_s9 + $0x1e0] sm:$0xff]  ;;  %v7042_v29 = vld [vmem:[%s5912_s26 + $0x390] sm:$0xff]  ;;  %8401 = vst [vmem:[#allocation44_spill] sm:$0xff] %v7183_v25 }
  0xfb   : > { %v7019_v21 = vmul.f32 %v2880_v37, %v1160_v51  ;;  %v5271_v53 = vpop.f32.mrb[4].mxu1  ;;  %v5071_v17 = vpop.f32.mrb[4].mxu0  ;;  %8379 = vst [vmem:[#allocation32_spill] sm:$0xff] %v7042_v29  ;;  %v425_v61 = vld [vmem:[%s5929_s15 + $0x390] sm:$0xff] }
  0xfc   : > { %v2883_v63 = vmul.f32 %v5271_v53, %v6291_v14  ;;  %v2259_v13 = vpop.f32.mrb[5].mxu1  ;;  %v1170_v20 = vpop.f32.mrb[5].mxu0  ;;  %5429 = vmatmul.mubr.msk.f32.gmra.mrb[110].mxu1 %vm699_vm0, %v7009_v45  ;;  %5229 = vmatmul.mubr.msk.f32.gmra.mrb[110].mxu0 %vm699_vm0, %v422_v10  ;;  %v7034_v14 = vld [vmem:[%s5912_s26 + $0x388] sm:$0xff]  ;;  %v3066_v45 = vmul.f32 %v627_v12, %v6446_v9  ;;  %3195 = vst.msk [vmem:[%s5922_s12 + $0x1e8] sm:$0xff] %vm699_vm0, %v3067_v7  ;;  %v7061_v7 = vld [vmem:[%s5912_s26 + $0x398] sm:$0xff]  ;;  %v7068_v12 = vld [vmem:[%s5912_s26 + $0x3a0] sm:$0xff] }
  0xfd   : > { %v2882_v37 = vmul.f32 %v2259_v13, %v6303_v41  ;;  %5431 = vmatprep.mubr.msk.f32.mxu1 %vm699_vm0, %v7016_v16  ;;  %8378 = vst [vmem:[#allocation31_spill] sm:$0xff] %v7034_v14  ;;  %5231 = vmatprep.mubr.msk.f32.mxu0 %vm699_vm0, %v423_v59  ;;  %v424_v53 = vld [vmem:[%s5929_s15 + $0x388] sm:$0xff]  ;;  %8380 = vst [vmem:[#allocation33_spill] sm:$0xff] %v7061_v7 }
  0xfe   : > { %v7039_v10 = vmul.f32 %v5071_v17, %v2883_v63  ;;  %3194 = vst.msk [vmem:[%s5922_s12 + $0x1e0] sm:$0xff] %vm699_vm0, %v3066_v45  ;;  %8381 = vst [vmem:[#allocation34_spill] sm:$0xff] %v7068_v12 }
  0xff   : > { %v7047_v41 = vmul.f32 %v2882_v37, %v1170_v20  ;;  %v5274_v13 = vpop.f32.mrb[6].mxu1  ;;  %v5074_v51 = vpop.f32.mrb[6].mxu0  ;;  %v427_v37 = vld [vmem:[%s5929_s15 + $0x3a0] sm:$0xff] }
 0x100   : > { %v2885_v59 = vmul.f32 %v5274_v13, %v6319_v18  ;;  %v2269_v9 = vpop.f32.mrb[7].mxu1  ;;  %v1180_v63 = vpop.f32.mrb[7].mxu0  ;;  %5432 = vmatmul.mubr.msk.f32.gmra.mrb[112].mxu1 %vm699_vm0, %v7034_v14  ;;  %5232 = vmatmul.mubr.msk.f32.gmra.mrb[112].mxu0 %vm699_vm0, %v424_v53  ;;  %v426_v18 = vld [vmem:[%s5929_s15 + $0x398] sm:$0xff] }
 0x101   : > { %v2884_v20 = vmul.f32 %v2269_v9, %v6331_v1  ;;  %5434 = vmatprep.mubr.msk.f32.mxu1 %vm699_vm0, %v7042_v29  ;;  %5234 = vmatprep.mubr.msk.f32.mxu0 %vm699_vm0, %v425_v61  ;;  %v7074_v9 = vld [vmem:[%s5917_s9 + $0x1f8] sm:$0xff] }
 0x102   : > { %v7065_v45 = vmul.f32 %v5074_v51, %v2885_v59  ;;  %8382 = vst [vmem:[#allocation35_spill] sm:$0xff] %v7074_v9  ;;  %v3069_v51 = vmul.f32 %v7074_v9, %v6492_v24  ;;  %v7083_v59 = vld [vmem:[%s5917_s9 + $0x1f0] sm:$0xff] }
 0x103   : > { %v7071_v53 = vmul.f32 %v2884_v20, %v1180_v63  ;;  %v5277_v13 = vpop.f32.mrb[8].mxu1  ;;  %v5077_v1 = vpop.f32.mrb[8].mxu0  ;;  %8383 = vst [vmem:[#allocation36_spill] sm:$0xff] %v7083_v59  ;;  %v7091_v20 = vld [vmem:[%s5912_s26 + $0x3a8] sm:$0xff]  ;;  %v7100_v9 = vld [vmem:[%s5912_s26 + $0x3b0] sm:$0xff] }
 0x104   : > { %v2887_v17 = vmul.f32 %v5277_v13, %v6347_v22  ;;  %v2279_v29 = vpop.f32.mrb[9].mxu1  ;;  %v1190_v61 = vpop.f32.mrb[9].mxu0  ;;  %5435 = vmatmul.mubr.msk.f32.gmra.mrb[114].mxu1 %vm699_vm0, %v7061_v7  ;;  %5235 = vmatmul.mubr.msk.f32.gmra.mrb[114].mxu0 %vm699_vm0, %v426_v18  ;;  %8384 = vst [vmem:[#allocation37_spill] sm:$0xff] %v7091_v20  ;;  %v428_v13 = vld [vmem:[%s5929_s15 + $0x3a8] sm:$0xff]  ;;  %v3068_v18 = vmul.f32 %v7083_v59, %v6474_v30  ;;  %8385 = vst [vmem:[#allocation38_spill] sm:$0xff] %v7100_v9  ;;  %v429_v7 = vld [vmem:[%s5929_s15 + $0x3b0] sm:$0xff] }
 0x105   : > { %v2886_v22 = vmul.f32 %v2279_v29, %v6359_v33  ;;  %5437 = vmatprep.mubr.msk.f32.mxu1 %vm699_vm0, %v7068_v12  ;;  %5237 = vmatprep.mubr.msk.f32.mxu0 %vm699_vm0, %v427_v37  ;;  %3197 = vst.msk [vmem:[%s5922_s12 + $0x1f8] sm:$0xff] %vm699_vm0, %v3069_v51 }
 0x106   : > { %v7097_v24 = vmul.f32 %v5077_v1, %v2887_v17  ;;  %3196 = vst.msk [vmem:[%s5922_s12 + $0x1f0] sm:$0xff] %vm699_vm0, %v3068_v18  ;;  %v8390_v1 = vld [vmem:[#allocation6_spill] sm:$0xff] }
 0x107   : > { %v7105_v33 = vmul.f32 %v2886_v22, %v1190_v61  ;;  %v5280_v29 = vpop.f32.mrb[10].mxu1  ;;  %v5080_v63 = vpop.f32.mrb[10].mxu0  ;;  %v8386_v61 = vld [vmem:[#allocation5_spill] sm:$0xff]  ;;  %v7119_v22 = vld [vmem:[%s5912_s26 + $0x3b8] sm:$0xff] }
 0x108   : > { %v2889_v37 = vmul.f32 %v5280_v29, %v6375_v26  ;;  %v2289_v30 = vpop.f32.mrb[11].mxu1  ;;  %v1200_v17 = vpop.f32.mrb[11].mxu0  ;;  %5438 = vmatmul.mubr.msk.f32.gmra.mrb[116].mxu1 %vm699_vm0, %v7091_v20  ;;  %5238 = vmatmul.mubr.msk.f32.gmra.mrb[116].mxu0 %vm699_vm0, %v428_v13  ;;  %8387 = vst [vmem:[#allocation5_spill] sm:$0xff] %v7119_v22  ;;  %v430_v26 = vld [vmem:[%s5929_s15 + $0x3b8] sm:$0xff]  ;;  %v7126_v29 = vld [vmem:[%s5912_s26 + $0x3c0] sm:$0xff] }
 0x109   : > { %v2888_v51 = vmul.f32 %v2289_v30, %v8386_v61  ;;  %5440 = vmatprep.mubr.msk.f32.mxu1 %vm699_vm0, %v7100_v9  ;;  %5240 = vmatprep.mubr.msk.f32.mxu0 %vm699_vm0, %v429_v7  ;;  %8388 = vst [vmem:[#allocation39_spill] sm:$0xff] %v7126_v29  ;;  %v431_v13 = vld [vmem:[%s5929_s15 + $0x3c0] sm:$0xff]  ;;  %v8396_v7 = vld [vmem:[#allocation8_spill] sm:$0xff] }
 0x10a   : > { %v7123_v18 = vmul.f32 %v5080_v63, %v2889_v37  ;;  %v8391_v63 = vld [vmem:[#allocation7_spill] sm:$0xff] }
 0x10b   : > { %v7129_v59 = vmul.f32 %v2888_v51, %v1200_v17  ;;  %v5283_v30 = vpop.f32.mrb[12].mxu1  ;;  %v5083_v61 = vpop.f32.mrb[12].mxu0  ;;  %v7141_v17 = vld [vmem:[%s5912_s26 + $0x3c8] sm:$0xff] }
 0x10c   : > { %v2891_v9 = vmul.f32 %v5283_v30, %v8390_v1  ;;  %v2299_v12 = vpop.f32.mrb[13].mxu1  ;;  %v1210_v20 = vpop.f32.mrb[13].mxu0  ;;  %5441 = vmatmul.mubr.msk.f32.gmra.mrb[118].mxu1 %vm699_vm0, %v7119_v22  ;;  %5241 = vmatmul.mubr.msk.f32.gmra.mrb[118].mxu0 %vm699_vm0, %v430_v26  ;;  %8392 = vst [vmem:[#allocation6_spill] sm:$0xff] %v7141_v17  ;;  %v432_v1 = vld [vmem:[%s5929_s15 + $0x3c8] sm:$0xff]  ;;  %v7148_v30 = vld [vmem:[%s5912_s26 + $0x3d0] sm:$0xff] }
 0x10d   : > { %8389 = vst [vmem:[#allocation40_spill] sm:$0xff] %v7129_v59  ;;  %v2890_v37 = vmul.f32 %v2299_v12, %v8391_v63  ;;  %5443 = vmatprep.mubr.msk.f32.mxu1 %vm699_vm0, %v7126_v29  ;;  %5243 = vmatprep.mubr.msk.f32.mxu0 %vm699_vm0, %v431_v13  ;;  %8394 = vst [vmem:[#allocation41_spill] sm:$0xff] %v7148_v30  ;;  %v433_v26 = vld [vmem:[%s5929_s15 + $0x3d0] sm:$0xff] }
 0x10e   : > { %v7145_v51 = vmul.f32 %v5083_v61, %v2891_v9  ;;  %v7163_v61 = vld [vmem:[%s5912_s26 + $0x3d8] sm:$0xff] }
 0x10f   : > { %v7151_v22 = vmul.f32 %v2890_v37, %v1210_v20  ;;  %v5286_v12 = vpop.f32.mrb[14].mxu1  ;;  %v5086_v63 = vpop.f32.mrb[14].mxu0  ;;  %v8397_v20 = vld [vmem:[#allocation9_spill] sm:$0xff]  ;;  %8398 = vst [vmem:[#allocation8_spill] sm:$0xff] %v7163_v61 }
 0x110   : > { %8393 = vst [vmem:[#allocation7_spill] sm:$0xff] %v7145_v51  ;;  %v2893_v29 = vmul.f32 %v5286_v12, %v8396_v7  ;;  %v2309_v16 = vpop.f32.mrb[15].mxu1  ;;  %v1220_v14 = vpop.f32.mrb[15].mxu0  ;;  %5444 = vmatmul.mubr.msk.f32.gmra.mrb[120].mxu1 %vm699_vm0, %v7141_v17  ;;  %5244 = vmatmul.mubr.msk.f32.gmra.mrb[120].mxu0 %vm699_vm0, %v432_v1  ;;  %v434_v7 = vld [vmem:[%s5929_s15 + $0x3d8] sm:$0xff]  ;;  %v7170_v12 = vld [vmem:[%s5912_s26 + $0x3e0] sm:$0xff]  ;;  %v8404_v51 = vld [vmem:[#allocation11_spill] sm:$0xff] }
 0x111   : > { %8395 = vst [vmem:[#allocation42_spill] sm:$0xff] %v7151_v22  ;;  %v2892_v13 = vmul.f32 %v2309_v16, %v8397_v20  ;;  %5446 = vmatprep.mubr.msk.f32.mxu1 %vm699_vm0, %v7148_v30  ;;  %5246 = vmatprep.mubr.msk.f32.mxu0 %vm699_vm0, %v433_v26  ;;  %8399 = vst [vmem:[#allocation9_spill] sm:$0xff] %v7170_v12  ;;  %v435_v1 = vld [vmem:[%s5929_s15 + $0x3e0] sm:$0xff]  ;;  %v7176_v20 = vld [vmem:[%s5912_s26 + $0x3e8] sm:$0xff]  ;;  %v3071_v22 = vmul.f32 %v7180_v43, %v6518_v28 }
 0x112   : > { %v7167_v37 = vmul.f32 %v5086_v63, %v2893_v29  ;;  %v436_v30 = vld [vmem:[%s5929_s15 + $0x3e8] sm:$0xff]  ;;  %v7209_v43 = vld [vmem:[%s5917_s9 + $0x210] sm:$0xff] }
 0x113   : > { %v7173_v17 = vmul.f32 %v2892_v13, %v1220_v14  ;;  %v5289_v9 = vpop.f32.mrb[16].mxu1  ;;  %v5089_v16 = vpop.f32.mrb[16].mxu0  ;;  %v8402_v26 = vld [vmem:[#allocation10_spill] sm:$0xff]  ;;  %v7190_v14 = vld [vmem:[%s5912_s26 + $0x3f0] sm:$0xff]  ;;  %8405 = vst [vmem:[#allocation11_spill] sm:$0xff] %v7209_v43  ;;  %3199 = vst.msk [vmem:[%s5922_s12 + $0x208] sm:$0xff] %vm699_vm0, %v3071_v22 }
 0x114   : > { %v2895_v29 = vmul.f32 %v5289_v9, %v8402_v26  ;;  %v2319_v63 = vpop.f32.mrb[17].mxu1  ;;  %v1230_v49 = vpop.f32.mrb[17].mxu0  ;;  %5447 = vmatmul.mubr.msk.f32.gmra.mrb[122].mxu1 %vm699_vm0, %v7163_v61  ;;  %5247 = vmatmul.mubr.msk.f32.gmra.mrb[122].mxu0 %vm699_vm0, %v434_v7  ;;  %v437_v13 = vld [vmem:[%s5929_s15 + $0x3f0] sm:$0xff]  ;;  %v3070_v9 = vmul.f32 %v7183_v25, %v6502_v34  ;;  %v7198_v26 = vld [vmem:[%s5917_s9 + $0x218] sm:$0xff]  ;;  %v7212_v34 = vld [vmem:[%s5917_s9 + $0x228] sm:$0xff] }
 0x115   : > { %8403 = vst [vmem:[#allocation10_spill] sm:$0xff] %v7198_v26  ;;  %v2894_v7 = vmul.f32 %v2319_v63, %v8404_v51  ;;  %5449 = vmatprep.mubr.msk.f32.mxu1 %vm699_vm0, %v7170_v12  ;;  %5249 = vmatprep.mubr.msk.f32.mxu0 %vm699_vm0, %v435_v1  ;;  %v3073_v28 = vmul.f32 %v7198_v26, %v6540_v32  ;;  %8406 = vst [vmem:[#allocation45_spill] sm:$0xff] %v7212_v34  ;;  %v7215_v25 = vld [vmem:[%s5917_s9 + $0x220] sm:$0xff]  ;;  %v7228_v63 = vld [vmem:[%s5917_s9 + $0x238] sm:$0xff] }
 0x116   : > { %8407 = vst [vmem:[#allocation46_spill] sm:$0xff] %v7215_v25  ;;  %v3279_v59 = vmul.f32 %v5089_v16, %v2895_v29  ;;  %3198 = vst.msk [vmem:[%s5922_s12 + $0x200] sm:$0xff] %vm699_vm0, %v3070_v9  ;;  %v3072_v51 = vmul.f32 %v7209_v43, %v6525_v40  ;;  %v3075_v32 = vmul.f32 %v7212_v34, %v6562_v38  ;;  %v7231_v61 = vld [vmem:[%s5917_s9 + $0x230] sm:$0xff]  ;;  %v7234_v16 = vld [vmem:[%s5917_s9 + $0x248] sm:$0xff] }
 0x117   : > { %v3074_v1 = vmul.f32 %v7215_v25, %v6547_v44  ;;  %8408 = vst [vmem:[#allocation47_spill] sm:$0xff] %v7234_v16  ;;  %v3278_v22 = vmul.f32 %v2894_v7, %v1230_v49  ;;  %v5292_v29 = vpop.f32.mrb[18].mxu1  ;;  %v5092_v9 = vpop.f32.mrb[18].mxu0  ;;  %3201 = vst.msk [vmem:[%s5922_s12 + $0x218] sm:$0xff] %vm699_vm0, %v3073_v28  ;;  %v3077_v44 = vmul.f32 %v7228_v63, %v6584_v42  ;;  %v7251_v7 = vld [vmem:[%s5917_s9 + $0x240] sm:$0xff]  ;;  %v7254_v12 = vld [vmem:[%s5917_s9 + $0x258] sm:$0xff] }
 0x118   : > { %v3076_v38 = vmul.f32 %v7231_v61, %v6569_v48  ;;  %v3079_v49 = vmul.f32 %v7234_v16, %v6606_v46  ;;  %v8411_v25 = vld [vmem:[#allocation12_spill] sm:$0xff]  ;;  %v2329_v43 = vpop.f32.mrb[19].mxu1  ;;  %v1240_v26 = vpop.f32.mrb[19].mxu0  ;;  %5450 = vmatmul.mubr.msk.f32.gmra.mrb[124].mxu1 %vm699_vm0, %v7176_v20  ;;  %5250 = vmatmul.mubr.msk.f32.gmra.mrb[124].mxu0 %vm699_vm0, %v436_v30  ;;  %3200 = vst.msk [vmem:[%s5922_s12 + $0x210] sm:$0xff] %vm699_vm0, %v3072_v51  ;;  %3203 = vst.msk [vmem:[%s5922_s12 + $0x228] sm:$0xff] %vm699_vm0, %v3075_v32  ;;  %v7275_v30 = vld [vmem:[%s5917_s9 + $0x250] sm:$0xff] }
 0x119   : > { %v2897_v34 = vmul.f32 %v5292_v29, %v8411_v25  ;;  %v7261_v48 = vld [vmem:[%s5912_s26 + $0x3f8] sm:$0xff]  ;;  %3202 = vst.msk [vmem:[%s5922_s12 + $0x220] sm:$0xff] %vm699_vm0, %v3074_v1  ;;  %v3078_v46 = vmul.f32 %v7251_v7, %v6591_v52  ;;  %v3081_v25 = vmul.f32 %v7254_v12, %v6628_v36  ;;  %v5471_v28 = vpack.c.bf16 %v3279_v59, %v3278_v22  ;;  %v8412_v29 = vld [vmem:[#allocation13_spill] sm:$0xff]  ;;  %v7290_v36 = vld [vmem:[%s5917_s9 + $0x268] sm:$0xff]  ;;  %s4252_s26 = sshll.u32 %s276_s20, 4 }
 0x11a   : > { %v438_v42 = vld [vmem:[%s5929_s15 + $0x3f8] sm:$0xff]  ;;  %v2896_v16 = vmul.f32 %v2329_v43, %v8412_v29  ;;  %5452 = vmatprep.mubr.msk.f32.mxu1 %vm699_vm0, %v7190_v14  ;;  %5252 = vmatprep.mubr.msk.f32.mxu0 %vm699_vm0, %v437_v13  ;;  %3205 = vst.msk [vmem:[%s5922_s12 + $0x238] sm:$0xff] %vm699_vm0, %v3077_v44  ;;  %3204 = vst.msk [vmem:[%s5922_s12 + $0x230] sm:$0xff] %vm699_vm0, %v3076_v38  ;;  %v3080_v52 = vmul.f32 %v7275_v30, %v6613_v56  ;;  %v7293_v43 = vld [vmem:[%s5917_s9 + $0x260] sm:$0xff]  ;;  %s278_s28 = scalar_lea.vmem [#allocation2], %s4252_s26  ;;  %s5751_s15 = sshll.u32 %s5812_s25, 4  ;;  %s5752_s15 = int_to_ptr.vmem [resolvable:$false] %s5751_s15 }
 0x11b   : > { %3207 = vst.msk [vmem:[%s5922_s12 + $0x248] sm:$0xff] %vm699_vm0, %v3079_v49  ;;  %v7296_v59 = vld [vmem:[%s5917_s9 + $0x278] sm:$0xff]  ;;  %v3281_v51 = vmul.f32 %v5092_v9, %v2897_v34  ;;  %3206 = vst.msk [vmem:[%s5922_s12 + $0x240] sm:$0xff] %vm699_vm0, %v3078_v46  ;;  %v3083_v13 = vmul.f32 %v7290_v36, %v6650_v50  ;;  %v3082_v56 = vmul.f32 %v7293_v43, %v6635_v60  ;;  %v7309_v1 = vld [vmem:[%s5917_s9 + $0x270] sm:$0xff]  ;;  %v5295_v44 = vpop.f32.mrb[20].mxu1  ;;  %5473 = vmatprep.subr.msk.bf16.mxu0 %vm7238_vm1, %v5471_v28  ;;  %v5095_v50 = vpop.f32.mrb[20].mxu0 }
 0x11c   : > { %3209 = vst.msk [vmem:[%s5922_s12 + $0x258] sm:$0xff] %vm699_vm0, %v3081_v25  ;;  %v3085_v32 = vmul.f32 %v7296_v59, %v6672_v54  ;;  %v7312_v22 = vld [vmem:[%s5917_s9 + $0x288] sm:$0xff]  ;;  %v7315_v34 = vld [vmem:[%s5917_s9 + $0x280] sm:$0xff]  ;;  %v3280_v9 = vmul.f32 %v2896_v16, %v1240_v26  ;;  %3208 = vst.msk [vmem:[%s5922_s12 + $0x250] sm:$0xff] %vm699_vm0, %v3080_v52  ;;  %v3084_v60 = vmul.f32 %v7309_v1, %v6657_v0  ;;  %v2339_v25 = vpop.f32.mrb[21].mxu1  ;;  %5453 = vmatmul.mubr.msk.f32.gmra.mrb[126].mxu1 %vm699_vm0, %v7261_v48  ;;  %s5753_s16 = scalar_lea.vmem %s5752_s15, 512 }
 0x11d   : > { %v3087_v54 = vmul.f32 %v7312_v22, %v6694_v58  ;;  %v3086_v26 = vmul.f32 %v7315_v34, %v6679_v4  ;;  %v7328_v16 = vld [vmem:[%s5917_s9 + $0x298] sm:$0xff]  ;;  %v7333_v38 = vld [vmem:[%s8272_s4] sm:$0x3]  ;;  %v7336_v49 = vld [vmem:[%s5917_s9 + $0x290] sm:$0xff]  ;;  %v8413_v58 = vpack.c.bf16 %v6987_v57, %v6995_v5  ;;  %v1250_v4 = vpop.f32.mrb[21].mxu0  ;;  %3211 = vst.msk [vmem:[%s5922_s12 + $0x268] sm:$0xff] %vm699_vm0, %v3083_v13  ;;  %5253 = vmatmul.mubr.msk.f32.gmra.mrb[126].mxu0 %vm699_vm0, %v438_v42 }
 0x11e   : > { %v5704_v46 = vld [vmem:[%s5917_s9 + $0xa8] sm:$0xff]  ;;  %3210 = vst.msk [vmem:[%s5922_s12 + $0x260] sm:$0xff] %vm699_vm0, %v3082_v56  ;;  %3213 = vst.msk [vmem:[%s5922_s12 + $0x278] sm:$0xff] %vm699_vm0, %v3085_v32  ;;  %v3089_v28 = vmul.f32 %v7328_v16, %v6716_v62  ;;  %v3088_v57 = vmul.f32 %v7336_v49, %v6701_v8  ;;  %v5477_v29 = vpack.c.bf16 %v3281_v51, %v3280_v9  ;;  %v5705_v52 = vld [vmem:[%s5917_s9 + $0xa0] sm:$0xff]  ;;  %4985 = vmatprep.mubr.msk.f32.mxu1 %vm699_vm0, %v7333_v38 }
 0x11f   : > { %v2899_v0 = vmul.f32 %v5704_v46, %v5295_v44  ;;  %5476 = vmatpush3.bf16.xpose.msk.msra.mxu0 %vm7238_vm1, %v8413_v58  ;;  %v7357_v5 = vld [vmem:[%s5917_s9 + $0x2a8] sm:$0xff]  ;;  %v2898_v44 = vmul.f32 %v5705_v52, %v2339_v25  ;;  %3212 = vst.msk [vmem:[%s5922_s12 + $0x270] sm:$0xff] %vm699_vm0, %v3084_v60  ;;  %3215 = vst.msk [vmem:[%s5922_s12 + $0x288] sm:$0xff] %vm699_vm0, %v3087_v54  ;;  %4951 = vmatprep.mubr.msk.f32.mxu0 %vm699_vm0, %v7333_v38  ;;  %v7378_v42 = vld [vmem:[%s5917_s9 + $0x2a0] sm:$0xff]  ;;  %v5298_v13 = vpop.f32.mrb[22].mxu1 }
 0x120   : > { %3214 = vst.msk [vmem:[%s5922_s12 + $0x280] sm:$0xff] %vm699_vm0, %v3086_v26  ;;  %v3091_v62 = vmul.f32 %v7357_v5, %v6738_v2  ;;  %3217 = vst.msk [vmem:[%s5922_s12 + $0x298] sm:$0xff] %vm699_vm0, %v3089_v28  ;;  %5479 = vmatprep.subr.msk.bf16.mxu0 %vm7238_vm1, %v5477_v29  ;;  %v5098_v2 = vpop.f32.mrb[22].mxu0  ;;  %v3090_v56 = vmul.f32 %v7378_v42, %v6723_v15  ;;  %v5706_v32 = vld [vmem:[%s5917_s9 + $0xb8] sm:$0xff]  ;;  %v5707_v26 = vld [vmem:[%s5917_s9 + $0xb0] sm:$0xff]  ;;  %v8414_v52 = vpack.c.bf16 %v7013_v3, %v7019_v21 }
 0x121   : > { %v3283_v8 = vmul.f32 %v5095_v50, %v2899_v0  ;;  %3216 = vst.msk [vmem:[%s5922_s12 + $0x290] sm:$0xff] %vm699_vm0, %v3088_v57  ;;  %v3282_v51 = vmul.f32 %v2898_v44, %v1250_v4  ;;  %v2901_v9 = vmul.f32 %v5706_v32, %v5298_v13  ;;  %v2349_v50 = vpop.f32.mrb[23].mxu1  ;;  %v1260_v60 = vpop.f32.mrb[23].mxu0  ;;  %v7391_v28 = vld [vmem:[%s5917_s9 + $0x2b8] sm:$0xff]  ;;  %v5708_v57 = vld [vmem:[%s5917_s9 + $0xc8] sm:$0xff]  ;;  %v5709_v13 = vld [vmem:[%s5917_s9 + $0xc0] sm:$0xff] }
 0x122   : > { %3219 = vst.msk [vmem:[%s5922_s12 + $0x2a8] sm:$0xff] %vm699_vm0, %v3091_v62  ;;  %v2900_v46 = vmul.f32 %v5707_v26, %v2349_v50  ;;  %3218 = vst.msk [vmem:[%s5922_s12 + $0x2a0] sm:$0xff] %vm699_vm0, %v3090_v56  ;;  %v3093_v62 = vmul.f32 %v7391_v28, %v6760_v6 }
 0x123   : > { %v5483_v54 = vpack.c.bf16 %v3283_v8, %v3282_v51  ;;  %v3285_v0 = vmul.f32 %v5098_v2, %v2901_v9  ;;  %v5301_v58 = vpop.f32.mrb[24].mxu1  ;;  %v5101_v4 = vpop.f32.mrb[24].mxu0  ;;  %v7402_v8 = vld [vmem:[%s5917_s9 + $0x2b0] sm:$0xff]  ;;  %v5710_v9 = vld [vmem:[%s5917_s9 + $0xd8] sm:$0xff] }
 0x124   : > { %v3284_v25 = vmul.f32 %v2900_v46, %v1260_v60  ;;  %v2903_v15 = vmul.f32 %v5708_v57, %v5301_v58  ;;  %v2359_v29 = vpop.f32.mrb[25].mxu1  ;;  %v1270_v44 = vpop.f32.mrb[25].mxu0  ;;  %v3092_v3 = vmul.f32 %v7402_v8, %v6745_v23  ;;  %3221 = vst.msk [vmem:[%s5922_s12 + $0x2b8] sm:$0xff] %vm699_vm0, %v3093_v62  ;;  %v7420_v57 = vld [vmem:[%s5917_s9 + $0x2c8] sm:$0xff] }
 0x125   : > { %v2902_v2 = vmul.f32 %v5709_v13, %v2359_v29  ;;  %v3095_v13 = vmul.f32 %v7420_v57, %v6782_v11 }
 0x126   : > { %v5489_v51 = vpack.c.bf16 %v3285_v0, %v3284_v25  ;;  %v3287_v21 = vmul.f32 %v5101_v4, %v2903_v15  ;;  %3220 = vst.msk [vmem:[%s5922_s12 + $0x2b0] sm:$0xff] %vm699_vm0, %v3092_v3  ;;  %v5712_v15 = vld [vmem:[%s5917_s9 + $0xe8] sm:$0xff] }
 0x127   : > { %5482 = vmatpush3.bf16.xpose.msk.msra.mxu0 %vm7238_vm1, %v8414_v52  ;;  %v3286_v56 = vmul.f32 %v2902_v2, %v1270_v44  ;;  %v5304_v32 = vpop.f32.mrb[26].mxu1  ;;  %v5104_v6 = vpop.f32.mrb[26].mxu0  ;;  %v8415_v44 = vpack.c.bf16 %v7039_v10, %v7047_v41  ;;  %v7431_v2 = vld [vmem:[%s5917_s9 + $0x2c0] sm:$0xff]  ;;  %3223 = vst.msk [vmem:[%s5922_s12 + $0x2c8] sm:$0xff] %vm699_vm0, %v3095_v13  ;;  %v8416_v13 = vpack.c.bf16 %v7065_v45, %v7071_v53 }
 0x128   : > { %5485 = vmatprep.subr.msk.bf16.mxu0 %vm7238_vm1, %v5483_v54  ;;  %v2905_v50 = vmul.f32 %v5710_v9, %v5304_v32  ;;  %v2369_v60 = vpop.f32.mrb[27].mxu1  ;;  %v1280_v26 = vpop.f32.mrb[27].mxu0  ;;  %v5711_v54 = vld [vmem:[%s5917_s9 + $0xd0] sm:$0xff]  ;;  %v3094_v10 = vmul.f32 %v7431_v2, %v6767_v31  ;;  %v5714_v9 = vld [vmem:[%s5917_s9 + $0xf8] sm:$0xff] }
 0x129   : > { %v5495_v46 = vpack.c.bf16 %v3287_v21, %v3286_v56  ;;  %v2904_v0 = vmul.f32 %v5711_v54, %v2369_v60  ;;  %v5713_v21 = vld [vmem:[%s5917_s9 + $0xe0] sm:$0xff] }
 0x12a   : > { %v7415_v23 = vmul.f32 %v5104_v6, %v2905_v50  ;;  %3222 = vst.msk [vmem:[%s5922_s12 + $0x2c0] sm:$0xff] %vm699_vm0, %v3094_v10  ;;  %v7468_v10 = vld [vmem:[%s5917_s9 + $0x2d0] sm:$0xff] }
 0x12b   : > { %v7417_v25 = vmul.f32 %v2904_v0, %v1280_v26  ;;  %v5307_v58 = vpop.f32.mrb[28].mxu1  ;;  %v5107_v4 = vpop.f32.mrb[28].mxu0  ;;  %v5715_v26 = vld [vmem:[%s5917_s9 + $0xf0] sm:$0xff]  ;;  %v3096_v45 = vmul.f32 %v7468_v10, %v6789_v39 }
 0x12c   : > { %v2907_v29 = vmul.f32 %v5712_v15, %v5307_v58  ;;  %v2379_v52 = vpop.f32.mrb[29].mxu1  ;;  %v1290_v62 = vpop.f32.mrb[29].mxu0 }
 0x12d   : > { %v5501_v3 = vpack.c.bf16 %v7415_v23, %v7417_v25  ;;  %v2906_v56 = vmul.f32 %v5713_v21, %v2379_v52  ;;  %v5716_v52 = vld [vmem:[%s5917_s9 + $0x108] sm:$0xff]  ;;  %3224 = vst.msk [vmem:[%s5922_s12 + $0x2d0] sm:$0xff] %vm699_vm0, %v3096_v45 }
 0x12e   : > { %v7440_v41 = vmul.f32 %v5107_v4, %v2907_v29  ;;  %v7457_v29 = vld [vmem:[%s5917_s9 + $0x2d8] sm:$0xff]  ;;  %v8423_v23 = vld [vmem:[#allocation14_spill] sm:$0xff] }
 0x12f   : > { %5488 = vmatpush3.bf16.xpose.msk.msra.mxu0 %vm7238_vm1, %v8415_v44  ;;  %v7444_v11 = vmul.f32 %v2906_v56, %v1290_v62  ;;  %v5310_v32 = vpop.f32.mrb[30].mxu1  ;;  %v5110_v6 = vpop.f32.mrb[30].mxu0  ;;  %v3097_v56 = vmul.f32 %v7457_v29, %v6804_v19 }
 0x130   : > { %5491 = vmatprep.subr.msk.bf16.mxu0 %vm7238_vm1, %v5489_v51  ;;  %v2909_v50 = vmul.f32 %v5714_v9, %v5310_v32  ;;  %v2389_v60 = vpop.f32.mrb[31].mxu1  ;;  %v1300_v51 = vpop.f32.mrb[31].mxu0  ;;  %v8431_v32 = vld [vmem:[#allocation19_spill] sm:$0xff] }
 0x131   : > { %v2908_v54 = vmul.f32 %v5715_v26, %v2389_v60  ;;  %3225 = vst.msk [vmem:[%s5922_s12 + $0x2d8] sm:$0xff] %vm699_vm0, %v3097_v56  ;;  %v7497_v56 = vld [vmem:[%s5917_s9 + $0x2e0] sm:$0xff] }
 0x132   : > { %v7452_v0 = vmul.f32 %v5110_v6, %v2909_v50  ;;  %v5717_v6 = vld [vmem:[%s5917_s9 + $0x100] sm:$0xff] }
 0x133   : > { %v7454_v58 = vmul.f32 %v2908_v54, %v1300_v51  ;;  %v5313_v4 = vpop.f32.mrb[32].mxu1  ;;  %v5113_v15 = vpop.f32.mrb[32].mxu0  ;;  %v5718_v51 = vld [vmem:[%s5917_s9 + $0x118] sm:$0xff] }
 0x134   : > { %v2911_v44 = vmul.f32 %v5716_v52, %v5313_v4  ;;  %v2399_v62 = vpop.f32.mrb[33].mxu1  ;;  %v1310_v21 = vpop.f32.mrb[33].mxu0  ;;  %v5719_v4 = vld [vmem:[%s5917_s9 + $0x110] sm:$0xff] }
 0x135   : > { %v2910_v9 = vmul.f32 %v5717_v6, %v2399_v62  ;;  %v7500_v6 = vld [vmem:[%s5917_s9 + $0x2f8] sm:$0xff] }
 0x136   : > { %v7477_v53 = vmul.f32 %v5113_v15, %v2911_v44  ;;  %8417 = vst [vmem:[#allocation12_spill] sm:$0xff] %v7500_v6 }
 0x137   : > { %5494 = vmatpush3.bf16.xpose.msk.msra.mxu0 %vm7238_vm1, %v8416_v13  ;;  %v7481_v19 = vmul.f32 %v2910_v9, %v1310_v21  ;;  %v5316_v50 = vpop.f32.mrb[34].mxu1  ;;  %v5116_v60 = vpop.f32.mrb[34].mxu0  ;;  %v7494_v21 = vld [vmem:[%s5917_s9 + $0x2e8] sm:$0xff] }
 0x138   : > { %5497 = vmatprep.subr.msk.bf16.mxu0 %vm7238_vm1, %v5495_v46  ;;  %v2913_v26 = vmul.f32 %v5718_v51, %v5316_v50  ;;  %v2409_v46 = vpop.f32.mrb[35].mxu1  ;;  %v1320_v54 = vpop.f32.mrb[35].mxu0  ;;  %v5720_v9 = vld [vmem:[%s5917_s9 + $0x128] sm:$0xff] }
 0x139   : > { %v2912_v15 = vmul.f32 %v5719_v4, %v2409_v46  ;;  %v3098_v46 = vmul.f32 %v7497_v56, %v6811_v47  ;;  %v7515_v4 = vld [vmem:[%s5917_s9 + $0x2f0] sm:$0xff] }
 0x13a   : > { %v7489_v52 = vmul.f32 %v5116_v60, %v2913_v26  ;;  %v8418_v60 = vpack.c.bf16 %v7097_v24, %v7105_v33  ;;  %v3099_v26 = vmul.f32 %v7494_v21, %v6826_v27  ;;  %8419 = vst [vmem:[#allocation13_spill] sm:$0xff] %v7515_v4  ;;  %v5721_v33 = vld [vmem:[%s5917_s9 + $0x120] sm:$0xff]  ;;  %v3100_v47 = vmul.f32 %v7515_v4, %v6833_v55  ;;  %v8421_v27 = vld [vmem:[#allocation15_spill] sm:$0xff]  ;;  %v8430_v24 = vld [vmem:[#allocation16_spill] sm:$0xff] }
 0x13b   : > { %v7491_v44 = vmul.f32 %v2912_v15, %v1320_v54  ;;  %v5319_v62 = vpop.f32.mrb[36].mxu1  ;;  %v5119_v13 = vpop.f32.mrb[36].mxu0  ;;  %v3101_v54 = vmul.f32 %v7500_v6, %v6848_v35  ;;  %v7518_v15 = vld [vmem:[%s5917_s9 + $0x308] sm:$0xff]  ;;  %3226 = vst.msk [vmem:[%s5922_s12 + $0x2e0] sm:$0xff] %vm699_vm0, %v3098_v46  ;;  %v5735_v6 = vld [vmem:[%s5917_s9 + $0x190] sm:$0xff] }
 0x13c   : > { %v2915_v45 = vmul.f32 %v5720_v9, %v5319_v62  ;;  %v2419_v50 = vpop.f32.mrb[37].mxu1  ;;  %v1330_v51 = vpop.f32.mrb[37].mxu0  ;;  %8420 = vst [vmem:[#allocation48_spill] sm:$0xff] %v7518_v15  ;;  %v3103_v35 = vmul.f32 %v7518_v15, %v8421_v27  ;;  %v7533_v9 = vld [vmem:[%s5917_s9 + $0x300] sm:$0xff]  ;;  %3227 = vst.msk [vmem:[%s5922_s12 + $0x2e8] sm:$0xff] %vm699_vm0, %v3099_v26  ;;  %v8453_v15 = vpack.c.bf16 %v7452_v0, %v7454_v58 }
 0x13d   : > { %v2914_v62 = vmul.f32 %v5721_v33, %v2419_v50  ;;  %8422 = vst [vmem:[#allocation15_spill] sm:$0xff] %v7533_v9  ;;  %3229 = vst.msk [vmem:[%s5922_s12 + $0x2f8] sm:$0xff] %vm699_vm0, %v3101_v54  ;;  %v3102_v25 = vmul.f32 %v7533_v9, %v8423_v23  ;;  %v5723_v54 = vld [vmem:[%s5917_s9 + $0x130] sm:$0xff]  ;;  %v7562_v23 = vld [vmem:[%s5917_s9 + $0x318] sm:$0xff] }
 0x13e   : > { %3228 = vst.msk [vmem:[%s5922_s12 + $0x2f0] sm:$0xff] %vm699_vm0, %v3100_v47  ;;  %3231 = vst.msk [vmem:[%s5922_s12 + $0x308] sm:$0xff] %vm699_vm0, %v3103_v35  ;;  %v8451_v9 = vld [vmem:[#allocation27_spill] sm:$0xff] }
 0x13f   : > { %5500 = vmatpush3.bf16.xpose.msk.msra.mxu0 %vm7238_vm1, %v8418_v60  ;;  %v7535_v60 = vmul.f32 %v5119_v13, %v2915_v45  ;;  %v5322_v55 = vpop.f32.mrb[38].mxu1  ;;  %v5122_v50 = vpop.f32.mrb[38].mxu0  ;;  %v5722_v13 = vld [vmem:[%s5917_s9 + $0x138] sm:$0xff]  ;;  %3230 = vst.msk [vmem:[%s5922_s12 + $0x300] sm:$0xff] %vm699_vm0, %v3102_v25  ;;  %8424 = vst [vmem:[#allocation14_spill] sm:$0xff] %v7562_v23  ;;  %v5724_v25 = vld [vmem:[%s5917_s9 + $0x148] sm:$0xff] }
 0x140   : > { %5503 = vmatprep.subr.msk.bf16.mxu0 %vm7238_vm1, %v5501_v3  ;;  %v7545_v3 = vmul.f32 %v2914_v62, %v1330_v51  ;;  %v2917_v45 = vmul.f32 %v5722_v13, %v5322_v55  ;;  %v2429_v26 = vpop.f32.mrb[39].mxu1  ;;  %v1340_v46 = vpop.f32.mrb[39].mxu0  ;;  %v7565_v55 = vld [vmem:[%s5917_s9 + $0x310] sm:$0xff]  ;;  %v7568_v13 = vld [vmem:[%s5917_s9 + $0x328] sm:$0xff] }
 0x141   : > { %v2916_v33 = vmul.f32 %v5723_v54, %v2429_v26  ;;  %8425 = vst [vmem:[#allocation49_spill] sm:$0xff] %v7565_v55  ;;  %8426 = vst [vmem:[#allocation50_spill] sm:$0xff] %v7568_v13  ;;  %v8429_v54 = vld [vmem:[#allocation17_spill] sm:$0xff]  ;;  %v3104_v39 = vmul.f32 %v7565_v55, %v8430_v24  ;;  %v8435_v24 = vld [vmem:[#allocation18_spill] sm:$0xff] }
 0x142   : > { %v7557_v62 = vmul.f32 %v5122_v50, %v2917_v45  ;;  %v8427_v50 = vld [vmem:[#allocation40_spill] sm:$0xff] }
 0x143   : > { %v7559_v47 = vmul.f32 %v2916_v33, %v1340_v46  ;;  %v5325_v27 = vpop.f32.mrb[40].mxu1  ;;  %v5125_v35 = vpop.f32.mrb[40].mxu0  ;;  %v8428_v45 = vpack.c.bf16 %v7123_v18, %v8427_v50  ;;  %v3105_v33 = vmul.f32 %v7562_v23, %v8429_v54  ;;  %v7586_v18 = vld [vmem:[%s5917_s9 + $0x338] sm:$0xff]  ;;  %v8434_v54 = vpack.c.bf16 %v7440_v41, %v7444_v11  ;;  %v7601_v23 = vld [vmem:[%s5917_s9 + $0x330] sm:$0xff]  ;;  %v7604_v50 = vld [vmem:[%s5917_s9 + $0x348] sm:$0xff]  ;;  %3232 = vst.msk [vmem:[%s5922_s12 + $0x310] sm:$0xff] %vm699_vm0, %v3104_v39 }
 0x144   : > { %v2919_v51 = vmul.f32 %v5724_v25, %v5325_v27  ;;  %v2439_v26 = vpop.f32.mrb[41].mxu1  ;;  %v1350_v46 = vpop.f32.mrb[41].mxu0  ;;  %v3107_v27 = vmul.f32 %v7568_v13, %v8431_v32  ;;  %v7583_v25 = vld [vmem:[%s5917_s9 + $0x320] sm:$0xff]  ;;  %8433 = vst [vmem:[#allocation17_spill] sm:$0xff] %v7586_v18  ;;  %8437 = vst [vmem:[#allocation16_spill] sm:$0xff] %v7601_v23  ;;  %v8440_v41 = vld [vmem:[#allocation20_spill] sm:$0xff] }
 0x145   : > { %8432 = vst [vmem:[#allocation40_spill] sm:$0xff] %v7583_v25  ;;  %v3106_v55 = vmul.f32 %v7583_v25, %v8435_v24  ;;  %v8436_v32 = vld [vmem:[#allocation21_spill] sm:$0xff]  ;;  %8438 = vst [vmem:[#allocation19_spill] sm:$0xff] %v7604_v50  ;;  %v3108_v11 = vmul.f32 %v7601_v23, %v8440_v41  ;;  %v5726_v39 = vld [vmem:[%s5917_s9 + $0x158] sm:$0xff] }
 0x146   : > { %v3109_v13 = vmul.f32 %v7586_v18, %v8436_v32  ;;  %3233 = vst.msk [vmem:[%s5922_s12 + $0x318] sm:$0xff] %vm699_vm0, %v3105_v33  ;;  %3235 = vst.msk [vmem:[%s5922_s12 + $0x328] sm:$0xff] %vm699_vm0, %v3107_v27  ;;  %v8442_v32 = vld [vmem:[#allocation22_spill] sm:$0xff] }
 0x147   : > { %5506 = vmatpush3.bf16.xpose.msk.msra.mxu0 %vm7238_vm1, %v8428_v45  ;;  %v5725_v45 = vld [vmem:[%s5917_s9 + $0x140] sm:$0xff]  ;;  %v5328_v18 = vpop.f32.mrb[42].mxu1  ;;  %v5128_v33 = vpop.f32.mrb[42].mxu0  ;;  %3234 = vst.msk [vmem:[%s5922_s12 + $0x320] sm:$0xff] %vm699_vm0, %v3106_v55  ;;  %3236 = vst.msk [vmem:[%s5922_s12 + $0x330] sm:$0xff] %vm699_vm0, %v3108_v11  ;;  %v5727_v55 = vld [vmem:[%s5917_s9 + $0x150] sm:$0xff] }
 0x148   : > { %v2918_v31 = vmul.f32 %v5725_v45, %v2439_v26  ;;  %5509 = vmatprep.subr.msk.bf16.mxu0 %vm7238_vm1, %v8434_v54  ;;  %v7607_v26 = vld [vmem:[%s5917_s9 + $0x340] sm:$0xff]  ;;  %v7609_v45 = vmul.f32 %v5125_v35, %v2919_v51  ;;  %v8441_v54 = vld [vmem:[#allocation23_spill] sm:$0xff]  ;;  %3237 = vst.msk [vmem:[%s5922_s12 + $0x338] sm:$0xff] %vm699_vm0, %v3109_v13  ;;  %v2921_v27 = vmul.f32 %v5726_v39, %v5328_v18  ;;  %v2449_v41 = vpop.f32.mrb[43].mxu1  ;;  %v1360_v23 = vpop.f32.mrb[43].mxu0  ;;  %v7644_v39 = vld [vmem:[%s5917_s9 + $0x358] sm:$0xff] }
 0x149   : > { %8439 = vst [vmem:[#allocation18_spill] sm:$0xff] %v7607_v26  ;;  %v3111_v24 = vmul.f32 %v7604_v50, %v8441_v54  ;;  %v3110_v51 = vmul.f32 %v7607_v26, %v8442_v32  ;;  %8443 = vst [vmem:[#allocation21_spill] sm:$0xff] %v7644_v39  ;;  %v7647_v11 = vld [vmem:[%s5917_s9 + $0x350] sm:$0xff]  ;;  %v8450_v50 = vld [vmem:[#allocation24_spill] sm:$0xff] }
 0x14a   : > { %v7623_v35 = vmul.f32 %v2918_v31, %v1350_v46  ;;  %v2920_v46 = vmul.f32 %v5727_v55, %v2449_v41  ;;  %v7639_v13 = vmul.f32 %v5128_v33, %v2921_v27  ;;  %8444 = vst [vmem:[#allocation20_spill] sm:$0xff] %v7647_v11  ;;  %v8446_v55 = vld [vmem:[#allocation7_spill] sm:$0xff]  ;;  %v8447_v33 = vld [vmem:[#allocation42_spill] sm:$0xff]  ;;  %v3112_v25 = vmul.f32 %v7647_v11, %v8450_v50 }
 0x14b   : > { %3239 = vst.msk [vmem:[%s5922_s12 + $0x348] sm:$0xff] %vm699_vm0, %v3111_v24  ;;  %3238 = vst.msk [vmem:[%s5922_s12 + $0x340] sm:$0xff] %vm699_vm0, %v3110_v51  ;;  %v5331_v18 = vpop.f32.mrb[44].mxu1  ;;  %v5131_v32 = vpop.f32.mrb[44].mxu0  ;;  %v7650_v24 = vld [vmem:[%s5917_s9 + $0x368] sm:$0xff]  ;;  %v8448_v27 = vpack.c.bf16 %v8446_v55, %v8447_v33  ;;  %v5729_v33 = vld [vmem:[%s5917_s9 + $0x160] sm:$0xff] }
 0x14c   : > { %v7641_v54 = vmul.f32 %v2920_v46, %v1360_v23  ;;  %8445 = vst [vmem:[#allocation23_spill] sm:$0xff] %v7650_v24  ;;  %v5728_v51 = vld [vmem:[%s5917_s9 + $0x168] sm:$0xff]  ;;  %v2459_v41 = vpop.f32.mrb[45].mxu1  ;;  %v1370_v23 = vpop.f32.mrb[45].mxu0  ;;  %v8449_v46 = vld [vmem:[#allocation25_spill] sm:$0xff]  ;;  %3240 = vst.msk [vmem:[%s5922_s12 + $0x350] sm:$0xff] %vm699_vm0, %v3112_v25 }
 0x14d   : > { %v2923_v31 = vmul.f32 %v5728_v51, %v5331_v18  ;;  %v3113_v26 = vmul.f32 %v7644_v39, %v8449_v46  ;;  %v3115_v18 = vmul.f32 %v7650_v24, %v8451_v9  ;;  %v7665_v51 = vld [vmem:[%s5917_s9 + $0x360] sm:$0xff]  ;;  %v8454_v46 = vld [vmem:[#allocation26_spill] sm:$0xff] }
 0x14e   : > { %8452 = vst [vmem:[#allocation22_spill] sm:$0xff] %v7665_v51  ;;  %v3114_v50 = vmul.f32 %v7665_v51, %v8454_v46 }
 0x14f   : > { %5512 = vmatpush3.bf16.xpose.msk.msra.mxu0 %vm7238_vm1, %v8448_v27  ;;  %v2922_v27 = vmul.f32 %v5729_v33, %v2459_v41  ;;  %v7677_v11 = vmul.f32 %v5131_v32, %v2923_v31  ;;  %3241 = vst.msk [vmem:[%s5922_s12 + $0x358] sm:$0xff] %vm699_vm0, %v3113_v26  ;;  %3243 = vst.msk [vmem:[%s5922_s12 + $0x368] sm:$0xff] %vm699_vm0, %v3115_v18  ;;  %v5334_v0 = vpop.f32.mrb[46].mxu1  ;;  %v5134_v58 = vpop.f32.mrb[46].mxu0  ;;  %v5730_v41 = vld [vmem:[%s5917_s9 + $0x178] sm:$0xff]  ;;  %v8456_v33 = vld [vmem:[#allocation29_spill] sm:$0xff] }
 0x150   : > { %5515 = vmatprep.subr.msk.bf16.mxu0 %vm7238_vm1, %v8453_v15  ;;  %3242 = vst.msk [vmem:[%s5922_s12 + $0x360] sm:$0xff] %vm699_vm0, %v3114_v50  ;;  %v7690_v15 = vld [vmem:[%s5917_s9 + $0x378] sm:$0xff]  ;;  %v2925_v31 = vmul.f32 %v5730_v41, %v5334_v0  ;;  %v2469_v32 = vpop.f32.mrb[47].mxu1  ;;  %v1380_v26 = vpop.f32.mrb[47].mxu0  ;;  %v7696_v18 = vld [vmem:[%s5917_s9 + $0x370] sm:$0xff] }
 0x151   : > { %v7685_v9 = vmul.f32 %v2922_v27, %v1370_v23  ;;  %8455 = vst [vmem:[#allocation7_spill] sm:$0xff] %v7690_v15  ;;  %v3117_v25 = vmul.f32 %v7690_v15, %v8456_v33  ;;  %8457 = vst [vmem:[#allocation42_spill] sm:$0xff] %v7696_v18  ;;  %v5731_v27 = vld [vmem:[%s5917_s9 + $0x170] sm:$0xff]  ;;  %v8458_v50 = vld [vmem:[#allocation28_spill] sm:$0xff] }
 0x152   : > { %v2924_v46 = vmul.f32 %v5731_v27, %v2469_v32  ;;  %v3116_v55 = vmul.f32 %v7696_v18, %v8458_v50  ;;  %v7703_v51 = vmul.f32 %v5134_v58, %v2925_v31  ;;  %v7712_v15 = vld [vmem:[%s5917_s9 + $0x388] sm:$0xff]  ;;  %v8460_v58 = vpack.c.bf16 %v7167_v37, %v7173_v17  ;;  %v5733_v50 = vld [vmem:[%s5917_s9 + $0x180] sm:$0xff] }
 0x153   : > { %3245 = vst.msk [vmem:[%s5922_s12 + $0x378] sm:$0xff] %vm699_vm0, %v3117_v25  ;;  %v5337_v41 = vpop.f32.mrb[48].mxu1  ;;  %v5137_v33 = vpop.f32.mrb[48].mxu0  ;;  %8459 = vst [vmem:[#allocation25_spill] sm:$0xff] %v7712_v15  ;;  %v5732_v23 = vld [vmem:[%s5917_s9 + $0x188] sm:$0xff] }
 0x154   : > { %v7707_v0 = vmul.f32 %v2924_v46, %v1380_v26  ;;  %3244 = vst.msk [vmem:[%s5922_s12 + $0x370] sm:$0xff] %vm699_vm0, %v3116_v55  ;;  %v2927_v32 = vmul.f32 %v5732_v23, %v5337_v41  ;;  %v2479_v27 = vpop.f32.mrb[49].mxu1  ;;  %v1390_v31 = vpop.f32.mrb[49].mxu0  ;;  %v8461_v26 = vld [vmem:[#allocation31_spill] sm:$0xff]  ;;  %v7723_v46 = vld [vmem:[%s5917_s9 + $0x380] sm:$0xff]  ;;  %v8462_v41 = vld [vmem:[#allocation30_spill] sm:$0xff] }
 0x155   : > { %v3119_v25 = vmul.f32 %v7712_v15, %v8461_v26  ;;  %v2926_v23 = vmul.f32 %v5733_v50, %v2479_v27  ;;  %v3118_v18 = vmul.f32 %v7723_v46, %v8462_v41  ;;  %v5734_v26 = vld [vmem:[%s5917_s9 + $0x198] sm:$0xff]  ;;  %v7746_v41 = vld [vmem:[%s5917_s9 + $0x390] sm:$0xff] }
 0x156   : > { %v3311_v17 = vmul.f32 %v5137_v33, %v2927_v32  ;;  %v7737_v50 = vld [vmem:[%s5917_s9 + $0x398] sm:$0xff]  ;;  %v8463_v32 = vld [vmem:[#allocation33_spill] sm:$0xff] }
 0x157   : > { %5518 = vmatpush3.bf16.xpose.msk.msra.mxu0 %vm7238_vm1, %v8460_v58  ;;  %3247 = vst.msk [vmem:[%s5922_s12 + $0x388] sm:$0xff] %vm699_vm0, %v3119_v25  ;;  %v3310_v37 = vmul.f32 %v2926_v23, %v1390_v31  ;;  %v5340_v58 = vpop.f32.mrb[50].mxu1  ;;  %v5140_v24 = vpop.f32.mrb[50].mxu0  ;;  %3246 = vst.msk [vmem:[%s5922_s12 + $0x380] sm:$0xff] %vm699_vm0, %v3118_v18  ;;  %v3121_v31 = vmul.f32 %v7737_v50, %v8463_v32 }
 0x158   : > { %v2929_v15 = vmul.f32 %v5734_v26, %v5340_v58  ;;  %v2489_v39 = vpop.f32.mrb[51].mxu1  ;;  %v1400_v55 = vpop.f32.mrb[51].mxu0  ;;  %v7762_v58 = vld [vmem:[%s5917_s9 + $0x3a8] sm:$0xff] }
 0x159   : > { %v5519_v4 = vpack.c.bf16 %v3311_v17, %v3310_v37  ;;  %v2928_v27 = vmul.f32 %v5735_v6, %v2489_v39  ;;  %v8464_v6 = vpack.c.bf16 %v7477_v53, %v7481_v19  ;;  %v5736_v39 = vld [vmem:[%s5917_s9 + $0x1a8] sm:$0xff]  ;;  %3249 = vst.msk [vmem:[%s5922_s12 + $0x398] sm:$0xff] %vm699_vm0, %v3121_v31  ;;  %v5737_v53 = vld [vmem:[%s5917_s9 + $0x1a0] sm:$0xff]  ;;  %8466 = vst [vmem:[#allocation24_spill] sm:$0xff] %v7762_v58 }
 0x15a   : > { %v3313_v33 = vmul.f32 %v5140_v24, %v2929_v15 }
 0x15b   : > { %5521 = vmatprep.subr.msk.bf16.mxu1 %vm7238_vm1, %v5519_v4  ;;  %v3312_v18 = vmul.f32 %v2928_v27, %v1400_v55  ;;  %v5343_v25 = vpop.f32.mrb[52].mxu1  ;;  %v5143_v23 = vpop.f32.mrb[52].mxu0  ;;  %v8465_v55 = vld [vmem:[#allocation32_spill] sm:$0xff]  ;;  %v8467_v27 = vld [vmem:[#allocation37_spill] sm:$0xff] }
 0x15c   : > { %5524 = vmatpush3.bf16.xpose.msk.msra.mxu1 %vm7238_vm1, %v8464_v6  ;;  %v2931_v24 = vmul.f32 %v5736_v39, %v5343_v25  ;;  %v2499_v15 = vpop.f32.mrb[53].mxu1  ;;  %v1410_v4 = vpop.f32.mrb[53].mxu0  ;;  %v3120_v17 = vmul.f32 %v7746_v41, %v8465_v55  ;;  %v3123_v32 = vmul.f32 %v7762_v58, %v8467_v27 }
 0x15d   : > { %v5525_v37 = vpack.c.bf16 %v3313_v33, %v3312_v18  ;;  %v2930_v19 = vmul.f32 %v5737_v53, %v2499_v15  ;;  %v7771_v33 = vld [vmem:[%s5917_s9 + $0x3a0] sm:$0xff]  ;;  %v5738_v18 = vld [vmem:[%s5917_s9 + $0x1b8] sm:$0xff]  ;;  %v5739_v53 = vld [vmem:[%s5917_s9 + $0x1b0] sm:$0xff] }
 0x15e   : > { %4952 = vmatmul.mubr.msk.f32.vlgmr.msra.gmra.mrb[128].mxu0 %vm699_vm0, %v7333_v38  ;;  %v3315_v26 = vmul.f32 %v5143_v23, %v2931_v24  ;;  %3248 = vst.msk [vmem:[%s5922_s12 + $0x390] sm:$0xff] %vm699_vm0, %v3120_v17  ;;  %3251 = vst.msk [vmem:[%s5922_s12 + $0x3a8] sm:$0xff] %vm699_vm0, %v3123_v32  ;;  %v8468_v23 = vld [vmem:[#allocation34_spill] sm:$0xff] }
 0x15f   : > { %5019 = vmatprep.mubr.msk.f32.mxu0 %vm699_vm0, %v7333_v38  ;;  %5527 = vmatprep.subr.msk.bf16.mxu1 %vm7238_vm1, %v5525_v37  ;;  %v3314_v31 = vmul.f32 %v2930_v19, %v1410_v4  ;;  %v5346_v25 = vpop.f32.mrb[54].mxu1  ;;  %v5146_v6 = vpop.f32.mrb[54].mxu0  ;;  %v3122_v24 = vmul.f32 %v7771_v33, %v8468_v23  ;;  %v5740_v32 = vld [vmem:[%s5917_s9 + $0x1c8] sm:$0xff]  ;;  %v7796_v23 = vld [vmem:[%s5917_s9 + $0x3b0] sm:$0xff] }
 0x160   : > { %v2933_v39 = vmul.f32 %v5738_v18, %v5346_v25  ;;  %v2509_v15 = vpop.f32.mrb[55].mxu1  ;;  %v1420_v55 = vpop.f32.mrb[55].mxu0  ;;  %v8469_v25 = vpack.c.bf16 %v7489_v52, %v7491_v44  ;;  %v8470_v52 = vld [vmem:[#allocation5_spill] sm:$0xff]  ;;  %8471 = vst [vmem:[#allocation27_spill] sm:$0xff] %v7796_v23 }
 0x161   : > { %v5531_v17 = vpack.c.bf16 %v3315_v26, %v3314_v31  ;;  %v2932_v37 = vmul.f32 %v5739_v53, %v2509_v15  ;;  %3250 = vst.msk [vmem:[%s5922_s12 + $0x3a0] sm:$0xff] %vm699_vm0, %v3122_v24  ;;  %v7788_v15 = vld [vmem:[%s5917_s9 + $0x3b8] sm:$0xff]  ;;  %v8472_v53 = vld [vmem:[#allocation38_spill] sm:$0xff] }
 0x162   : > { %v3317_v4 = vmul.f32 %v5146_v6, %v2933_v39  ;;  %v5741_v39 = vld [vmem:[%s5917_s9 + $0x1c0] sm:$0xff]  ;;  %v3125_v44 = vmul.f32 %v7788_v15, %v8470_v52  ;;  %v5743_v52 = vld [vmem:[%s5917_s9 + $0x1d0] sm:$0xff] }
 0x163   : > { %v3316_v19 = vmul.f32 %v2932_v37, %v1420_v55  ;;  %v5349_v27 = vpop.f32.mrb[56].mxu1  ;;  %v5149_v58 = vpop.f32.mrb[56].mxu0  ;;  %v3124_v37 = vmul.f32 %v7796_v23, %v8472_v53 }
 0x164   : > { %5530 = vmatpush3.bf16.xpose.msk.msra.mxu1 %vm7238_vm1, %v8469_v25  ;;  %v2935_v18 = vmul.f32 %v5740_v32, %v5349_v27  ;;  %v2519_v26 = vpop.f32.mrb[57].mxu1  ;;  %v1430_v31 = vpop.f32.mrb[57].mxu0  ;;  %3253 = vst.msk [vmem:[%s5922_s12 + $0x3b8] sm:$0xff] %vm699_vm0, %v3125_v44  ;;  %v8473_v44 = vpack.c.bf16 %v7535_v60, %v7545_v3  ;;  %v8475_v60 = vld [vmem:[#allocation6_spill] sm:$0xff] }
 0x165   : > { %5533 = vmatprep.subr.msk.bf16.mxu1 %vm7238_vm1, %v5531_v17  ;;  %v5537_v6 = vpack.c.bf16 %v3317_v4, %v3316_v19  ;;  %v2934_v55 = vmul.f32 %v5741_v39, %v2519_v26  ;;  %v5742_v17 = vld [vmem:[%s5917_s9 + $0x1d8] sm:$0xff]  ;;  %3252 = vst.msk [vmem:[%s5922_s12 + $0x3b0] sm:$0xff] %vm699_vm0, %v3124_v37 }
 0x166   : > { %v3319_v24 = vmul.f32 %v5149_v58, %v2935_v18 }
 0x167   : > { %v3318_v27 = vmul.f32 %v2934_v55, %v1430_v31  ;;  %v5352_v25 = vpop.f32.mrb[58].mxu1  ;;  %v5152_v32 = vpop.f32.mrb[58].mxu0 }
 0x168   : > { %v2937_v4 = vmul.f32 %v5742_v17, %v5352_v25  ;;  %v2529_v19 = vpop.f32.mrb[59].mxu1  ;;  %v1440_v26 = vpop.f32.mrb[59].mxu0  ;;  %v5744_v25 = vld [vmem:[%s5917_s9 + $0x1e8] sm:$0xff] }
 0x169   : > { %v5543_v39 = vpack.c.bf16 %v3319_v24, %v3318_v27  ;;  %v2936_v58 = vmul.f32 %v5743_v52, %v2529_v19  ;;  %v7817_v27 = vld [vmem:[%s5917_s9 + $0x3c8] sm:$0xff] }
 0x16a   : > { %v7806_v18 = vmul.f32 %v5152_v32, %v2937_v4  ;;  %8474 = vst [vmem:[#allocation26_spill] sm:$0xff] %v7817_v27  ;;  %v5745_v4 = vld [vmem:[%s5917_s9 + $0x1e0] sm:$0xff]  ;;  %v3127_v3 = vmul.f32 %v7817_v27, %v8475_v60 }
 0x16b   : > { %v7808_v31 = vmul.f32 %v2936_v58, %v1440_v26  ;;  %v5355_v55 = vpop.f32.mrb[60].mxu1  ;;  %v5155_v53 = vpop.f32.mrb[60].mxu0  ;;  %v7827_v26 = vld [vmem:[%s5917_s9 + $0x3c0] sm:$0xff]  ;;  %v8477_v58 = vld [vmem:[#allocation39_spill] sm:$0xff] }
 0x16c   : > { %5536 = vmatpush3.bf16.xpose.msk.msra.mxu1 %vm7238_vm1, %v8473_v44  ;;  %v2939_v37 = vmul.f32 %v5744_v25, %v5355_v55  ;;  %v2539_v17 = vpop.f32.mrb[61].mxu1  ;;  %v1450_v24 = vpop.f32.mrb[61].mxu0  ;;  %8476 = vst [vmem:[#allocation29_spill] sm:$0xff] %v7827_v26  ;;  %v3126_v55 = vmul.f32 %v7827_v26, %v8477_v58  ;;  %3255 = vst.msk [vmem:[%s5922_s12 + $0x3c8] sm:$0xff] %vm699_vm0, %v3127_v3  ;;  %v8480_v3 = vpack.c.bf16 %v7557_v62, %v7559_v47  ;;  %v8484_v62 = vld [vmem:[#allocation8_spill] sm:$0xff] }
 0x16d   : > { %5539 = vmatprep.subr.msk.bf16.mxu1 %vm7238_vm1, %v5537_v6  ;;  %v5549_v32 = vpack.c.bf16 %v7806_v18, %v7808_v31  ;;  %v2938_v19 = vmul.f32 %v5745_v4, %v2539_v17  ;;  %v8478_v6 = vld [vmem:[#allocation35_spill] sm:$0xff] }
 0x16e   : > { %v7829_v52 = vmul.f32 %v5155_v53, %v2939_v37  ;;  %3254 = vst.msk [vmem:[%s5922_s12 + $0x3c0] sm:$0xff] %vm699_vm0, %v3126_v55  ;;  %v8479_v37 = vld [vmem:[#allocation36_spill] sm:$0xff]  ;;  %v8481_v55 = vld [vmem:[#allocation43_spill] sm:$0xff] }
 0x16f   : > { %v7833_v44 = vmul.f32 %v2938_v19, %v1450_v24  ;;  %v5358_v25 = vpop.f32.mrb[62].mxu1  ;;  %v5158_v23 = vpop.f32.mrb[62].mxu0  ;;  %v7854_v53 = vld [vmem:[%s5917_s9 + $0x3d8] sm:$0xff] }
 0x170   : > { %v2941_v18 = vmul.f32 %v5358_v25, %v8478_v6  ;;  %v2549_v31 = vpop.f32.mrb[63].mxu1  ;;  %v1460_v17 = vpop.f32.mrb[63].mxu0  ;;  %8482 = vst [vmem:[#allocation28_spill] sm:$0xff] %v7854_v53  ;;  %v3129_v47 = vmul.f32 %v7854_v53, %v8484_v62 }
 0x171   : > { %v2940_v4 = vmul.f32 %v2549_v31, %v8479_v37 }
 0x172   : > { %v7843_v60 = vmul.f32 %v5158_v23, %v2941_v18  ;;  %v8483_v18 = vld [vmem:[#allocation44_spill] sm:$0xff]  ;;  %3257 = vst.msk [vmem:[%s5922_s12 + $0x3d8] sm:$0xff] %vm699_vm0, %v3129_v47  ;;  %v8489_v47 = vpack.c.bf16 %v7609_v45, %v7623_v35  ;;  %v7901_v35 = vld [vmem:[%s5917_s9 + $0x3e0] sm:$0xff] }
 0x173   : > { %v7845_v24 = vmul.f32 %v2940_v4, %v1460_v17  ;;  %v5361_v19 = vpop.f32.mrb[64].mxu1  ;;  %v5161_v58 = vpop.f32.mrb[64].mxu0  ;;  %v7864_v17 = vld [vmem:[%s5917_s9 + $0x3d0] sm:$0xff]  ;;  %v8486_v4 = vld [vmem:[#allocation41_spill] sm:$0xff] }
 0x174   : > { %5542 = vmatpush3.bf16.xpose.msk.msra.mxu1 %vm7238_vm1, %v8480_v3  ;;  %v2943_v25 = vmul.f32 %v5361_v19, %v8481_v55  ;;  %v2559_v6 = vpop.f32.mrb[65].mxu1  ;;  %v1470_v26 = vpop.f32.mrb[65].mxu0  ;;  %8485 = vst [vmem:[#allocation31_spill] sm:$0xff] %v7864_v17  ;;  %v3128_v19 = vmul.f32 %v7864_v17, %v8486_v4 }
 0x175   : > { %5545 = vmatprep.subr.msk.bf16.mxu1 %vm7238_vm1, %v5543_v39  ;;  %v2942_v31 = vmul.f32 %v2559_v6, %v8483_v18  ;;  %v8487_v39 = vld [vmem:[#allocation10_spill] sm:$0xff] }
 0x176   : > { %v7866_v37 = vmul.f32 %v5161_v58, %v2943_v25  ;;  %3256 = vst.msk [vmem:[%s5922_s12 + $0x3d0] sm:$0xff] %vm699_vm0, %v3128_v19  ;;  %v8488_v25 = vld [vmem:[#allocation11_spill] sm:$0xff]  ;;  %v8490_v19 = vld [vmem:[#allocation45_spill] sm:$0xff]  ;;  %v7891_v58 = vld [vmem:[%s5917_s9 + $0x3e8] sm:$0xff] }
 0x177   : > { %v5364_v3 = vpop.f32.mrb[66].mxu1  ;;  %v7870_v55 = vmul.f32 %v2942_v31, %v1470_v26  ;;  %v5164_v27 = vpop.f32.mrb[66].mxu0  ;;  %v3131_v45 = vmul.f32 %v7891_v58, %v7176_v20  ;;  %v7928_v20 = vld [vmem:[%s5917_s9 + $0x3f8] sm:$0xff] }
 0x178   : > { %v2945_v23 = vmul.f32 %v5364_v3, %v8487_v39  ;;  %v2569_v6 = vpop.f32.mrb[67].mxu1  ;;  %v1480_v18 = vpop.f32.mrb[67].mxu0 }
 0x179   : > { %v2944_v62 = vmul.f32 %v2569_v6, %v8488_v25  ;;  %v8492_v25 = vld [vmem:[#allocation9_spill] sm:$0xff]  ;;  %3259 = vst.msk [vmem:[%s5922_s12 + $0x3e8] sm:$0xff] %vm699_vm0, %v3131_v45  ;;  %v8493_v45 = vpack.c.bf16 %v7639_v13, %v7641_v54 }
 0x17a   : > { %v7880_v4 = vmul.f32 %v5164_v27, %v2945_v23  ;;  %v8491_v23 = vld [vmem:[#allocation46_spill] sm:$0xff] }
 0x17b   : > { %v5367_v26 = vpop.f32.mrb[68].mxu1  ;;  %v7882_v31 = vmul.f32 %v2944_v62, %v1480_v18  ;;  %v5167_v17 = vpop.f32.mrb[68].mxu0  ;;  %v3130_v62 = vmul.f32 %v7901_v35, %v8492_v25 }
 0x17c   : > { %5548 = vmatpush3.bf16.xpose.msk.msra.mxu1 %vm7238_vm1, %v8489_v47  ;;  %v2947_v3 = vmul.f32 %v5367_v26, %v8490_v19  ;;  %v2579_v39 = vpop.f32.mrb[69].mxu1  ;;  %v1490_v53 = vpop.f32.mrb[69].mxu0 }
 0x17d   : > { %5551 = vmatprep.subr.msk.bf16.mxu1 %vm7238_vm1, %v5549_v32  ;;  %v2946_v6 = vmul.f32 %v2579_v39, %v8491_v23  ;;  %3258 = vst.msk [vmem:[%s5922_s12 + $0x3e0] sm:$0xff] %vm699_vm0, %v3130_v62 }
 0x17e   : > { %v7903_v18 = vmul.f32 %v5167_v17, %v2947_v3 }
 0x17f   : > { %v5370_v26 = vpop.f32.mrb[70].mxu1  ;;  %v7907_v47 = vmul.f32 %v2946_v6, %v1490_v53  ;;  %v5170_v19 = vpop.f32.mrb[70].mxu0 }
 0x180   : > { %v2949_v32 = vmul.f32 %v5370_v26, %v7228_v63  ;;  %v2589_v39 = vpop.f32.mrb[71].mxu1  ;;  %v1500_v23 = vpop.f32.mrb[71].mxu0  ;;  %v8494_v63 = vld [vmem:[#allocation47_spill] sm:$0xff] }
 0x181   : > { %v2948_v17 = vmul.f32 %v2589_v39, %v7231_v61  ;;  %v8495_v61 = vpack.c.bf16 %v7829_v52, %v7833_v44 }
 0x182   : > { %v7917_v3 = vmul.f32 %v5170_v19, %v2949_v32  ;;  %v3133_v19 = vmul.f32 %v7928_v20, %v7261_v48  ;;  %v7941_v32 = vld [vmem:[%s5917_s9 + $0x3f0] sm:$0xff]  ;;  %s4136_s9 = sshll.u32 %s278_s28, 4  ;;  %s8228_s9 = int_to_ptr.vmem [resolvable:$true] %s4136_s9 }
 0x183   : > { %v5373_v53 = vpop.f32.mrb[72].mxu1  ;;  %v7919_v6 = vmul.f32 %v2948_v17, %v1500_v23  ;;  %v5173_v25 = vpop.f32.mrb[72].mxu0  ;;  %v3132_v23 = vmul.f32 %v7941_v32, %v7190_v14  ;;  %s5747_s14 = scalar_lea.vmem %s8228_s9, 256  ;;  %p5754_p0 = scmp.lt.s32.totalorder %s8228_s9, %s5752_s15 }
 0x184   : > { %5554 = vmatpush3.bf16.xpose.msk.msra.mxu1 %vm7238_vm1, %v8493_v45  ;;  %v2951_v62 = vmul.f32 %v5373_v53, %v8494_v63  ;;  %v2599_v26 = vpop.f32.mrb[73].mxu1  ;;  %v1510_v27 = vpop.f32.mrb[73].mxu0  ;;  %3261 = vst.msk [vmem:[%s5922_s12 + $0x3f8] sm:$0xff] %vm699_vm0, %v3133_v19  ;;  %v8497_v19 = vpack.c.bf16 %v7843_v60, %v7845_v24  ;;  %p5748_p11 = scmp.ne.s32.totalorder %s8228_s9, %s5747_s14  ;;  %p5755_p1 = scmp.lt.s32.totalorder %s5753_s16, %s5747_s14 }
 0x185   : > { %5557 = vmatprep.subr.msk.bf16.mxu1 %vm7238_vm1, %v8495_v61  ;;  %v5588_v13 = vpack.c.bf16 %v7917_v3, %v7919_v6  ;;  %v2950_v54 = vmul.f32 %v2599_v26, %v7251_v7  ;;  %3260 = vst.msk [vmem:[%s5922_s12 + $0x3f0] sm:$0xff] %vm699_vm0, %v3132_v23  ;;  %v8496_v26 = vpack.c.bf16 %v7677_v11, %v7685_v9  ;;  %v8506_v6 = vld [vmem:[#allocation14_spill] sm:$0xff]  ;;  %s8226_s12 = scalar_lea.hbm %s8273_s5, %s4654_s29 }
 0x186   : > { %v7943_v39 = vmul.f32 %v5173_v25, %v2951_v62  ;;  %p5749_p12 = pnand %p5748_p11, %p5886_p5  ;;  %p5756_p2 = por %p5755_p1, %p5754_p0 }
 0x187   : > { %v5376_v17 = vpop.f32.mrb[74].mxu1  ;;  %v7947_v52 = vmul.f32 %v2950_v54, %v1510_v27  ;;  %v5176_v44 = vpop.f32.mrb[74].mxu0 }
 0x188   : > { %v2953_v53 = vmul.f32 %v5376_v17, %v7254_v12  ;;  %v2609_v45 = vpop.f32.mrb[75].mxu1  ;;  %v1520_v7 = vpop.f32.mrb[75].mxu0  ;;  %p5750_p13 = pneg %p5749_p12 }
 0x189   : > { %v5594_v48 = vpack.c.bf16 %v7943_v39, %v7947_v52  ;;  %v2952_v25 = vmul.f32 %v2609_v45, %v7275_v30  ;;  %v8510_v52 = vld [vmem:[#allocation17_spill] sm:$0xff] }
 0x18a   : > { %v7957_v63 = vmul.f32 %v5176_v44, %v2953_v53  ;;  %p5757_p3 = pnand %p5756_p2, %p5750_p13 }
 0x18b   : > { %v5379_v14 = vpop.f32.mrb[76].mxu1  ;;  %v7959_v62 = vmul.f32 %v2952_v25, %v1520_v7  ;;  %v5179_v27 = vpop.f32.mrb[76].mxu0 }
 0x18c   : > { %5560 = vmatpush3.bf16.xpose.msk.msra.mxu1 %vm7238_vm1, %v8496_v26  ;;  %v2955_v12 = vmul.f32 %v5379_v14, %v7290_v36  ;;  %v2619_v61 = vpop.f32.mrb[77].mxu1  ;;  %v1530_v54 = vpop.f32.mrb[77].mxu0 }
 0x18d   : > { %5563 = vmatprep.subr.msk.bf16.mxu1 %vm7238_vm1, %v8497_v19  ;;  %v5600_v30 = vpack.c.bf16 %v7957_v63, %v7959_v62  ;;  %v2954_v23 = vmul.f32 %v2619_v61, %v7293_v43  ;;  %v8514_v62 = vld [vmem:[#allocation21_spill] sm:$0xff] }
 0x18e   : > { %v7975_v17 = vmul.f32 %v5179_v27, %v2955_v12  ;;  %v8498_v27 = vpack.c.bf16 %v7703_v51, %v7707_v0 }
 0x18f   : > { %v5382_v11 = vpop.f32.mrb[78].mxu1  ;;  %v7977_v9 = vmul.f32 %v2954_v23, %v1530_v54  ;;  %v5182_v44 = vpop.f32.mrb[78].mxu0 }
 0x190   : > { %v2957_v36 = vmul.f32 %v5382_v11, %v7296_v59  ;;  %v2629_v53 = vpop.f32.mrb[79].mxu1  ;;  %v1540_v45 = vpop.f32.mrb[79].mxu0 }
 0x191   : > { %v5606_v60 = vpack.c.bf16 %v7975_v17, %v7977_v9  ;;  %v2956_v24 = vmul.f32 %v2629_v53, %v7309_v1  ;;  %v8518_v9 = vld [vmem:[#allocation7_spill] sm:$0xff] }
 0x192   : > { %v7983_v7 = vmul.f32 %v5182_v44, %v2957_v36 }
 0x193   : > { %v5385_v25 = vpop.f32.mrb[80].mxu1  ;;  %v7985_v14 = vmul.f32 %v2956_v24, %v1540_v45  ;;  %v5185_v43 = vpop.f32.mrb[80].mxu0 }
 0x194   : > { %5566 = vmatpush3.bf16.xpose.msk.msra.mxu1 %vm7238_vm1, %v8498_v27  ;;  %v2959_v59 = vmul.f32 %v5385_v25, %v7312_v22  ;;  %v2639_v26 = vpop.f32.mrb[81].mxu1  ;;  %v1550_v12 = vpop.f32.mrb[81].mxu0 }
 0x195   : > { %v5612_v61 = vpack.c.bf16 %v7983_v7, %v7985_v14  ;;  %v2958_v1 = vmul.f32 %v2639_v26, %v7315_v34  ;;  %v8499_v34 = vpack.c.bf16 %v7866_v37, %v7870_v55 }
 0x196   : > { %v3343_v54 = vmul.f32 %v5185_v43, %v2959_v59 }
 0x197   : > { %v3342_v19 = vmul.f32 %v2958_v1, %v1550_v12  ;;  %v5388_v23 = vpop.f32.mrb[82].mxu1  ;;  %v5188_v11 = vpop.f32.mrb[82].mxu0 }
 0x198   : > { %v2961_v44 = vmul.f32 %v5388_v23, %v7328_v16  ;;  %v2649_v36 = vpop.f32.mrb[83].mxu1  ;;  %v1560_v51 = vpop.f32.mrb[83].mxu0 }
 0x199   : > { %v5567_v0 = vpack.c.bf16 %v3343_v54, %v3342_v19  ;;  %v2960_v53 = vmul.f32 %v2649_v36, %v7336_v49 }
 0x19a   : > { %v3345_v45 = vmul.f32 %v5188_v11, %v2961_v44 }
 0x19b   : > { %5569 = vmatprep.subr.msk.bf16.mxu0 %vm7238_vm1, %v5567_v0  ;;  %v3344_v22 = vmul.f32 %v2960_v53, %v1560_v51  ;;  %v5391_v24 = vpop.f32.mrb[84].mxu1  ;;  %v5191_v25 = vpop.f32.mrb[84].mxu0  ;;  %4986 = vmatmul.mubr.msk.f32.vlgmr.msra.gmra.mrb[128].mxu1 %vm699_vm0, %v7333_v38 }
 0x19c   : > { %5572 = vmatpush3.bf16.xpose.msk.msra.mxu0 %vm7238_vm1, %v8499_v34  ;;  %v2963_v16 = vmul.f32 %v5391_v24, %v7357_v5  ;;  %v2659_v43 = vpop.f32.mrb[85].mxu1  ;;  %v1570_v49 = vpop.f32.mrb[85].mxu0  ;;  %5053 = vmatprep.mubr.msk.f32.mxu1 %vm699_vm0, %v7333_v38 }
 0x19d   : > { %v5573_v27 = vpack.c.bf16 %v3345_v45, %v3344_v22  ;;  %v2962_v59 = vmul.f32 %v2659_v43, %v7378_v42  ;;  %v8500_v42 = vpack.c.bf16 %v7880_v4, %v7882_v31 }
 0x19e   : > { %v3347_v26 = vmul.f32 %v5191_v25, %v2963_v16 }
 0x19f   : > { %5575 = vmatprep.subr.msk.bf16.mxu0 %vm7238_vm1, %v5573_v27  ;;  %v3346_v12 = vmul.f32 %v2962_v59, %v1570_v49  ;;  %v5394_v1 = vpop.f32.mrb[86].mxu1  ;;  %v5194_v37 = vpop.f32.mrb[86].mxu0 }
 0x1a0   : > { %v2965_v55 = vmul.f32 %v5394_v1, %v7391_v28  ;;  %v2669_v54 = vpop.f32.mrb[87].mxu1  ;;  %v1580_v19 = vpop.f32.mrb[87].mxu0 }
 0x1a1   : > { %v5579_v5 = vpack.c.bf16 %v3347_v26, %v3346_v12  ;;  %v2964_v23 = vmul.f32 %v2669_v54, %v7402_v8  ;;  %v8501_v26 = vpack.c.bf16 %v7903_v18, %v7907_v47 }
 0x1a2   : > { %v3349_v11 = vmul.f32 %v5194_v37, %v2965_v55 }
 0x1a3   : > { %v3348_v44 = vmul.f32 %v2964_v23, %v1580_v19  ;;  %v5397_v38 = vpop.f32.mrb[88].mxu1  ;;  %v5197_v36 = vpop.f32.mrb[88].mxu0 }
 0x1a4   : > { %5578 = vmatpush3.bf16.xpose.msk.msra.mxu0 %vm7238_vm1, %v8500_v42  ;;  %v2967_v51 = vmul.f32 %v5397_v38, %v7420_v57  ;;  %v2679_v0 = vpop.f32.mrb[89].mxu1  ;;  %v1590_v53 = vpop.f32.mrb[89].mxu0 }
 0x1a5   : > { %5581 = vmatprep.subr.msk.bf16.mxu0 %vm7238_vm1, %v5579_v5  ;;  %v5585_v28 = vpack.c.bf16 %v3349_v11, %v3348_v44  ;;  %v2966_v8 = vmul.f32 %v2679_v0, %v7431_v2  ;;  %v8502_v5 = vld [vmem:[#allocation12_spill] sm:$0xff]  ;;  %v8503_v44 = vld [vmem:[#allocation13_spill] sm:$0xff] }
 0x1a6   : > { %v3351_v45 = vmul.f32 %v5197_v36, %v2967_v51 }
 0x1a7   : > { %v3350_v22 = vmul.f32 %v2966_v8, %v1590_v53  ;;  %v5400_v24 = vpop.f32.mrb[90].mxu1  ;;  %v5200_v25 = vpop.f32.mrb[90].mxu0 }
 0x1a8   : > { %v2969_v34 = vmul.f32 %v5400_v24, %v7457_v29  ;;  %v2689_v4 = vpop.f32.mrb[91].mxu1  ;;  %v1600_v31 = vpop.f32.mrb[91].mxu0 }
 0x1a9   : > { %v5591_v16 = vpack.c.bf16 %v3351_v45, %v3350_v22  ;;  %v2968_v43 = vmul.f32 %v2689_v4, %v7468_v10  ;;  %v8505_v45 = vld [vmem:[#allocation15_spill] sm:$0xff] }
 0x1aa   : > { %v3353_v57 = vmul.f32 %v5200_v25, %v2969_v34 }
 0x1ab   : > { %v3352_v49 = vmul.f32 %v2968_v43, %v1600_v31  ;;  %v5403_v27 = vpop.f32.mrb[92].mxu1  ;;  %v5203_v59 = vpop.f32.mrb[92].mxu0 }
 0x1ac   : > { %5584 = vmatpush3.bf16.xpose.msk.msra.mxu0 %vm7238_vm1, %v8501_v26  ;;  %v2971_v2 = vmul.f32 %v5403_v27, %v7494_v21  ;;  %v2699_v12 = vpop.f32.mrb[93].mxu1  ;;  %v1610_v1 = vpop.f32.mrb[93].mxu0 }
 0x1ad   : > { %5587 = vmatprep.subr.msk.bf16.mxu0 %vm7238_vm1, %v5585_v28  ;;  %v5597_v29 = vpack.c.bf16 %v3353_v57, %v3352_v49  ;;  %v2970_v10 = vmul.f32 %v2699_v12, %v7497_v56  ;;  %v8504_v56 = vld [vmem:[#allocation48_spill] sm:$0xff]  ;;  %v8507_v57 = vld [vmem:[#allocation49_spill] sm:$0xff] }
 0x1ae   : > { %v3355_v37 = vmul.f32 %v5203_v59, %v2971_v2  ;;  %v8508_v2 = vld [vmem:[#allocation50_spill] sm:$0xff] }
 0x1af   : > { %v5406_v55 = vpop.f32.mrb[94].mxu1  ;;  %v3354_v54 = vmul.f32 %v2970_v10, %v1610_v1  ;;  %v5206_v19 = vpop.f32.mrb[94].mxu0 }
 0x1b0   : > { %v2973_v23 = vmul.f32 %v5406_v55, %v8502_v5  ;;  %v2709_v18 = vpop.f32.mrb[95].mxu1  ;;  %v1620_v47 = vpop.f32.mrb[95].mxu0  ;;  %v8509_v55 = vld [vmem:[#allocation40_spill] sm:$0xff] }
 0x1b1   : > { %v5603_v11 = vpack.c.bf16 %v3355_v37, %v3354_v54  ;;  %v2972_v38 = vmul.f32 %v2709_v18, %v8503_v44 }
 0x1b2   : > { %v8037_v21 = vmul.f32 %v5206_v19, %v2973_v23 }
 0x1b3   : > { %v5409_v36 = vpop.f32.mrb[96].mxu1  ;;  %v8039_v42 = vmul.f32 %v2972_v38, %v1620_v47  ;;  %v5209_v51 = vpop.f32.mrb[96].mxu0  ;;  %v8511_v38 = vld [vmem:[#allocation16_spill] sm:$0xff] }
 0x1b4   : > { %5590 = vmatpush3.bf16.xpose.msk.msra.mxu0 %vm7238_vm1, %v5588_v13  ;;  %v2975_v0 = vmul.f32 %v5409_v36, %v8504_v56  ;;  %v2719_v53 = vpop.f32.mrb[97].mxu1  ;;  %v1630_v28 = vpop.f32.mrb[97].mxu0  ;;  %v8512_v56 = vld [vmem:[#allocation19_spill] sm:$0xff] }
 0x1b5   : > { %5593 = vmatprep.subr.msk.bf16.mxu0 %vm7238_vm1, %v5591_v16  ;;  %v5609_v8 = vpack.c.bf16 %v8037_v21, %v8039_v42  ;;  %v2974_v22 = vmul.f32 %v2719_v53, %v8505_v45 }
 0x1b6   : > { %v8052_v24 = vmul.f32 %v5209_v51, %v2975_v0 }
 0x1b7   : > { %v5412_v25 = vpop.f32.mrb[98].mxu1  ;;  %v8054_v34 = vmul.f32 %v2974_v22, %v1630_v28  ;;  %v5212_v3 = vpop.f32.mrb[98].mxu0  ;;  %v8513_v22 = vld [vmem:[#allocation18_spill] sm:$0xff] }
 0x1b8   : > { %v2977_v13 = vmul.f32 %v5412_v25, %v8506_v6  ;;  %v2729_v4 = vpop.f32.mrb[99].mxu1  ;;  %v1640_v31 = vpop.f32.mrb[99].mxu0 }
 0x1b9   : > { %v5618_v43 = vpack.c.bf16 %v8052_v24, %v8054_v34  ;;  %v2976_v16 = vmul.f32 %v2729_v4, %v8507_v57 }
 0x1ba   : > { %v8060_v49 = vmul.f32 %v5212_v3, %v2977_v13 }
 0x1bb   : > { %v5415_v27 = vpop.f32.mrb[100].mxu1  ;;  %v8062_v59 = vmul.f32 %v2976_v16, %v1640_v31  ;;  %v5215_v26 = vpop.f32.mrb[100].mxu0  ;;  %v8515_v16 = vld [vmem:[#allocation20_spill] sm:$0xff] }
 0x1bc   : > { %5596 = vmatpush3.bf16.xpose.msk.msra.mxu0 %vm7238_vm1, %v5594_v48  ;;  %v2979_v12 = vmul.f32 %v5415_v27, %v8508_v2  ;;  %v2739_v1 = vpop.f32.mrb[101].mxu1  ;;  %v1650_v10 = vpop.f32.mrb[101].mxu0 }
 0x1bd   : > { %5599 = vmatprep.subr.msk.bf16.mxu0 %vm7238_vm1, %v5597_v29  ;;  %v5624_v37 = vpack.c.bf16 %v8060_v49, %v8062_v59  ;;  %v2978_v54 = vmul.f32 %v2739_v1, %v8509_v55  ;;  %v8516_v1 = vld [vmem:[#allocation23_spill] sm:$0xff] }
 0x1be   : > { %v8075_v19 = vmul.f32 %v5215_v26, %v2979_v12 }
 0x1bf   : > { %v5418_v5 = vpop.f32.mrb[102].mxu1  ;;  %v8077_v23 = vmul.f32 %v2978_v54, %v1650_v10  ;;  %v5218_v39 = vpop.f32.mrb[102].mxu0 }
 0x1c0   : > { %v2981_v48 = vmul.f32 %v5418_v5, %v8510_v52  ;;  %v2749_v18 = vpop.f32.mrb[103].mxu1  ;;  %v1660_v47 = vpop.f32.mrb[103].mxu0 }
 0x1c1   : > { %v5630_v44 = vpack.c.bf16 %v8075_v19, %v8077_v23  ;;  %v2980_v29 = vmul.f32 %v2749_v18, %v8511_v38 }
 0x1c2   : > { %v8083_v21 = vmul.f32 %v5218_v39, %v2981_v48  ;;  %v8517_v39 = vld [vmem:[#allocation22_spill] sm:$0xff] }
 0x1c3   : > { %v5421_v36 = vpop.f32.mrb[104].mxu1  ;;  %v8085_v42 = vmul.f32 %v2980_v29, %v1660_v47  ;;  %v5221_v51 = vpop.f32.mrb[104].mxu0 }
 0x1c4   : > { %5602 = vmatpush3.bf16.xpose.msk.msra.mxu0 %vm7238_vm1, %v5600_v30  ;;  %v2983_v0 = vmul.f32 %v5421_v36, %v8512_v56  ;;  %v2759_v53 = vpop.f32.mrb[105].mxu1  ;;  %v1670_v28 = vpop.f32.mrb[105].mxu0 }
 0x1c5   : > { %5605 = vmatprep.subr.msk.bf16.mxu0 %vm7238_vm1, %v5603_v11  ;;  %v5636_v45 = vpack.c.bf16 %v8083_v21, %v8085_v42  ;;  %v2982_v25 = vmul.f32 %v2759_v53, %v8513_v22  ;;  %v8520_v22 = vld [vmem:[#allocation25_spill] sm:$0xff] }
 0x1c6   : > { %v8098_v3 = vmul.f32 %v5221_v51, %v2983_v0  ;;  %v8519_v51 = vld [vmem:[#allocation42_spill] sm:$0xff] }
 0x1c7   : > { %v5424_v6 = vpop.f32.mrb[106].mxu1  ;;  %v8100_v13 = vmul.f32 %v2982_v25, %v1670_v28  ;;  %v5224_v63 = vpop.f32.mrb[106].mxu0 }
 0x1c8   : > { %v2985_v30 = vmul.f32 %v5424_v6, %v8514_v62  ;;  %v2769_v4 = vpop.f32.mrb[107].mxu1  ;;  %v1680_v31 = vpop.f32.mrb[107].mxu0 }
 0x1c9   : > { %v5642_v57 = vpack.c.bf16 %v8098_v3, %v8100_v13  ;;  %v2984_v11 = vmul.f32 %v2769_v4, %v8515_v16  ;;  %v5811_v3 = vmov 1983009808  }
 0x1ca   : > { %v8106_v27 = vmul.f32 %v5224_v63, %v2985_v30  ;;  %v4081_v13 = vunpack.c.l.s4 %v5811_v3 }
 0x1cb   : > { %v5427_v26 = vpop.f32.mrb[108].mxu1  ;;  %v8108_v2 = vmul.f32 %v2984_v11, %v1680_v31  ;;  %v5227_v12 = vpop.f32.mrb[108].mxu0 }
 0x1cc   : > { %5608 = vmatpush3.bf16.xpose.msk.msra.mxu0 %vm7238_vm1, %v5606_v60  ;;  %v2987_v10 = vmul.f32 %v5427_v26, %v8516_v1  ;;  %v2779_v55 = vpop.f32.mrb[109].mxu1  ;;  %v1690_v54 = vpop.f32.mrb[109].mxu0 }
 0x1cd   : > { %v5648_v5 = vpack.c.bf16 %v8106_v27, %v8108_v2  ;;  %v2986_v52 = vmul.f32 %v2779_v55, %v8517_v39  ;;  %5611 = vmatprep.subr.msk.bf16.mxu0 %vm7238_vm1, %v5609_v8  ;;  %v4082_v27 = vunpack.c.0.s8 %v4081_v13 }
 0x1ce   : > { %v8121_v48 = vmul.f32 %v5227_v12, %v2987_v10 }
 0x1cf   : > { %v5430_v18 = vpop.f32.mrb[110].mxu1  ;;  %v8123_v47 = vmul.f32 %v2986_v52, %v1690_v54  ;;  %v5230_v17 = vpop.f32.mrb[110].mxu0 }
 0x1d0   : > { %v2989_v60 = vmul.f32 %v5430_v18, %v8518_v9  ;;  %v2789_v38 = vpop.f32.mrb[111].mxu1  ;;  %v1700_v29 = vpop.f32.mrb[111].mxu0 }
 0x1d1   : > { %v5654_v36 = vpack.c.bf16 %v8121_v48, %v8123_v47  ;;  %v2988_v56 = vmul.f32 %v2789_v38, %v8519_v51 }
 0x1d2   : > { %v8129_v0 = vmul.f32 %v5230_v17, %v2989_v60 }
 0x1d3   : > { %v5433_v53 = vpop.f32.mrb[112].mxu1  ;;  %v8131_v28 = vmul.f32 %v2988_v56, %v1700_v29  ;;  %v5233_v8 = vpop.f32.mrb[112].mxu0 }
 0x1d4   : > { %v2991_v25 = vmul.f32 %v5433_v53, %v8520_v22  ;;  %v2799_v6 = vpop.f32.mrb[113].mxu1  ;;  %5614 = vmatpush3.bf16.xpose.msk.msra.mxu0 %vm7238_vm1, %v5612_v61  ;;  %v1710_v63 = vpop.f32.mrb[113].mxu0 }
 0x1d5   : > { %v5660_v62 = vpack.c.bf16 %v8129_v0, %v8131_v28  ;;  %v2990_v30 = vmul.f32 %v2799_v6, %v7723_v46  ;;  %v8149_v46 = vld [vmem:[%s8272_s4] sm:$0x3] }
 0x1d6   : > { %v3375_v4 = vmul.f32 %v5233_v8, %v2991_v25 }
 0x1d7   : > { %v3374_v31 = vmul.f32 %v2990_v30, %v1710_v63  ;;  %v5436_v16 = vpop.f32.mrb[114].mxu1  ;;  %v5236_v11 = vpop.f32.mrb[114].mxu0 }
 0x1d8   : > { %v2993_v26 = vmul.f32 %v5436_v16, %v7737_v50  ;;  %v2809_v12 = vpop.f32.mrb[115].mxu1  ;;  %v1720_v1 = vpop.f32.mrb[115].mxu0  ;;  %v8521_v50 = vld [vmem:[#allocation24_spill] sm:$0xff] }
 0x1d9   : > { %v5615_v10 = vpack.c.bf16 %v3375_v4, %v3374_v31  ;;  %v2992_v7 = vmul.f32 %v2809_v12, %v7746_v41  ;;  %v8524_v31 = vld [vmem:[#allocation29_spill] sm:$0xff] }
 0x1da   : > { %v3377_v14 = vmul.f32 %v5236_v11, %v2993_v26 }
 0x1db   : > { %5617 = vmatprep.subr.msk.bf16.mxu1 %vm7238_vm1, %v5615_v10  ;;  %v3376_v61 = vmul.f32 %v2992_v7, %v1720_v1  ;;  %v5439_v55 = vpop.f32.mrb[116].mxu1  ;;  %v5239_v54 = vpop.f32.mrb[116].mxu0  ;;  %5020 = vmatmul.mubr.msk.f32.vlgmr.msra.gmra.mrb[130].mxu0 %vm699_vm0, %v8149_v46  ;;  %v8525_v10 = vld [vmem:[#allocation28_spill] sm:$0xff] }
 0x1dc   : > { %5620 = vmatpush3.bf16.xpose.msk.msra.mxu1 %vm7238_vm1, %v5618_v43  ;;  %v2995_v41 = vmul.f32 %v5439_v55, %v8521_v50  ;;  %v2819_v39 = vpop.f32.mrb[117].mxu1  ;;  %v1730_v52 = vpop.f32.mrb[117].mxu0  ;;  %v8522_v43 = vld [vmem:[#allocation27_spill] sm:$0xff] }
 0x1dd   : > { %v5621_v18 = vpack.c.bf16 %v3377_v14, %v3376_v61  ;;  %v2994_v17 = vmul.f32 %v2819_v39, %v7771_v33  ;;  %v8523_v33 = vld [vmem:[#allocation26_spill] sm:$0xff] }
 0x1de   : > { %v3379_v9 = vmul.f32 %v5239_v54, %v2995_v41 }
 0x1df   : > { %5623 = vmatprep.subr.msk.bf16.mxu1 %vm7238_vm1, %v5621_v18  ;;  %v3378_v60 = vmul.f32 %v2994_v17, %v1730_v52  ;;  %v5442_v38 = vpop.f32.mrb[118].mxu1  ;;  %v5242_v29 = vpop.f32.mrb[118].mxu0 }
 0x1e0   : > { %v2997_v51 = vmul.f32 %v5442_v38, %v7788_v15  ;;  %v2829_v24 = vpop.f32.mrb[119].mxu1  ;;  %v1740_v34 = vpop.f32.mrb[119].mxu0 }
 0x1e1   : > { %v5627_v56 = vpack.c.bf16 %v3379_v9, %v3378_v60  ;;  %v2996_v53 = vmul.f32 %v2829_v24, %v8522_v43 }
 0x1e2   : > { %v3381_v8 = vmul.f32 %v5242_v29, %v2997_v51 }
 0x1e3   : > { %v3380_v22 = vmul.f32 %v2996_v53, %v1740_v34  ;;  %v5445_v25 = vpop.f32.mrb[120].mxu1  ;;  %v5245_v6 = vpop.f32.mrb[120].mxu0 }
 0x1e4   : > { %5626 = vmatpush3.bf16.xpose.msk.msra.mxu1 %vm7238_vm1, %v5624_v37  ;;  %v2999_v63 = vmul.f32 %v5445_v25, %v8523_v33  ;;  %v2839_v30 = vpop.f32.mrb[121].mxu1  ;;  %v1750_v4 = vpop.f32.mrb[121].mxu0  ;;  %v8526_v37 = vld [vmem:[#allocation31_spill] sm:$0xff] }
 0x1e5   : > { %5629 = vmatprep.subr.msk.bf16.mxu1 %vm7238_vm1, %v5627_v56  ;;  %v5633_v15 = vpack.c.bf16 %v3381_v8, %v3380_v22  ;;  %v2998_v16 = vmul.f32 %v2839_v30, %v8524_v31 }
 0x1e6   : > { %v3383_v11 = vmul.f32 %v5245_v6, %v2999_v63 }
 0x1e7   : > { %v3382_v26 = vmul.f32 %v2998_v16, %v1750_v4  ;;  %v5448_v12 = vpop.f32.mrb[122].mxu1  ;;  %v5248_v1 = vpop.f32.mrb[122].mxu0 }
 0x1e8   : > { %v3001_v7 = vmul.f32 %v5448_v12, %v8525_v10  ;;  %v2849_v49 = vpop.f32.mrb[123].mxu1  ;;  %v1760_v59 = vpop.f32.mrb[123].mxu0 }
 0x1e9   : > { %v5639_v14 = vpack.c.bf16 %v3383_v11, %v3382_v26  ;;  %v3000_v61 = vmul.f32 %v2849_v49, %v8526_v37 }
 0x1ea   : > { %v3385_v55 = vmul.f32 %v5248_v1, %v3001_v7 }
 0x1eb   : > { %v3384_v54 = vmul.f32 %v3000_v61, %v1760_v59  ;;  %v5451_v50 = vpop.f32.mrb[124].mxu1  ;;  %v5251_v41 = vpop.f32.mrb[124].mxu0 }
 0x1ec   : > { %5632 = vmatpush3.bf16.xpose.msk.msra.mxu1 %vm7238_vm1, %v5630_v44  ;;  %v3003_v39 = vmul.f32 %v5451_v50, %v7891_v58  ;;  %v2859_v52 = vpop.f32.mrb[125].mxu1  ;;  %v1770_v18 = vpop.f32.mrb[125].mxu0 }
 0x1ed   : > { %5635 = vmatprep.subr.msk.bf16.mxu1 %vm7238_vm1, %v5633_v15  ;;  %v5645_v17 = vpack.c.bf16 %v3385_v55, %v3384_v54  ;;  %v3002_v9 = vmul.f32 %v2859_v52, %v7901_v35 }
 0x1ee   : > { %v3387_v60 = vmul.f32 %v5251_v41, %v3003_v39 }
 0x1ef   : > { %v3386_v38 = vmul.f32 %v3002_v9, %v1770_v18  ;;  %v5454_v29 = vpop.f32.mrb[126].mxu1 }
 0x1f0   : > { %v3005_v51 = vmul.f32 %v5454_v29, %v7928_v20  ;;  %v2869_v24 = vpop.f32.mrb[127].mxu1  ;;  %v5254_v19 = vpop.f32.mrb[126].mxu0 }
 0x1f1   : > { %v5651_v23 = vpack.c.bf16 %v3387_v60, %v3386_v38  ;;  %v3004_v44 = vmul.f32 %v2869_v24, %v7941_v32  ;;  %v1780_v34 = vpop.f32.mrb[127].mxu0 }
 0x1f2   : > { %v3389_v58 = vmul.f32 %v5254_v19, %v3005_v51 }
 0x1f3   : > { %v3388_v56 = vmul.f32 %v3004_v44, %v1780_v34 }
 0x1f4   : > { %5638 = vmatpush3.bf16.xpose.msk.msra.mxu1 %vm7238_vm1, %v5636_v45 }
 0x1f5   : > { %5641 = vmatprep.subr.msk.bf16.mxu1 %vm7238_vm1, %v5639_v14  ;;  %v5657_v35 = vpack.c.bf16 %v3389_v58, %v3388_v56 }
 0x1fc   : > { %5644 = vmatpush3.bf16.xpose.msk.msra.mxu1 %vm7238_vm1, %v5642_v57  ;;  %v4083_v57 = vlaneseq }
 0x1fd   : > { %5647 = vmatprep.subr.msk.bf16.mxu1 %vm7238_vm1, %v5645_v17 }
 0x1fe   : > { %v4084_v2 = vshrl.u32 %v4083_v57, 7 }
 0x200   : > { %v4085_v48 = vsub.s32 %v4082_v27, %v4084_v2 }
 0x204   : > { %5650 = vmatpush3.bf16.xpose.msk.msra.mxu1 %vm7238_vm1, %v5648_v5 }
 0x205   : > { %5653 = vmatprep.subr.msk.bf16.mxu1 %vm7238_vm1, %v5651_v23 }
 0x20c   : > { %5656 = vmatpush3.bf16.xpose.msk.msra.mxu1 %vm7238_vm1, %v5654_v36 }
 0x20d   : > { %5659 = vmatprep.subr.msk.bf16.mxu1 %vm7238_vm1, %v5657_v35 }
 0x214   : > { %5662 = vmatpush3.bf16.xpose.msk.msra.mxu1 %vm7238_vm1, %v5660_v62 }
 0x21b   : > { %5054 = vmatmul.mubr.msk.f32.vlgmr.msra.gmra.mrb[130].mxu1 %vm699_vm0, %v8149_v46 }
 0x231   : > { %v3844_v20 = vpop.f32.mrb[128].mxu0 }
 0x232   : > { %v4062_v32 = vmul.f32 0.25, %v3844_v20  ;;  %v3846_v21 = vpop.f32.mrb[129].mxu0 }
 0x233   : > { %v4063_v42 = vmul.f32 0.25, %v3846_v21 }
 0x235   : > { %v4078_v45 = vcombine.low %v4062_v32, %v4063_v42 }
 0x237   : > { %v4086_v0 = vrot.slane %v4078_v45, %v4085_v48 }
 0x26e   : > { %v3915_v5 = vpop.f32.mrb[128].mxu1 }
 0x26f   : > { %v4064_v47 = vmul.f32 0.25, %v3915_v5  ;;  %v3917_v36 = vpop.f32.mrb[129].mxu1 }
 0x270   : > { %v4065_v40 = vmul.f32 0.25, %v3917_v36 }
 0x272   : > { %v4079_v28 = vcombine.low %v4064_v47, %v4065_v40 }
 0x274   : > { %v4093_v62 = vrot.slane %v4079_v28, %v4085_v48 }
 0x276   : > { %v4094_v46 = vcombine.low %v4086_v0, %v4093_v62 }
 0x278   : > { %4114 = vst [vmem:[%s278_s28] sm:$0xff] %v4094_v46 }
 0x2ae   : > { %v3986_v43 = vpop.f32.mrb[130].mxu0 }
 0x2af   : > { %v4066_v53 = vmul.f32 0.25, %v3986_v43  ;;  %v3988_v8 = vpop.f32.mrb[131].mxu0 }
 0x2b0   : > { %v4067_v22 = vmul.f32 0.25, %v3988_v8 }
 0x2b2   : > { %v4095_v25 = vcombine.low %v4066_v53, %v4067_v22 }
 0x2b4   : > { %v4103_v4 = vrot.slane %v4095_v25, %v4085_v48 }
 0x2ee   : > { %v4057_v6 = vpop.f32.mrb[130].mxu1 }
 0x2ef   : > { %v4068_v33 = vmul.f32 0.25, %v4057_v6  ;;  %v4059_v63 = vpop.f32.mrb[131].mxu1 }
 0x2f0   : > { %v4069_v30 = vmul.f32 0.25, %v4059_v63 }
 0x2f2   : > { %v4096_v15 = vcombine.low %v4068_v33, %v4069_v30 }
 0x2f4   : > { %v4110_v31 = vrot.slane %v4096_v15, %v4085_v48 }
 0x2f6   : > { %v4111_v16 = vcombine.low %v4103_v4, %v4110_v31 }
 0x2f8   : > { %4115 = vst [vmem:[%s278_s28 + $0x8] sm:$0xff] %v4111_v16 }
 0x2f9   : > { %5760 = shalt.err (!%p5757_p3)
}
 0x2fa   : > { %s5761_s17 = scalar_lea.hbm %s8226_s12, 256  ;;  %s5765_s20 = scalar_lea.hbm %s8273_s5, 512 }
 0x2fb   : > { %p5762_p4 = scmp.ne.s32.totalorder %s8226_s12, %s5761_s17  ;;  %p5766_p9 = scmp.lt.u32.totalorder %s8226_s12, %s8273_s5 }
 0x2fc   : > { %p5767_p10 = scmp.lt.u32.totalorder %s5765_s20, %s5761_s17  ;;  %p5769_p12 = scmp.lt.u32.totalorder %s5761_s17, %s8226_s12 }
 0x2fd   : > { %p5763_p7 = pnand %p5762_p4, %p5886_p5 }
 0x2fe   : > { %p5768_p11 = por %p5767_p10, %p5766_p9 }
 0x2ff   : > { %p5764_p8 = pneg %p5763_p7 }
 0x300   : > { %p5770_p13 = por %p5769_p12, %p5768_p11 }
 0x302   : > { %p5771_p0 = pnand %p5770_p13, %p5764_p8 }
 0x304   : > { %5774 = shalt.err (!%p5771_p0)
}
 0x305   : > { %5663 = dma.vmem_to_hbm [thread:$0]  (%p5886_p5), %s8228_s9, 256, %s8226_s12, %s4117_s13  }
 0x306 PF: > { %p5669_p1 = scmp.ge.s32.totalorder %s5809_s24, 2  ;;  %s4152_s29 = sand.u32 1, %s5797_s21  }
 0x307   : > { %s4153_s10 = scalar_lea.sflag [#allocation3], %s4152_s29 }
 0x308   : > { %p5666_p2 = pnand %p5669_p1, %p5890_p6 }
 0x30a   : > { %5792 = dma.done.wait (!%p5666_p2), %s4153_s10, 256  }
 0x30b   : > { %5794 = vsyncadd (!%p5666_p2), %s4153_s10, 4294967040  ;;  %p17_p3 = scmp.ge.s32.totalorder %s5873_s27, 4   ;;  %s8527_s21 = smov %s5801_s22 }
 0x30c   : > { %s8528_s22 = smov %s5805_s23  ;;  %s8529_s23 = smov %s5884_s30 }
 0x30d   : > { %s8530_s24 = smov %s5873_s27  ;;  %19 = sbr.rel (!%p17_p3) target bundleno = 3 (0x3), region = 93 }
 0x314   :  { %4166 = vsyncpa [#allocation3], 1 }
 0x315   :  { %4168 = vsyncpa [#allocation3 + $0x1], 1 }

</bundles_post_ra>
